<compile_context>
chip_gen: v6e
topology: v6e:2x2x1
jax: 0.10.0
libtpu: 0.0.40
codegen_flags: <defaults>
</compile_context>

<pallas_src>
import jax
import jax.numpy as jnp
from jax.experimental import pallas as pl
from jax.experimental.pallas import tpu as pltpu


# ----------------------------- Pallas kernel --------------------------------


def make_bilstm_fc_kernel(n_layers, T, B, H):
    """Builds the fused multi-layer BiLSTM + FC kernel (closure over sizes)."""
    H4 = 4 * H
    H8 = 8 * H

    def kernel(*refs):
        # --- unpack refs: inputs, output, scratch (positional) ---
        x_ref = refs[0]                          # (T*B, E)  bf16
        layer_w = []
        i = 1
        for _ in range(n_layers):
            layer_w.append(refs[i:i + 3])        # w_ih_cat, w_hh_cat, b_cat
            i += 3
        fc_w_ref = refs[i]                       # (2H, O)   bf16
        fc_b_ref = refs[i + 1]                   # (1, O)    f32
        out_ref = refs[i + 2]                    # (B, O)    f32
        seq_ref = refs[i + 3]                    # (T*B, 2H) bf16  (single buf)
        gx_ref = refs[i + 4]                     # (T*B, 8H) f32

        h_cat = jnp.zeros((B, 2 * H), jnp.float32)

        for layer in range(n_layers):
            wih_ref, whh_ref, b_ref = layer_w[layer]

            # ---- hoisted, direction-fused input projection ------------------
            # One (T*B, d_in) @ (d_in, 8H) matmul; cols 0:4H are fwd gates,
            # cols 4H:8H are bwd gates (PyTorch order i,f,g,o within each).
            x2d = x_ref[...] if layer == 0 else seq_ref[...]
            gx_ref[...] = (jnp.dot(x2d, wih_ref[...],
                                   preferred_element_type=jnp.float32)
                           + b_ref[...])

            whh_cat = whh_ref[...]               # (2H, 8H) bf16, block-diag
            write_seq = layer < n_layers - 1     # top layer's seq is unused

            # reset recurrent state for this layer
            h_cat = jnp.zeros((B, 2 * H), jnp.float32)
            c_f = jnp.zeros((B, H), jnp.float32)
            c_b = jnp.zeros((B, H), jnp.float32)

            # Fully-unrolled time loop: both directions advance in the same
            # step (fwd reads row t, bwd reads row T-1-t). Static indices.
            for t in range(T):
                rt = T - 1 - t
                gx_f = gx_ref[pl.ds(t * B, B), pl.ds(0, H4)]    # (B, 4H)
                gx_b = gx_ref[pl.ds(rt * B, B), pl.ds(H4, H4)]  # (B, 4H)
                # single 256-wide recurrent matmul for both directions
                g = (jnp.concatenate([gx_f, gx_b], axis=-1)
                     + jnp.dot(h_cat.astype(jnp.bfloat16), whh_cat,
                               preferred_element_type=jnp.float32))  # (B, 8H)

                # one full-width sigmoid + one tanh for both directions
                sig = jax.nn.sigmoid(g)
                tah = jnp.tanh(g)   # extra lanes (i/f/o regions) are discarded
                i_f = sig[:, 0 * H:1 * H]
                f_f = sig[:, 1 * H:2 * H]
                gg_f = tah[:, 2 * H:3 * H]
                o_f = sig[:, 3 * H:4 * H]
                i_b = sig[:, 4 * H:5 * H]
                f_b = sig[:, 5 * H:6 * H]
                gg_b = tah[:, 6 * H:7 * H]
                o_b = sig[:, 7 * H:8 * H]

                c_f = f_f * c_f + i_f * gg_f
                c_b = f_b * c_b + i_b * gg_b
                h_f = o_f * jnp.tanh(c_f)
                h_b = o_b * jnp.tanh(c_b)

                if write_seq:
                    seq_ref[pl.ds(t * B, B), pl.ds(0, H)] = (
                        h_f.astype(seq_ref.dtype))
                    seq_ref[pl.ds(rt * B, B), pl.ds(H, H)] = (
                        h_b.astype(seq_ref.dtype))

                h_cat = jnp.concatenate([h_f, h_b], axis=-1)     # (B, 2H)

        # ---- final FC on cat(h_n_fwd_top, h_n_bwd_top) == h_cat, in-kernel --
        out_ref[...] = (jnp.dot(h_cat.astype(jnp.bfloat16), fc_w_ref[...],
                                preferred_element_type=jnp.float32)
                        + fc_b_ref[...])

    return kernel


# ------------------------------ Wrapper --------------------------------------


def rnn_forward(text, params):
    """Full forward pass of the PyTorch `RNN` module (eval mode).

    text: (T, B) int32 token ids.
    Returns: (B, output_dim) float32.
    """
    # Embedding lookup (gather) -- plain-JAX glue.  Dropout is identity (eval).
    embedded = jnp.take(params["embedding"], text, axis=0)     # (T, B, E) f32
    T, B, E = embedded.shape
    n_layers = params["n_layers"]
    H = params["hidden_dim"]
    O = params["fc_w_t"].shape[1]

    # Reshape/cast once in the wrapper so the kernel never reshapes sequences.
    x2d = embedded.reshape(T * B, E).astype(jnp.bfloat16)

    inputs = [x2d]
    for lw in params["lstm"]:
        inputs += [lw["w_ih_cat"], lw["w_hh_cat"], lw["b_cat"]]
    inputs += [params["fc_w_t"], params["fc_b"]]

    kernel = make_bilstm_fc_kernel(n_layers, T, B, H)

    scratch_shapes = [
        pltpu.VMEM((T * B, 2 * H), jnp.bfloat16),   # layer output sequence
        pltpu.VMEM((T * B, 8 * H), jnp.float32),    # hoisted gates (both dirs)
    ]

    # Explicit VMEM budget (matters on v7x where the scoped default is 32 MiB).
    scratch_bytes = (T * B * 2 * H) * 2 + (T * B * 8 * H) * 4
    io_bytes = sum(int(a.size) * int(a.dtype.itemsize) for a in inputs)
    io_bytes += B * O * 4
    vmem_limit = int(min(max(2 * (scratch_bytes + io_bytes) + (4 << 20),
                             16 << 20),
                         64 << 20))

    return pl.pallas_call(
        kernel,
        out_shape=jax.ShapeDtypeStruct((B, O), jnp.float32),
        in_specs=[pl.BlockSpec(memory_space=pltpu.MemorySpace.VMEM)]
                 * len(inputs),
        out_specs=pl.BlockSpec(memory_space=pltpu.MemorySpace.VMEM),
        scratch_shapes=scratch_shapes,
        compiler_params=pltpu.CompilerParams(vmem_limit_bytes=vmem_limit),
    )(*inputs)


# ------------------------- Deterministic parameters --------------------------


def init_params(key, vocab_size, embedding_dim, hidden_dim, output_dim,
                n_layers, pad_idx):
    H = hidden_dim

    def u(k, shape, scale=0.1):
        return jax.random.uniform(k, shape, jnp.float32, -scale, scale)

    keys = iter(jax.random.split(key, 4 + n_layers * 2 * 4))
    emb = u(next(keys), (vocab_size, embedding_dim))
    if pad_idx is not None:
        emb = emb.at[pad_idx].set(0.0)  # padding_idx row is zeros

    lstm = []
    for layer in range(n_layers):
        d_in = embedding_dim if layer == 0 else 2 * H
        per_dir = []
        for _ in range(2):  # fwd, bwd
            w_ih_t = u(next(keys), (d_in, 4 * H))   # == W_ih.T, gate order ifgo
            w_hh_t = u(next(keys), (H, 4 * H))      # == W_hh.T
            b_ih = u(next(keys), (4 * H,))
            b_hh = u(next(keys), (4 * H,))
            per_dir.append((w_ih_t, w_hh_t, b_ih + b_hh))
        (wif, whf, bf), (wib, whb, bb) = per_dir

        # Direction-fused layouts (columns: [fwd i,f,g,o | bwd i,f,g,o]):
        w_ih_cat = jnp.concatenate([wif, wib], axis=1).astype(jnp.bfloat16)
        w_hh_cat = jnp.zeros((2 * H, 8 * H), jnp.float32)
        w_hh_cat = w_hh_cat.at[:H, :4 * H].set(whf)        # block-diagonal
        w_hh_cat = w_hh_cat.at[H:, 4 * H:].set(whb)
        w_hh_cat = w_hh_cat.astype(jnp.bfloat16)
        b_cat = jnp.concatenate([bf, bb]).reshape(1, 8 * H)  # f32

        lstm.append({"w_ih_cat": w_ih_cat, "w_hh_cat": w_hh_cat,
                     "b_cat": b_cat})

    fc_w_t = u(next(keys), (2 * H, output_dim)).astype(jnp.bfloat16)
    fc_b = u(next(keys), (1, output_dim))

    return {
        "embedding": emb,
        "lstm": lstm,
        "fc_w_t": fc_w_t,
        "fc_b": fc_b,
        "n_layers": n_layers,
        "hidden_dim": H,
    }


# ---------------------------------- Main -------------------------------------


if __name__ == "__main__":
    VOCAB = 50
    EMB = 32
    HID = 32
    OUT = 4
    N_LAYERS = 2
    PAD_IDX = 0
    SEQ = 8
    BATCH = 2

    key = jax.random.PRNGKey(0)
    k_param, k_text = jax.random.split(key)
    params = init_params(k_param, VOCAB, EMB, HID, OUT, N_LAYERS, PAD_IDX)
    text = jax.random.randint(k_text, (SEQ, BATCH), 0, VOCAB, dtype=jnp.int32)

    out = rnn_forward(text, params)
    jax.block_until_ready(out)
    assert out.shape == (BATCH, OUT), out.shape
    print("KERNEL_OK")
</pallas_src>

<mosaic_0001>
module attributes {stable_mosaic.version = 11 : i64} {
  func.func @kernel(%arg0: memref<16x32xbf16, #tpu.memory_space<vmem>>, %arg1: memref<32x256xbf16, #tpu.memory_space<vmem>>, %arg2: memref<64x256xbf16, #tpu.memory_space<vmem>>, %arg3: memref<1x256xf32, #tpu.memory_space<vmem>>, %arg4: memref<64x256xbf16, #tpu.memory_space<vmem>>, %arg5: memref<64x256xbf16, #tpu.memory_space<vmem>>, %arg6: memref<1x256xf32, #tpu.memory_space<vmem>>, %arg7: memref<64x4xbf16, #tpu.memory_space<vmem>>, %arg8: memref<1x4xf32, #tpu.memory_space<vmem>>, %arg9: memref<2x4xf32, #tpu.memory_space<vmem>>, %arg10: memref<16x64xbf16, #tpu.memory_space<vmem>>, %arg11: memref<16x256xf32, #tpu.memory_space<vmem>>) attributes {dimension_semantics = [], scalar_prefetch = 0 : i64, scratch_operands = 2 : i64, tpu.core_type = #tpu.core_type<tc>} {
    %c0 = arith.constant 0 : index
    %c0_0 = arith.constant 0 : index
    %0 = vector.load %arg0[%c0, %c0_0] : memref<16x32xbf16, #tpu.memory_space<vmem>>, vector<16x32xbf16>
    %c0_1 = arith.constant 0 : index
    %c0_2 = arith.constant 0 : index
    %1 = vector.load %arg1[%c0_1, %c0_2] : memref<32x256xbf16, #tpu.memory_space<vmem>>, vector<32x256xbf16>
    %cst = arith.constant dense<0.000000e+00> : vector<16x256xf32>
    %2 = tpu.matmul %0, %1, %cst {dimension_numbers = #tpu.dot_dimension_numbers<[1], [0], [0], [1], [0, 0, 1, 1], [], []>} : vector<16x32xbf16>, vector<32x256xbf16>, vector<16x256xf32> -> vector<16x256xf32>
    %c0_3 = arith.constant 0 : index
    %c0_4 = arith.constant 0 : index
    %3 = vector.load %arg3[%c0_3, %c0_4] : memref<1x256xf32, #tpu.memory_space<vmem>>, vector<1x256xf32>
    %4 = vector.broadcast %3 : vector<1x256xf32> to vector<16x256xf32>
    %5 = arith.addf %2, %4 : vector<16x256xf32>
    %c0_5 = arith.constant 0 : index
    %c0_6 = arith.constant 0 : index
    %6 = vector.load %arg11[%c0_5, %c0_6] : memref<16x256xf32, #tpu.memory_space<vmem>>, vector<16x256xf32>
    tpu.vector_store %arg11[%c0_5, %c0_6], %5 {strides = array<i32>} : memref<16x256xf32, #tpu.memory_space<vmem>>, vector<16x256xf32>,
    %c0_7 = arith.constant 0 : index
    %c0_8 = arith.constant 0 : index
    %7 = vector.load %arg2[%c0_7, %c0_8] : memref<64x256xbf16, #tpu.memory_space<vmem>>, vector<64x256xbf16>
    %cst_9 = arith.constant 0.000000e+00 : f32
    %8 = vector.broadcast %cst_9 : f32 to vector<2x64xf32>
    %cst_10 = arith.constant 0.000000e+00 : f32
    %9 = vector.broadcast %cst_10 : f32 to vector<2x32xf32>
    %cst_11 = arith.constant 0.000000e+00 : f32
    %10 = vector.broadcast %cst_11 : f32 to vector<2x32xf32>
    %c0_12 = arith.constant 0 : index
    %c0_13 = arith.constant 0 : index
    %11 = vector.load %arg11[%c0_12, %c0_13] : memref<16x256xf32, #tpu.memory_space<vmem>>, vector<2x128xf32>
    %c14 = arith.constant 14 : index
    %c128 = arith.constant 128 : index
    %12 = vector.load %arg11[%c14, %c128] : memref<16x256xf32, #tpu.memory_space<vmem>>, vector<2x128xf32>
    %13 = tpu.concatenate %11, %12 in 1 : vector<2x128xf32>, vector<2x128xf32> -> vector<2x256xf32>
    %14 = arith.truncf %8 : vector<2x64xf32> to vector<2x64xbf16>
    %cst_14 = arith.constant dense<0.000000e+00> : vector<2x256xf32>
    %15 = tpu.matmul %14, %7, %cst_14 {dimension_numbers = #tpu.dot_dimension_numbers<[1], [0], [0], [1], [0, 0, 1, 1], [], []>} : vector<2x64xbf16>, vector<64x256xbf16>, vector<2x256xf32> -> vector<2x256xf32>
    %16 = arith.addf %13, %15 : vector<2x256xf32>
    %17 = arith.negf %16 : vector<2x256xf32>
    %18 = math.exp %17 : vector<2x256xf32>
    %cst_15 = arith.constant 1.000000e+00 : f32
    %19 = vector.broadcast %cst_15 : f32 to vector<2x256xf32>
    %20 = arith.addf %19, %18 : vector<2x256xf32>
    %21 = arith.divf %19, %20 : vector<2x256xf32>
    %22 = math.tanh %16 : vector<2x256xf32>
    %23 = vector.extract_strided_slice %21 {offsets = [0, 0], sizes = [2, 32], strides = [1, 1]} : vector<2x256xf32> to vector<2x32xf32>
    %24 = vector.extract_strided_slice %21 {offsets = [0, 32], sizes = [2, 32], strides = [1, 1]} : vector<2x256xf32> to vector<2x32xf32>
    %25 = vector.extract_strided_slice %22 {offsets = [0, 64], sizes = [2, 32], strides = [1, 1]} : vector<2x256xf32> to vector<2x32xf32>
    %26 = vector.extract_strided_slice %21 {offsets = [0, 96], sizes = [2, 32], strides = [1, 1]} : vector<2x256xf32> to vector<2x32xf32>
    %27 = vector.extract_strided_slice %21 {offsets = [0, 128], sizes = [2, 32], strides = [1, 1]} : vector<2x256xf32> to vector<2x32xf32>
    %28 = vector.extract_strided_slice %21 {offsets = [0, 160], sizes = [2, 32], strides = [1, 1]} : vector<2x256xf32> to vector<2x32xf32>
    %29 = vector.extract_strided_slice %22 {offsets = [0, 192], sizes = [2, 32], strides = [1, 1]} : vector<2x256xf32> to vector<2x32xf32>
    %30 = vector.extract_strided_slice %21 {offsets = [0, 224], sizes = [2, 32], strides = [1, 1]} : vector<2x256xf32> to vector<2x32xf32>
    %31 = arith.mulf %24, %9 : vector<2x32xf32>
    %32 = arith.mulf %23, %25 : vector<2x32xf32>
    %33 = arith.addf %31, %32 : vector<2x32xf32>
    %34 = arith.mulf %28, %10 : vector<2x32xf32>
    %35 = arith.mulf %27, %29 : vector<2x32xf32>
    %36 = arith.addf %34, %35 : vector<2x32xf32>
    %37 = math.tanh %33 : vector<2x32xf32>
    %38 = arith.mulf %26, %37 : vector<2x32xf32>
    %39 = math.tanh %36 : vector<2x32xf32>
    %40 = arith.mulf %30, %39 : vector<2x32xf32>
    %41 = arith.truncf %38 : vector<2x32xf32> to vector<2x32xbf16>
    %c0_16 = arith.constant 0 : index
    %c0_17 = arith.constant 0 : index
    %42 = vector.load %arg10[%c0_16, %c0_17] : memref<16x64xbf16, #tpu.memory_space<vmem>>, vector<2x32xbf16>
    tpu.vector_store %arg10[%c0_16, %c0_17], %41 {strides = array<i32>} : memref<16x64xbf16, #tpu.memory_space<vmem>>, vector<2x32xbf16>,
    %43 = arith.truncf %40 : vector<2x32xf32> to vector<2x32xbf16>
    %c14_18 = arith.constant 14 : index
    %c32 = arith.constant 32 : index
    %44 = vector.load %arg10[%c14_18, %c32] : memref<16x64xbf16, #tpu.memory_space<vmem>>, vector<2x32xbf16>
    tpu.vector_store %arg10[%c14_18, %c32], %43 {strides = array<i32>} : memref<16x64xbf16, #tpu.memory_space<vmem>>, vector<2x32xbf16>,
    %45 = tpu.concatenate %38, %40 in 1 : vector<2x32xf32>, vector<2x32xf32> -> vector<2x64xf32>
    %c2 = arith.constant 2 : index
    %c0_19 = arith.constant 0 : index
    %46 = vector.load %arg11[%c2, %c0_19] : memref<16x256xf32, #tpu.memory_space<vmem>>, vector<2x128xf32>
    %c12 = arith.constant 12 : index
    %c128_20 = arith.constant 128 : index
    %47 = vector.load %arg11[%c12, %c128_20] : memref<16x256xf32, #tpu.memory_space<vmem>>, vector<2x128xf32>
    %48 = tpu.concatenate %46, %47 in 1 : vector<2x128xf32>, vector<2x128xf32> -> vector<2x256xf32>
    %49 = arith.truncf %45 : vector<2x64xf32> to vector<2x64xbf16>
    %cst_21 = arith.constant dense<0.000000e+00> : vector<2x256xf32>
    %50 = tpu.matmul %49, %7, %cst_21 {dimension_numbers = #tpu.dot_dimension_numbers<[1], [0], [0], [1], [0, 0, 1, 1], [], []>} : vector<2x64xbf16>, vector<64x256xbf16>, vector<2x256xf32> -> vector<2x256xf32>
    %51 = arith.addf %48, %50 : vector<2x256xf32>
    %52 = arith.negf %51 : vector<2x256xf32>
    %53 = math.exp %52 : vector<2x256xf32>
    %cst_22 = arith.constant 1.000000e+00 : f32
    %54 = vector.broadcast %cst_22 : f32 to vector<2x256xf32>
    %55 = arith.addf %54, %53 : vector<2x256xf32>
    %56 = arith.divf %54, %55 : vector<2x256xf32>
    %57 = math.tanh %51 : vector<2x256xf32>
    %58 = vector.extract_strided_slice %56 {offsets = [0, 0], sizes = [2, 32], strides = [1, 1]} : vector<2x256xf32> to vector<2x32xf32>
    %59 = vector.extract_strided_slice %56 {offsets = [0, 32], sizes = [2, 32], strides = [1, 1]} : vector<2x256xf32> to vector<2x32xf32>
    %60 = vector.extract_strided_slice %57 {offsets = [0, 64], sizes = [2, 32], strides = [1, 1]} : vector<2x256xf32> to vector<2x32xf32>
    %61 = vector.extract_strided_slice %56 {offsets = [0, 96], sizes = [2, 32], strides = [1, 1]} : vector<2x256xf32> to vector<2x32xf32>
    %62 = vector.extract_strided_slice %56 {offsets = [0, 128], sizes = [2, 32], strides = [1, 1]} : vector<2x256xf32> to vector<2x32xf32>
    %63 = vector.extract_strided_slice %56 {offsets = [0, 160], sizes = [2, 32], strides = [1, 1]} : vector<2x256xf32> to vector<2x32xf32>
    %64 = vector.extract_strided_slice %57 {offsets = [0, 192], sizes = [2, 32], strides = [1, 1]} : vector<2x256xf32> to vector<2x32xf32>
    %65 = vector.extract_strided_slice %56 {offsets = [0, 224], sizes = [2, 32], strides = [1, 1]} : vector<2x256xf32> to vector<2x32xf32>
    %66 = arith.mulf %59, %33 : vector<2x32xf32>
    %67 = arith.mulf %58, %60 : vector<2x32xf32>
    %68 = arith.addf %66, %67 : vector<2x32xf32>
    %69 = arith.mulf %63, %36 : vector<2x32xf32>
    %70 = arith.mulf %62, %64 : vector<2x32xf32>
    %71 = arith.addf %69, %70 : vector<2x32xf32>
    %72 = math.tanh %68 : vector<2x32xf32>
    %73 = arith.mulf %61, %72 : vector<2x32xf32>
    %74 = math.tanh %71 : vector<2x32xf32>
    %75 = arith.mulf %65, %74 : vector<2x32xf32>
    %76 = arith.truncf %73 : vector<2x32xf32> to vector<2x32xbf16>
    %c2_23 = arith.constant 2 : index
    %c0_24 = arith.constant 0 : index
    %77 = vector.load %arg10[%c2_23, %c0_24] : memref<16x64xbf16, #tpu.memory_space<vmem>>, vector<2x32xbf16>
    tpu.vector_store %arg10[%c2_23, %c0_24], %76 {strides = array<i32>} : memref<16x64xbf16, #tpu.memory_space<vmem>>, vector<2x32xbf16>,
    %78 = arith.truncf %75 : vector<2x32xf32> to vector<2x32xbf16>
    %c12_25 = arith.constant 12 : index
    %c32_26 = arith.constant 32 : index
    %79 = vector.load %arg10[%c12_25, %c32_26] : memref<16x64xbf16, #tpu.memory_space<vmem>>, vector<2x32xbf16>
    tpu.vector_store %arg10[%c12_25, %c32_26], %78 {strides = array<i32>} : memref<16x64xbf16, #tpu.memory_space<vmem>>, vector<2x32xbf16>,
    %80 = tpu.concatenate %73, %75 in 1 : vector<2x32xf32>, vector<2x32xf32> -> vector<2x64xf32>
    %c4 = arith.constant 4 : index
    %c0_27 = arith.constant 0 : index
    %81 = vector.load %arg11[%c4, %c0_27] : memref<16x256xf32, #tpu.memory_space<vmem>>, vector<2x128xf32>
    %c10 = arith.constant 10 : index
    %c128_28 = arith.constant 128 : index
    %82 = vector.load %arg11[%c10, %c128_28] : memref<16x256xf32, #tpu.memory_space<vmem>>, vector<2x128xf32>
    %83 = tpu.concatenate %81, %82 in 1 : vector<2x128xf32>, vector<2x128xf32> -> vector<2x256xf32>
    %84 = arith.truncf %80 : vector<2x64xf32> to vector<2x64xbf16>
    %cst_29 = arith.constant dense<0.000000e+00> : vector<2x256xf32>
    %85 = tpu.matmul %84, %7, %cst_29 {dimension_numbers = #tpu.dot_dimension_numbers<[1], [0], [0], [1], [0, 0, 1, 1], [], []>} : vector<2x64xbf16>, vector<64x256xbf16>, vector<2x256xf32> -> vector<2x256xf32>
    %86 = arith.addf %83, %85 : vector<2x256xf32>
    %87 = arith.negf %86 : vector<2x256xf32>
    %88 = math.exp %87 : vector<2x256xf32>
    %cst_30 = arith.constant 1.000000e+00 : f32
    %89 = vector.broadcast %cst_30 : f32 to vector<2x256xf32>
    %90 = arith.addf %89, %88 : vector<2x256xf32>
    %91 = arith.divf %89, %90 : vector<2x256xf32>
    %92 = math.tanh %86 : vector<2x256xf32>
    %93 = vector.extract_strided_slice %91 {offsets = [0, 0], sizes = [2, 32], strides = [1, 1]} : vector<2x256xf32> to vector<2x32xf32>
    %94 = vector.extract_strided_slice %91 {offsets = [0, 32], sizes = [2, 32], strides = [1, 1]} : vector<2x256xf32> to vector<2x32xf32>
    %95 = vector.extract_strided_slice %92 {offsets = [0, 64], sizes = [2, 32], strides = [1, 1]} : vector<2x256xf32> to vector<2x32xf32>
    %96 = vector.extract_strided_slice %91 {offsets = [0, 96], sizes = [2, 32], strides = [1, 1]} : vector<2x256xf32> to vector<2x32xf32>
    %97 = vector.extract_strided_slice %91 {offsets = [0, 128], sizes = [2, 32], strides = [1, 1]} : vector<2x256xf32> to vector<2x32xf32>
    %98 = vector.extract_strided_slice %91 {offsets = [0, 160], sizes = [2, 32], strides = [1, 1]} : vector<2x256xf32> to vector<2x32xf32>
    %99 = vector.extract_strided_slice %92 {offsets = [0, 192], sizes = [2, 32], strides = [1, 1]} : vector<2x256xf32> to vector<2x32xf32>
    %100 = vector.extract_strided_slice %91 {offsets = [0, 224], sizes = [2, 32], strides = [1, 1]} : vector<2x256xf32> to vector<2x32xf32>
    %101 = arith.mulf %94, %68 : vector<2x32xf32>
    %102 = arith.mulf %93, %95 : vector<2x32xf32>
    %103 = arith.addf %101, %102 : vector<2x32xf32>
    %104 = arith.mulf %98, %71 : vector<2x32xf32>
    %105 = arith.mulf %97, %99 : vector<2x32xf32>
    %106 = arith.addf %104, %105 : vector<2x32xf32>
    %107 = math.tanh %103 : vector<2x32xf32>
    %108 = arith.mulf %96, %107 : vector<2x32xf32>
    %109 = math.tanh %106 : vector<2x32xf32>
    %110 = arith.mulf %100, %109 : vector<2x32xf32>
    %111 = arith.truncf %108 : vector<2x32xf32> to vector<2x32xbf16>
    %c4_31 = arith.constant 4 : index
    %c0_32 = arith.constant 0 : index
    %112 = vector.load %arg10[%c4_31, %c0_32] : memref<16x64xbf16, #tpu.memory_space<vmem>>, vector<2x32xbf16>
    tpu.vector_store %arg10[%c4_31, %c0_32], %111 {strides = array<i32>} : memref<16x64xbf16, #tpu.memory_space<vmem>>, vector<2x32xbf16>,
    %113 = arith.truncf %110 : vector<2x32xf32> to vector<2x32xbf16>
    %c10_33 = arith.constant 10 : index
    %c32_34 = arith.constant 32 : index
    %114 = vector.load %arg10[%c10_33, %c32_34] : memref<16x64xbf16, #tpu.memory_space<vmem>>, vector<2x32xbf16>
    tpu.vector_store %arg10[%c10_33, %c32_34], %113 {strides = array<i32>} : memref<16x64xbf16, #tpu.memory_space<vmem>>, vector<2x32xbf16>,
    %115 = tpu.concatenate %108, %110 in 1 : vector<2x32xf32>, vector<2x32xf32> -> vector<2x64xf32>
    %c6 = arith.constant 6 : index
    %c0_35 = arith.constant 0 : index
    %116 = vector.load %arg11[%c6, %c0_35] : memref<16x256xf32, #tpu.memory_space<vmem>>, vector<2x128xf32>
    %c8 = arith.constant 8 : index
    %c128_36 = arith.constant 128 : index
    %117 = vector.load %arg11[%c8, %c128_36] : memref<16x256xf32, #tpu.memory_space<vmem>>, vector<2x128xf32>
    %118 = tpu.concatenate %116, %117 in 1 : vector<2x128xf32>, vector<2x128xf32> -> vector<2x256xf32>
    %119 = arith.truncf %115 : vector<2x64xf32> to vector<2x64xbf16>
    %cst_37 = arith.constant dense<0.000000e+00> : vector<2x256xf32>
    %120 = tpu.matmul %119, %7, %cst_37 {dimension_numbers = #tpu.dot_dimension_numbers<[1], [0], [0], [1], [0, 0, 1, 1], [], []>} : vector<2x64xbf16>, vector<64x256xbf16>, vector<2x256xf32> -> vector<2x256xf32>
    %121 = arith.addf %118, %120 : vector<2x256xf32>
    %122 = arith.negf %121 : vector<2x256xf32>
    %123 = math.exp %122 : vector<2x256xf32>
    %cst_38 = arith.constant 1.000000e+00 : f32
    %124 = vector.broadcast %cst_38 : f32 to vector<2x256xf32>
    %125 = arith.addf %124, %123 : vector<2x256xf32>
    %126 = arith.divf %124, %125 : vector<2x256xf32>
    %127 = math.tanh %121 : vector<2x256xf32>
    %128 = vector.extract_strided_slice %126 {offsets = [0, 0], sizes = [2, 32], strides = [1, 1]} : vector<2x256xf32> to vector<2x32xf32>
    %129 = vector.extract_strided_slice %126 {offsets = [0, 32], sizes = [2, 32], strides = [1, 1]} : vector<2x256xf32> to vector<2x32xf32>
    %130 = vector.extract_strided_slice %127 {offsets = [0, 64], sizes = [2, 32], strides = [1, 1]} : vector<2x256xf32> to vector<2x32xf32>
    %131 = vector.extract_strided_slice %126 {offsets = [0, 96], sizes = [2, 32], strides = [1, 1]} : vector<2x256xf32> to vector<2x32xf32>
    %132 = vector.extract_strided_slice %126 {offsets = [0, 128], sizes = [2, 32], strides = [1, 1]} : vector<2x256xf32> to vector<2x32xf32>
    %133 = vector.extract_strided_slice %126 {offsets = [0, 160], sizes = [2, 32], strides = [1, 1]} : vector<2x256xf32> to vector<2x32xf32>
    %134 = vector.extract_strided_slice %127 {offsets = [0, 192], sizes = [2, 32], strides = [1, 1]} : vector<2x256xf32> to vector<2x32xf32>
    %135 = vector.extract_strided_slice %126 {offsets = [0, 224], sizes = [2, 32], strides = [1, 1]} : vector<2x256xf32> to vector<2x32xf32>
    %136 = arith.mulf %129, %103 : vector<2x32xf32>
    %137 = arith.mulf %128, %130 : vector<2x32xf32>
    %138 = arith.addf %136, %137 : vector<2x32xf32>
    %139 = arith.mulf %133, %106 : vector<2x32xf32>
    %140 = arith.mulf %132, %134 : vector<2x32xf32>
    %141 = arith.addf %139, %140 : vector<2x32xf32>
    %142 = math.tanh %138 : vector<2x32xf32>
    %143 = arith.mulf %131, %142 : vector<2x32xf32>
    %144 = math.tanh %141 : vector<2x32xf32>
    %145 = arith.mulf %135, %144 : vector<2x32xf32>
    %146 = arith.truncf %143 : vector<2x32xf32> to vector<2x32xbf16>
    %c6_39 = arith.constant 6 : index
    %c0_40 = arith.constant 0 : index
    %147 = vector.load %arg10[%c6_39, %c0_40] : memref<16x64xbf16, #tpu.memory_space<vmem>>, vector<2x32xbf16>
    tpu.vector_store %arg10[%c6_39, %c0_40], %146 {strides = array<i32>} : memref<16x64xbf16, #tpu.memory_space<vmem>>, vector<2x32xbf16>,
    %148 = arith.truncf %145 : vector<2x32xf32> to vector<2x32xbf16>
    %c8_41 = arith.constant 8 : index
    %c32_42 = arith.constant 32 : index
    %149 = vector.load %arg10[%c8_41, %c32_42] : memref<16x64xbf16, #tpu.memory_space<vmem>>, vector<2x32xbf16>
    tpu.vector_store %arg10[%c8_41, %c32_42], %148 {strides = array<i32>} : memref<16x64xbf16, #tpu.memory_space<vmem>>, vector<2x32xbf16>,
    %150 = tpu.concatenate %143, %145 in 1 : vector<2x32xf32>, vector<2x32xf32> -> vector<2x64xf32>
    %c8_43 = arith.constant 8 : index
    %c0_44 = arith.constant 0 : index
    %151 = vector.load %arg11[%c8_43, %c0_44] : memref<16x256xf32, #tpu.memory_space<vmem>>, vector<2x128xf32>
    %c6_45 = arith.constant 6 : index
    %c128_46 = arith.constant 128 : index
    %152 = vector.load %arg11[%c6_45, %c128_46] : memref<16x256xf32, #tpu.memory_space<vmem>>, vector<2x128xf32>
    %153 = tpu.concatenate %151, %152 in 1 : vector<2x128xf32>, vector<2x128xf32> -> vector<2x256xf32>
    %154 = arith.truncf %150 : vector<2x64xf32> to vector<2x64xbf16>
    %cst_47 = arith.constant dense<0.000000e+00> : vector<2x256xf32>
    %155 = tpu.matmul %154, %7, %cst_47 {dimension_numbers = #tpu.dot_dimension_numbers<[1], [0], [0], [1], [0, 0, 1, 1], [], []>} : vector<2x64xbf16>, vector<64x256xbf16>, vector<2x256xf32> -> vector<2x256xf32>
    %156 = arith.addf %153, %155 : vector<2x256xf32>
    %157 = arith.negf %156 : vector<2x256xf32>
    %158 = math.exp %157 : vector<2x256xf32>
    %cst_48 = arith.constant 1.000000e+00 : f32
    %159 = vector.broadcast %cst_48 : f32 to vector<2x256xf32>
    %160 = arith.addf %159, %158 : vector<2x256xf32>
    %161 = arith.divf %159, %160 : vector<2x256xf32>
    %162 = math.tanh %156 : vector<2x256xf32>
    %163 = vector.extract_strided_slice %161 {offsets = [0, 0], sizes = [2, 32], strides = [1, 1]} : vector<2x256xf32> to vector<2x32xf32>
    %164 = vector.extract_strided_slice %161 {offsets = [0, 32], sizes = [2, 32], strides = [1, 1]} : vector<2x256xf32> to vector<2x32xf32>
    %165 = vector.extract_strided_slice %162 {offsets = [0, 64], sizes = [2, 32], strides = [1, 1]} : vector<2x256xf32> to vector<2x32xf32>
    %166 = vector.extract_strided_slice %161 {offsets = [0, 96], sizes = [2, 32], strides = [1, 1]} : vector<2x256xf32> to vector<2x32xf32>
    %167 = vector.extract_strided_slice %161 {offsets = [0, 128], sizes = [2, 32], strides = [1, 1]} : vector<2x256xf32> to vector<2x32xf32>
    %168 = vector.extract_strided_slice %161 {offsets = [0, 160], sizes = [2, 32], strides = [1, 1]} : vector<2x256xf32> to vector<2x32xf32>
    %169 = vector.extract_strided_slice %162 {offsets = [0, 192], sizes = [2, 32], strides = [1, 1]} : vector<2x256xf32> to vector<2x32xf32>
    %170 = vector.extract_strided_slice %161 {offsets = [0, 224], sizes = [2, 32], strides = [1, 1]} : vector<2x256xf32> to vector<2x32xf32>
    %171 = arith.mulf %164, %138 : vector<2x32xf32>
    %172 = arith.mulf %163, %165 : vector<2x32xf32>
    %173 = arith.addf %171, %172 : vector<2x32xf32>
    %174 = arith.mulf %168, %141 : vector<2x32xf32>
    %175 = arith.mulf %167, %169 : vector<2x32xf32>
    %176 = arith.addf %174, %175 : vector<2x32xf32>
    %177 = math.tanh %173 : vector<2x32xf32>
    %178 = arith.mulf %166, %177 : vector<2x32xf32>
    %179 = math.tanh %176 : vector<2x32xf32>
    %180 = arith.mulf %170, %179 : vector<2x32xf32>
    %181 = arith.truncf %178 : vector<2x32xf32> to vector<2x32xbf16>
    %c8_49 = arith.constant 8 : index
    %c0_50 = arith.constant 0 : index
    %182 = vector.load %arg10[%c8_49, %c0_50] : memref<16x64xbf16, #tpu.memory_space<vmem>>, vector<2x32xbf16>
    tpu.vector_store %arg10[%c8_49, %c0_50], %181 {strides = array<i32>} : memref<16x64xbf16, #tpu.memory_space<vmem>>, vector<2x32xbf16>,
    %183 = arith.truncf %180 : vector<2x32xf32> to vector<2x32xbf16>
    %c6_51 = arith.constant 6 : index
    %c32_52 = arith.constant 32 : index
    %184 = vector.load %arg10[%c6_51, %c32_52] : memref<16x64xbf16, #tpu.memory_space<vmem>>, vector<2x32xbf16>
    tpu.vector_store %arg10[%c6_51, %c32_52], %183 {strides = array<i32>} : memref<16x64xbf16, #tpu.memory_space<vmem>>, vector<2x32xbf16>,
    %185 = tpu.concatenate %178, %180 in 1 : vector<2x32xf32>, vector<2x32xf32> -> vector<2x64xf32>
    %c10_53 = arith.constant 10 : index
    %c0_54 = arith.constant 0 : index
    %186 = vector.load %arg11[%c10_53, %c0_54] : memref<16x256xf32, #tpu.memory_space<vmem>>, vector<2x128xf32>
    %c4_55 = arith.constant 4 : index
    %c128_56 = arith.constant 128 : index
    %187 = vector.load %arg11[%c4_55, %c128_56] : memref<16x256xf32, #tpu.memory_space<vmem>>, vector<2x128xf32>
    %188 = tpu.concatenate %186, %187 in 1 : vector<2x128xf32>, vector<2x128xf32> -> vector<2x256xf32>
    %189 = arith.truncf %185 : vector<2x64xf32> to vector<2x64xbf16>
    %cst_57 = arith.constant dense<0.000000e+00> : vector<2x256xf32>
    %190 = tpu.matmul %189, %7, %cst_57 {dimension_numbers = #tpu.dot_dimension_numbers<[1], [0], [0], [1], [0, 0, 1, 1], [], []>} : vector<2x64xbf16>, vector<64x256xbf16>, vector<2x256xf32> -> vector<2x256xf32>
    %191 = arith.addf %188, %190 : vector<2x256xf32>
    %192 = arith.negf %191 : vector<2x256xf32>
    %193 = math.exp %192 : vector<2x256xf32>
    %cst_58 = arith.constant 1.000000e+00 : f32
    %194 = vector.broadcast %cst_58 : f32 to vector<2x256xf32>
    %195 = arith.addf %194, %193 : vector<2x256xf32>
    %196 = arith.divf %194, %195 : vector<2x256xf32>
    %197 = math.tanh %191 : vector<2x256xf32>
    %198 = vector.extract_strided_slice %196 {offsets = [0, 0], sizes = [2, 32], strides = [1, 1]} : vector<2x256xf32> to vector<2x32xf32>
    %199 = vector.extract_strided_slice %196 {offsets = [0, 32], sizes = [2, 32], strides = [1, 1]} : vector<2x256xf32> to vector<2x32xf32>
    %200 = vector.extract_strided_slice %197 {offsets = [0, 64], sizes = [2, 32], strides = [1, 1]} : vector<2x256xf32> to vector<2x32xf32>
    %201 = vector.extract_strided_slice %196 {offsets = [0, 96], sizes = [2, 32], strides = [1, 1]} : vector<2x256xf32> to vector<2x32xf32>
    %202 = vector.extract_strided_slice %196 {offsets = [0, 128], sizes = [2, 32], strides = [1, 1]} : vector<2x256xf32> to vector<2x32xf32>
    %203 = vector.extract_strided_slice %196 {offsets = [0, 160], sizes = [2, 32], strides = [1, 1]} : vector<2x256xf32> to vector<2x32xf32>
    %204 = vector.extract_strided_slice %197 {offsets = [0, 192], sizes = [2, 32], strides = [1, 1]} : vector<2x256xf32> to vector<2x32xf32>
    %205 = vector.extract_strided_slice %196 {offsets = [0, 224], sizes = [2, 32], strides = [1, 1]} : vector<2x256xf32> to vector<2x32xf32>
    %206 = arith.mulf %199, %173 : vector<2x32xf32>
    %207 = arith.mulf %198, %200 : vector<2x32xf32>
    %208 = arith.addf %206, %207 : vector<2x32xf32>
    %209 = arith.mulf %203, %176 : vector<2x32xf32>
    %210 = arith.mulf %202, %204 : vector<2x32xf32>
    %211 = arith.addf %209, %210 : vector<2x32xf32>
    %212 = math.tanh %208 : vector<2x32xf32>
    %213 = arith.mulf %201, %212 : vector<2x32xf32>
    %214 = math.tanh %211 : vector<2x32xf32>
    %215 = arith.mulf %205, %214 : vector<2x32xf32>
    %216 = arith.truncf %213 : vector<2x32xf32> to vector<2x32xbf16>
    %c10_59 = arith.constant 10 : index
    %c0_60 = arith.constant 0 : index
    %217 = vector.load %arg10[%c10_59, %c0_60] : memref<16x64xbf16, #tpu.memory_space<vmem>>, vector<2x32xbf16>
    tpu.vector_store %arg10[%c10_59, %c0_60], %216 {strides = array<i32>} : memref<16x64xbf16, #tpu.memory_space<vmem>>, vector<2x32xbf16>,
    %218 = arith.truncf %215 : vector<2x32xf32> to vector<2x32xbf16>
    %c4_61 = arith.constant 4 : index
    %c32_62 = arith.constant 32 : index
    %219 = vector.load %arg10[%c4_61, %c32_62] : memref<16x64xbf16, #tpu.memory_space<vmem>>, vector<2x32xbf16>
    tpu.vector_store %arg10[%c4_61, %c32_62], %218 {strides = array<i32>} : memref<16x64xbf16, #tpu.memory_space<vmem>>, vector<2x32xbf16>,
    %220 = tpu.concatenate %213, %215 in 1 : vector<2x32xf32>, vector<2x32xf32> -> vector<2x64xf32>
    %c12_63 = arith.constant 12 : index
    %c0_64 = arith.constant 0 : index
    %221 = vector.load %arg11[%c12_63, %c0_64] : memref<16x256xf32, #tpu.memory_space<vmem>>, vector<2x128xf32>
    %c2_65 = arith.constant 2 : index
    %c128_66 = arith.constant 128 : index
    %222 = vector.load %arg11[%c2_65, %c128_66] : memref<16x256xf32, #tpu.memory_space<vmem>>, vector<2x128xf32>
    %223 = tpu.concatenate %221, %222 in 1 : vector<2x128xf32>, vector<2x128xf32> -> vector<2x256xf32>
    %224 = arith.truncf %220 : vector<2x64xf32> to vector<2x64xbf16>
    %cst_67 = arith.constant dense<0.000000e+00> : vector<2x256xf32>
    %225 = tpu.matmul %224, %7, %cst_67 {dimension_numbers = #tpu.dot_dimension_numbers<[1], [0], [0], [1], [0, 0, 1, 1], [], []>} : vector<2x64xbf16>, vector<64x256xbf16>, vector<2x256xf32> -> vector<2x256xf32>
    %226 = arith.addf %223, %225 : vector<2x256xf32>
    %227 = arith.negf %226 : vector<2x256xf32>
    %228 = math.exp %227 : vector<2x256xf32>
    %cst_68 = arith.constant 1.000000e+00 : f32
    %229 = vector.broadcast %cst_68 : f32 to vector<2x256xf32>
    %230 = arith.addf %229, %228 : vector<2x256xf32>
    %231 = arith.divf %229, %230 : vector<2x256xf32>
    %232 = math.tanh %226 : vector<2x256xf32>
    %233 = vector.extract_strided_slice %231 {offsets = [0, 0], sizes = [2, 32], strides = [1, 1]} : vector<2x256xf32> to vector<2x32xf32>
    %234 = vector.extract_strided_slice %231 {offsets = [0, 32], sizes = [2, 32], strides = [1, 1]} : vector<2x256xf32> to vector<2x32xf32>
    %235 = vector.extract_strided_slice %232 {offsets = [0, 64], sizes = [2, 32], strides = [1, 1]} : vector<2x256xf32> to vector<2x32xf32>
    %236 = vector.extract_strided_slice %231 {offsets = [0, 96], sizes = [2, 32], strides = [1, 1]} : vector<2x256xf32> to vector<2x32xf32>
    %237 = vector.extract_strided_slice %231 {offsets = [0, 128], sizes = [2, 32], strides = [1, 1]} : vector<2x256xf32> to vector<2x32xf32>
    %238 = vector.extract_strided_slice %231 {offsets = [0, 160], sizes = [2, 32], strides = [1, 1]} : vector<2x256xf32> to vector<2x32xf32>
    %239 = vector.extract_strided_slice %232 {offsets = [0, 192], sizes = [2, 32], strides = [1, 1]} : vector<2x256xf32> to vector<2x32xf32>
    %240 = vector.extract_strided_slice %231 {offsets = [0, 224], sizes = [2, 32], strides = [1, 1]} : vector<2x256xf32> to vector<2x32xf32>
    %241 = arith.mulf %234, %208 : vector<2x32xf32>
    %242 = arith.mulf %233, %235 : vector<2x32xf32>
    %243 = arith.addf %241, %242 : vector<2x32xf32>
    %244 = arith.mulf %238, %211 : vector<2x32xf32>
    %245 = arith.mulf %237, %239 : vector<2x32xf32>
    %246 = arith.addf %244, %245 : vector<2x32xf32>
    %247 = math.tanh %243 : vector<2x32xf32>
    %248 = arith.mulf %236, %247 : vector<2x32xf32>
    %249 = math.tanh %246 : vector<2x32xf32>
    %250 = arith.mulf %240, %249 : vector<2x32xf32>
    %251 = arith.truncf %248 : vector<2x32xf32> to vector<2x32xbf16>
    %c12_69 = arith.constant 12 : index
    %c0_70 = arith.constant 0 : index
    %252 = vector.load %arg10[%c12_69, %c0_70] : memref<16x64xbf16, #tpu.memory_space<vmem>>, vector<2x32xbf16>
    tpu.vector_store %arg10[%c12_69, %c0_70], %251 {strides = array<i32>} : memref<16x64xbf16, #tpu.memory_space<vmem>>, vector<2x32xbf16>,
    %253 = arith.truncf %250 : vector<2x32xf32> to vector<2x32xbf16>
    %c2_71 = arith.constant 2 : index
    %c32_72 = arith.constant 32 : index
    %254 = vector.load %arg10[%c2_71, %c32_72] : memref<16x64xbf16, #tpu.memory_space<vmem>>, vector<2x32xbf16>
    tpu.vector_store %arg10[%c2_71, %c32_72], %253 {strides = array<i32>} : memref<16x64xbf16, #tpu.memory_space<vmem>>, vector<2x32xbf16>,
    %255 = tpu.concatenate %248, %250 in 1 : vector<2x32xf32>, vector<2x32xf32> -> vector<2x64xf32>
    %c14_73 = arith.constant 14 : index
    %c0_74 = arith.constant 0 : index
    %256 = vector.load %arg11[%c14_73, %c0_74] : memref<16x256xf32, #tpu.memory_space<vmem>>, vector<2x128xf32>
    %c0_75 = arith.constant 0 : index
    %c128_76 = arith.constant 128 : index
    %257 = vector.load %arg11[%c0_75, %c128_76] : memref<16x256xf32, #tpu.memory_space<vmem>>, vector<2x128xf32>
    %258 = tpu.concatenate %256, %257 in 1 : vector<2x128xf32>, vector<2x128xf32> -> vector<2x256xf32>
    %259 = arith.truncf %255 : vector<2x64xf32> to vector<2x64xbf16>
    %cst_77 = arith.constant dense<0.000000e+00> : vector<2x256xf32>
    %260 = tpu.matmul %259, %7, %cst_77 {dimension_numbers = #tpu.dot_dimension_numbers<[1], [0], [0], [1], [0, 0, 1, 1], [], []>} : vector<2x64xbf16>, vector<64x256xbf16>, vector<2x256xf32> -> vector<2x256xf32>
    %261 = arith.addf %258, %260 : vector<2x256xf32>
    %262 = arith.negf %261 : vector<2x256xf32>
    %263 = math.exp %262 : vector<2x256xf32>
    %cst_78 = arith.constant 1.000000e+00 : f32
    %264 = vector.broadcast %cst_78 : f32 to vector<2x256xf32>
    %265 = arith.addf %264, %263 : vector<2x256xf32>
    %266 = arith.divf %264, %265 : vector<2x256xf32>
    %267 = math.tanh %261 : vector<2x256xf32>
    %268 = vector.extract_strided_slice %266 {offsets = [0, 0], sizes = [2, 32], strides = [1, 1]} : vector<2x256xf32> to vector<2x32xf32>
    %269 = vector.extract_strided_slice %266 {offsets = [0, 32], sizes = [2, 32], strides = [1, 1]} : vector<2x256xf32> to vector<2x32xf32>
    %270 = vector.extract_strided_slice %267 {offsets = [0, 64], sizes = [2, 32], strides = [1, 1]} : vector<2x256xf32> to vector<2x32xf32>
    %271 = vector.extract_strided_slice %266 {offsets = [0, 96], sizes = [2, 32], strides = [1, 1]} : vector<2x256xf32> to vector<2x32xf32>
    %272 = vector.extract_strided_slice %266 {offsets = [0, 128], sizes = [2, 32], strides = [1, 1]} : vector<2x256xf32> to vector<2x32xf32>
    %273 = vector.extract_strided_slice %266 {offsets = [0, 160], sizes = [2, 32], strides = [1, 1]} : vector<2x256xf32> to vector<2x32xf32>
    %274 = vector.extract_strided_slice %267 {offsets = [0, 192], sizes = [2, 32], strides = [1, 1]} : vector<2x256xf32> to vector<2x32xf32>
    %275 = vector.extract_strided_slice %266 {offsets = [0, 224], sizes = [2, 32], strides = [1, 1]} : vector<2x256xf32> to vector<2x32xf32>
    %276 = arith.mulf %269, %243 : vector<2x32xf32>
    %277 = arith.mulf %268, %270 : vector<2x32xf32>
    %278 = arith.addf %276, %277 : vector<2x32xf32>
    %279 = arith.mulf %273, %246 : vector<2x32xf32>
    %280 = arith.mulf %272, %274 : vector<2x32xf32>
    %281 = arith.addf %279, %280 : vector<2x32xf32>
    %282 = math.tanh %278 : vector<2x32xf32>
    %283 = arith.mulf %271, %282 : vector<2x32xf32>
    %284 = math.tanh %281 : vector<2x32xf32>
    %285 = arith.mulf %275, %284 : vector<2x32xf32>
    %286 = arith.truncf %283 : vector<2x32xf32> to vector<2x32xbf16>
    %c14_79 = arith.constant 14 : index
    %c0_80 = arith.constant 0 : index
    %287 = vector.load %arg10[%c14_79, %c0_80] : memref<16x64xbf16, #tpu.memory_space<vmem>>, vector<2x32xbf16>
    tpu.vector_store %arg10[%c14_79, %c0_80], %286 {strides = array<i32>} : memref<16x64xbf16, #tpu.memory_space<vmem>>, vector<2x32xbf16>,
    %288 = arith.truncf %285 : vector<2x32xf32> to vector<2x32xbf16>
    %c0_81 = arith.constant 0 : index
    %c32_82 = arith.constant 32 : index
    %289 = vector.load %arg10[%c0_81, %c32_82] : memref<16x64xbf16, #tpu.memory_space<vmem>>, vector<2x32xbf16>
    tpu.vector_store %arg10[%c0_81, %c32_82], %288 {strides = array<i32>} : memref<16x64xbf16, #tpu.memory_space<vmem>>, vector<2x32xbf16>,
    %c0_83 = arith.constant 0 : index
    %c0_84 = arith.constant 0 : index
    %290 = vector.load %arg10[%c0_83, %c0_84] : memref<16x64xbf16, #tpu.memory_space<vmem>>, vector<16x64xbf16>
    %c0_85 = arith.constant 0 : index
    %c0_86 = arith.constant 0 : index
    %291 = vector.load %arg4[%c0_85, %c0_86] : memref<64x256xbf16, #tpu.memory_space<vmem>>, vector<64x256xbf16>
    %cst_87 = arith.constant dense<0.000000e+00> : vector<16x256xf32>
    %292 = tpu.matmul %290, %291, %cst_87 {dimension_numbers = #tpu.dot_dimension_numbers<[1], [0], [0], [1], [0, 0, 1, 1], [], []>} : vector<16x64xbf16>, vector<64x256xbf16>, vector<16x256xf32> -> vector<16x256xf32>
    %c0_88 = arith.constant 0 : index
    %c0_89 = arith.constant 0 : index
    %293 = vector.load %arg6[%c0_88, %c0_89] : memref<1x256xf32, #tpu.memory_space<vmem>>, vector<1x256xf32>
    %294 = vector.broadcast %293 : vector<1x256xf32> to vector<16x256xf32>
    %295 = arith.addf %292, %294 : vector<16x256xf32>
    %c0_90 = arith.constant 0 : index
    %c0_91 = arith.constant 0 : index
    %296 = vector.load %arg11[%c0_90, %c0_91] : memref<16x256xf32, #tpu.memory_space<vmem>>, vector<16x256xf32>
    tpu.vector_store %arg11[%c0_90, %c0_91], %295 {strides = array<i32>} : memref<16x256xf32, #tpu.memory_space<vmem>>, vector<16x256xf32>,
    %c0_92 = arith.constant 0 : index
    %c0_93 = arith.constant 0 : index
    %297 = vector.load %arg5[%c0_92, %c0_93] : memref<64x256xbf16, #tpu.memory_space<vmem>>, vector<64x256xbf16>
    %cst_94 = arith.constant 0.000000e+00 : f32
    %298 = vector.broadcast %cst_94 : f32 to vector<2x64xf32>
    %cst_95 = arith.constant 0.000000e+00 : f32
    %299 = vector.broadcast %cst_95 : f32 to vector<2x32xf32>
    %cst_96 = arith.constant 0.000000e+00 : f32
    %300 = vector.broadcast %cst_96 : f32 to vector<2x32xf32>
    %c0_97 = arith.constant 0 : index
    %c0_98 = arith.constant 0 : index
    %301 = vector.load %arg11[%c0_97, %c0_98] : memref<16x256xf32, #tpu.memory_space<vmem>>, vector<2x128xf32>
    %c14_99 = arith.constant 14 : index
    %c128_100 = arith.constant 128 : index
    %302 = vector.load %arg11[%c14_99, %c128_100] : memref<16x256xf32, #tpu.memory_space<vmem>>, vector<2x128xf32>
    %303 = tpu.concatenate %301, %302 in 1 : vector<2x128xf32>, vector<2x128xf32> -> vector<2x256xf32>
    %304 = arith.truncf %298 : vector<2x64xf32> to vector<2x64xbf16>
    %cst_101 = arith.constant dense<0.000000e+00> : vector<2x256xf32>
    %305 = tpu.matmul %304, %297, %cst_101 {dimension_numbers = #tpu.dot_dimension_numbers<[1], [0], [0], [1], [0, 0, 1, 1], [], []>} : vector<2x64xbf16>, vector<64x256xbf16>, vector<2x256xf32> -> vector<2x256xf32>
    %306 = arith.addf %303, %305 : vector<2x256xf32>
    %307 = arith.negf %306 : vector<2x256xf32>
    %308 = math.exp %307 : vector<2x256xf32>
    %cst_102 = arith.constant 1.000000e+00 : f32
    %309 = vector.broadcast %cst_102 : f32 to vector<2x256xf32>
    %310 = arith.addf %309, %308 : vector<2x256xf32>
    %311 = arith.divf %309, %310 : vector<2x256xf32>
    %312 = math.tanh %306 : vector<2x256xf32>
    %313 = vector.extract_strided_slice %311 {offsets = [0, 0], sizes = [2, 32], strides = [1, 1]} : vector<2x256xf32> to vector<2x32xf32>
    %314 = vector.extract_strided_slice %311 {offsets = [0, 32], sizes = [2, 32], strides = [1, 1]} : vector<2x256xf32> to vector<2x32xf32>
    %315 = vector.extract_strided_slice %312 {offsets = [0, 64], sizes = [2, 32], strides = [1, 1]} : vector<2x256xf32> to vector<2x32xf32>
    %316 = vector.extract_strided_slice %311 {offsets = [0, 96], sizes = [2, 32], strides = [1, 1]} : vector<2x256xf32> to vector<2x32xf32>
    %317 = vector.extract_strided_slice %311 {offsets = [0, 128], sizes = [2, 32], strides = [1, 1]} : vector<2x256xf32> to vector<2x32xf32>
    %318 = vector.extract_strided_slice %311 {offsets = [0, 160], sizes = [2, 32], strides = [1, 1]} : vector<2x256xf32> to vector<2x32xf32>
    %319 = vector.extract_strided_slice %312 {offsets = [0, 192], sizes = [2, 32], strides = [1, 1]} : vector<2x256xf32> to vector<2x32xf32>
    %320 = vector.extract_strided_slice %311 {offsets = [0, 224], sizes = [2, 32], strides = [1, 1]} : vector<2x256xf32> to vector<2x32xf32>
    %321 = arith.mulf %314, %299 : vector<2x32xf32>
    %322 = arith.mulf %313, %315 : vector<2x32xf32>
    %323 = arith.addf %321, %322 : vector<2x32xf32>
    %324 = arith.mulf %318, %300 : vector<2x32xf32>
    %325 = arith.mulf %317, %319 : vector<2x32xf32>
    %326 = arith.addf %324, %325 : vector<2x32xf32>
    %327 = math.tanh %323 : vector<2x32xf32>
    %328 = arith.mulf %316, %327 : vector<2x32xf32>
    %329 = math.tanh %326 : vector<2x32xf32>
    %330 = arith.mulf %320, %329 : vector<2x32xf32>
    %331 = tpu.concatenate %328, %330 in 1 : vector<2x32xf32>, vector<2x32xf32> -> vector<2x64xf32>
    %c2_103 = arith.constant 2 : index
    %c0_104 = arith.constant 0 : index
    %332 = vector.load %arg11[%c2_103, %c0_104] : memref<16x256xf32, #tpu.memory_space<vmem>>, vector<2x128xf32>
    %c12_105 = arith.constant 12 : index
    %c128_106 = arith.constant 128 : index
    %333 = vector.load %arg11[%c12_105, %c128_106] : memref<16x256xf32, #tpu.memory_space<vmem>>, vector<2x128xf32>
    %334 = tpu.concatenate %332, %333 in 1 : vector<2x128xf32>, vector<2x128xf32> -> vector<2x256xf32>
    %335 = arith.truncf %331 : vector<2x64xf32> to vector<2x64xbf16>
    %cst_107 = arith.constant dense<0.000000e+00> : vector<2x256xf32>
    %336 = tpu.matmul %335, %297, %cst_107 {dimension_numbers = #tpu.dot_dimension_numbers<[1], [0], [0], [1], [0, 0, 1, 1], [], []>} : vector<2x64xbf16>, vector<64x256xbf16>, vector<2x256xf32> -> vector<2x256xf32>
    %337 = arith.addf %334, %336 : vector<2x256xf32>
    %338 = arith.negf %337 : vector<2x256xf32>
    %339 = math.exp %338 : vector<2x256xf32>
    %cst_108 = arith.constant 1.000000e+00 : f32
    %340 = vector.broadcast %cst_108 : f32 to vector<2x256xf32>
    %341 = arith.addf %340, %339 : vector<2x256xf32>
    %342 = arith.divf %340, %341 : vector<2x256xf32>
    %343 = math.tanh %337 : vector<2x256xf32>
    %344 = vector.extract_strided_slice %342 {offsets = [0, 0], sizes = [2, 32], strides = [1, 1]} : vector<2x256xf32> to vector<2x32xf32>
    %345 = vector.extract_strided_slice %342 {offsets = [0, 32], sizes = [2, 32], strides = [1, 1]} : vector<2x256xf32> to vector<2x32xf32>
    %346 = vector.extract_strided_slice %343 {offsets = [0, 64], sizes = [2, 32], strides = [1, 1]} : vector<2x256xf32> to vector<2x32xf32>
    %347 = vector.extract_strided_slice %342 {offsets = [0, 96], sizes = [2, 32], strides = [1, 1]} : vector<2x256xf32> to vector<2x32xf32>
    %348 = vector.extract_strided_slice %342 {offsets = [0, 128], sizes = [2, 32], strides = [1, 1]} : vector<2x256xf32> to vector<2x32xf32>
    %349 = vector.extract_strided_slice %342 {offsets = [0, 160], sizes = [2, 32], strides = [1, 1]} : vector<2x256xf32> to vector<2x32xf32>
    %350 = vector.extract_strided_slice %343 {offsets = [0, 192], sizes = [2, 32], strides = [1, 1]} : vector<2x256xf32> to vector<2x32xf32>
    %351 = vector.extract_strided_slice %342 {offsets = [0, 224], sizes = [2, 32], strides = [1, 1]} : vector<2x256xf32> to vector<2x32xf32>
    %352 = arith.mulf %345, %323 : vector<2x32xf32>
    %353 = arith.mulf %344, %346 : vector<2x32xf32>
    %354 = arith.addf %352, %353 : vector<2x32xf32>
    %355 = arith.mulf %349, %326 : vector<2x32xf32>
    %356 = arith.mulf %348, %350 : vector<2x32xf32>
    %357 = arith.addf %355, %356 : vector<2x32xf32>
    %358 = math.tanh %354 : vector<2x32xf32>
    %359 = arith.mulf %347, %358 : vector<2x32xf32>
    %360 = math.tanh %357 : vector<2x32xf32>
    %361 = arith.mulf %351, %360 : vector<2x32xf32>
    %362 = tpu.concatenate %359, %361 in 1 : vector<2x32xf32>, vector<2x32xf32> -> vector<2x64xf32>
    %c4_109 = arith.constant 4 : index
    %c0_110 = arith.constant 0 : index
    %363 = vector.load %arg11[%c4_109, %c0_110] : memref<16x256xf32, #tpu.memory_space<vmem>>, vector<2x128xf32>
    %c10_111 = arith.constant 10 : index
    %c128_112 = arith.constant 128 : index
    %364 = vector.load %arg11[%c10_111, %c128_112] : memref<16x256xf32, #tpu.memory_space<vmem>>, vector<2x128xf32>
    %365 = tpu.concatenate %363, %364 in 1 : vector<2x128xf32>, vector<2x128xf32> -> vector<2x256xf32>
    %366 = arith.truncf %362 : vector<2x64xf32> to vector<2x64xbf16>
    %cst_113 = arith.constant dense<0.000000e+00> : vector<2x256xf32>
    %367 = tpu.matmul %366, %297, %cst_113 {dimension_numbers = #tpu.dot_dimension_numbers<[1], [0], [0], [1], [0, 0, 1, 1], [], []>} : vector<2x64xbf16>, vector<64x256xbf16>, vector<2x256xf32> -> vector<2x256xf32>
    %368 = arith.addf %365, %367 : vector<2x256xf32>
    %369 = arith.negf %368 : vector<2x256xf32>
    %370 = math.exp %369 : vector<2x256xf32>
    %cst_114 = arith.constant 1.000000e+00 : f32
    %371 = vector.broadcast %cst_114 : f32 to vector<2x256xf32>
    %372 = arith.addf %371, %370 : vector<2x256xf32>
    %373 = arith.divf %371, %372 : vector<2x256xf32>
    %374 = math.tanh %368 : vector<2x256xf32>
    %375 = vector.extract_strided_slice %373 {offsets = [0, 0], sizes = [2, 32], strides = [1, 1]} : vector<2x256xf32> to vector<2x32xf32>
    %376 = vector.extract_strided_slice %373 {offsets = [0, 32], sizes = [2, 32], strides = [1, 1]} : vector<2x256xf32> to vector<2x32xf32>
    %377 = vector.extract_strided_slice %374 {offsets = [0, 64], sizes = [2, 32], strides = [1, 1]} : vector<2x256xf32> to vector<2x32xf32>
    %378 = vector.extract_strided_slice %373 {offsets = [0, 96], sizes = [2, 32], strides = [1, 1]} : vector<2x256xf32> to vector<2x32xf32>
    %379 = vector.extract_strided_slice %373 {offsets = [0, 128], sizes = [2, 32], strides = [1, 1]} : vector<2x256xf32> to vector<2x32xf32>
    %380 = vector.extract_strided_slice %373 {offsets = [0, 160], sizes = [2, 32], strides = [1, 1]} : vector<2x256xf32> to vector<2x32xf32>
    %381 = vector.extract_strided_slice %374 {offsets = [0, 192], sizes = [2, 32], strides = [1, 1]} : vector<2x256xf32> to vector<2x32xf32>
    %382 = vector.extract_strided_slice %373 {offsets = [0, 224], sizes = [2, 32], strides = [1, 1]} : vector<2x256xf32> to vector<2x32xf32>
    %383 = arith.mulf %376, %354 : vector<2x32xf32>
    %384 = arith.mulf %375, %377 : vector<2x32xf32>
    %385 = arith.addf %383, %384 : vector<2x32xf32>
    %386 = arith.mulf %380, %357 : vector<2x32xf32>
    %387 = arith.mulf %379, %381 : vector<2x32xf32>
    %388 = arith.addf %386, %387 : vector<2x32xf32>
    %389 = math.tanh %385 : vector<2x32xf32>
    %390 = arith.mulf %378, %389 : vector<2x32xf32>
    %391 = math.tanh %388 : vector<2x32xf32>
    %392 = arith.mulf %382, %391 : vector<2x32xf32>
    %393 = tpu.concatenate %390, %392 in 1 : vector<2x32xf32>, vector<2x32xf32> -> vector<2x64xf32>
    %c6_115 = arith.constant 6 : index
    %c0_116 = arith.constant 0 : index
    %394 = vector.load %arg11[%c6_115, %c0_116] : memref<16x256xf32, #tpu.memory_space<vmem>>, vector<2x128xf32>
    %c8_117 = arith.constant 8 : index
    %c128_118 = arith.constant 128 : index
    %395 = vector.load %arg11[%c8_117, %c128_118] : memref<16x256xf32, #tpu.memory_space<vmem>>, vector<2x128xf32>
    %396 = tpu.concatenate %394, %395 in 1 : vector<2x128xf32>, vector<2x128xf32> -> vector<2x256xf32>
    %397 = arith.truncf %393 : vector<2x64xf32> to vector<2x64xbf16>
    %cst_119 = arith.constant dense<0.000000e+00> : vector<2x256xf32>
    %398 = tpu.matmul %397, %297, %cst_119 {dimension_numbers = #tpu.dot_dimension_numbers<[1], [0], [0], [1], [0, 0, 1, 1], [], []>} : vector<2x64xbf16>, vector<64x256xbf16>, vector<2x256xf32> -> vector<2x256xf32>
    %399 = arith.addf %396, %398 : vector<2x256xf32>
    %400 = arith.negf %399 : vector<2x256xf32>
    %401 = math.exp %400 : vector<2x256xf32>
    %cst_120 = arith.constant 1.000000e+00 : f32
    %402 = vector.broadcast %cst_120 : f32 to vector<2x256xf32>
    %403 = arith.addf %402, %401 : vector<2x256xf32>
    %404 = arith.divf %402, %403 : vector<2x256xf32>
    %405 = math.tanh %399 : vector<2x256xf32>
    %406 = vector.extract_strided_slice %404 {offsets = [0, 0], sizes = [2, 32], strides = [1, 1]} : vector<2x256xf32> to vector<2x32xf32>
    %407 = vector.extract_strided_slice %404 {offsets = [0, 32], sizes = [2, 32], strides = [1, 1]} : vector<2x256xf32> to vector<2x32xf32>
    %408 = vector.extract_strided_slice %405 {offsets = [0, 64], sizes = [2, 32], strides = [1, 1]} : vector<2x256xf32> to vector<2x32xf32>
    %409 = vector.extract_strided_slice %404 {offsets = [0, 96], sizes = [2, 32], strides = [1, 1]} : vector<2x256xf32> to vector<2x32xf32>
    %410 = vector.extract_strided_slice %404 {offsets = [0, 128], sizes = [2, 32], strides = [1, 1]} : vector<2x256xf32> to vector<2x32xf32>
    %411 = vector.extract_strided_slice %404 {offsets = [0, 160], sizes = [2, 32], strides = [1, 1]} : vector<2x256xf32> to vector<2x32xf32>
    %412 = vector.extract_strided_slice %405 {offsets = [0, 192], sizes = [2, 32], strides = [1, 1]} : vector<2x256xf32> to vector<2x32xf32>
    %413 = vector.extract_strided_slice %404 {offsets = [0, 224], sizes = [2, 32], strides = [1, 1]} : vector<2x256xf32> to vector<2x32xf32>
    %414 = arith.mulf %407, %385 : vector<2x32xf32>
    %415 = arith.mulf %406, %408 : vector<2x32xf32>
    %416 = arith.addf %414, %415 : vector<2x32xf32>
    %417 = arith.mulf %411, %388 : vector<2x32xf32>
    %418 = arith.mulf %410, %412 : vector<2x32xf32>
    %419 = arith.addf %417, %418 : vector<2x32xf32>
    %420 = math.tanh %416 : vector<2x32xf32>
    %421 = arith.mulf %409, %420 : vector<2x32xf32>
    %422 = math.tanh %419 : vector<2x32xf32>
    %423 = arith.mulf %413, %422 : vector<2x32xf32>
    %424 = tpu.concatenate %421, %423 in 1 : vector<2x32xf32>, vector<2x32xf32> -> vector<2x64xf32>
    %c8_121 = arith.constant 8 : index
    %c0_122 = arith.constant 0 : index
    %425 = vector.load %arg11[%c8_121, %c0_122] : memref<16x256xf32, #tpu.memory_space<vmem>>, vector<2x128xf32>
    %c6_123 = arith.constant 6 : index
    %c128_124 = arith.constant 128 : index
    %426 = vector.load %arg11[%c6_123, %c128_124] : memref<16x256xf32, #tpu.memory_space<vmem>>, vector<2x128xf32>
    %427 = tpu.concatenate %425, %426 in 1 : vector<2x128xf32>, vector<2x128xf32> -> vector<2x256xf32>
    %428 = arith.truncf %424 : vector<2x64xf32> to vector<2x64xbf16>
    %cst_125 = arith.constant dense<0.000000e+00> : vector<2x256xf32>
    %429 = tpu.matmul %428, %297, %cst_125 {dimension_numbers = #tpu.dot_dimension_numbers<[1], [0], [0], [1], [0, 0, 1, 1], [], []>} : vector<2x64xbf16>, vector<64x256xbf16>, vector<2x256xf32> -> vector<2x256xf32>
    %430 = arith.addf %427, %429 : vector<2x256xf32>
    %431 = arith.negf %430 : vector<2x256xf32>
    %432 = math.exp %431 : vector<2x256xf32>
    %cst_126 = arith.constant 1.000000e+00 : f32
    %433 = vector.broadcast %cst_126 : f32 to vector<2x256xf32>
    %434 = arith.addf %433, %432 : vector<2x256xf32>
    %435 = arith.divf %433, %434 : vector<2x256xf32>
    %436 = math.tanh %430 : vector<2x256xf32>
    %437 = vector.extract_strided_slice %435 {offsets = [0, 0], sizes = [2, 32], strides = [1, 1]} : vector<2x256xf32> to vector<2x32xf32>
    %438 = vector.extract_strided_slice %435 {offsets = [0, 32], sizes = [2, 32], strides = [1, 1]} : vector<2x256xf32> to vector<2x32xf32>
    %439 = vector.extract_strided_slice %436 {offsets = [0, 64], sizes = [2, 32], strides = [1, 1]} : vector<2x256xf32> to vector<2x32xf32>
    %440 = vector.extract_strided_slice %435 {offsets = [0, 96], sizes = [2, 32], strides = [1, 1]} : vector<2x256xf32> to vector<2x32xf32>
    %441 = vector.extract_strided_slice %435 {offsets = [0, 128], sizes = [2, 32], strides = [1, 1]} : vector<2x256xf32> to vector<2x32xf32>
    %442 = vector.extract_strided_slice %435 {offsets = [0, 160], sizes = [2, 32], strides = [1, 1]} : vector<2x256xf32> to vector<2x32xf32>
    %443 = vector.extract_strided_slice %436 {offsets = [0, 192], sizes = [2, 32], strides = [1, 1]} : vector<2x256xf32> to vector<2x32xf32>
    %444 = vector.extract_strided_slice %435 {offsets = [0, 224], sizes = [2, 32], strides = [1, 1]} : vector<2x256xf32> to vector<2x32xf32>
    %445 = arith.mulf %438, %416 : vector<2x32xf32>
    %446 = arith.mulf %437, %439 : vector<2x32xf32>
    %447 = arith.addf %445, %446 : vector<2x32xf32>
    %448 = arith.mulf %442, %419 : vector<2x32xf32>
    %449 = arith.mulf %441, %443 : vector<2x32xf32>
    %450 = arith.addf %448, %449 : vector<2x32xf32>
    %451 = math.tanh %447 : vector<2x32xf32>
    %452 = arith.mulf %440, %451 : vector<2x32xf32>
    %453 = math.tanh %450 : vector<2x32xf32>
    %454 = arith.mulf %444, %453 : vector<2x32xf32>
    %455 = tpu.concatenate %452, %454 in 1 : vector<2x32xf32>, vector<2x32xf32> -> vector<2x64xf32>
    %c10_127 = arith.constant 10 : index
    %c0_128 = arith.constant 0 : index
    %456 = vector.load %arg11[%c10_127, %c0_128] : memref<16x256xf32, #tpu.memory_space<vmem>>, vector<2x128xf32>
    %c4_129 = arith.constant 4 : index
    %c128_130 = arith.constant 128 : index
    %457 = vector.load %arg11[%c4_129, %c128_130] : memref<16x256xf32, #tpu.memory_space<vmem>>, vector<2x128xf32>
    %458 = tpu.concatenate %456, %457 in 1 : vector<2x128xf32>, vector<2x128xf32> -> vector<2x256xf32>
    %459 = arith.truncf %455 : vector<2x64xf32> to vector<2x64xbf16>
    %cst_131 = arith.constant dense<0.000000e+00> : vector<2x256xf32>
    %460 = tpu.matmul %459, %297, %cst_131 {dimension_numbers = #tpu.dot_dimension_numbers<[1], [0], [0], [1], [0, 0, 1, 1], [], []>} : vector<2x64xbf16>, vector<64x256xbf16>, vector<2x256xf32> -> vector<2x256xf32>
    %461 = arith.addf %458, %460 : vector<2x256xf32>
    %462 = arith.negf %461 : vector<2x256xf32>
    %463 = math.exp %462 : vector<2x256xf32>
    %cst_132 = arith.constant 1.000000e+00 : f32
    %464 = vector.broadcast %cst_132 : f32 to vector<2x256xf32>
    %465 = arith.addf %464, %463 : vector<2x256xf32>
    %466 = arith.divf %464, %465 : vector<2x256xf32>
    %467 = math.tanh %461 : vector<2x256xf32>
    %468 = vector.extract_strided_slice %466 {offsets = [0, 0], sizes = [2, 32], strides = [1, 1]} : vector<2x256xf32> to vector<2x32xf32>
    %469 = vector.extract_strided_slice %466 {offsets = [0, 32], sizes = [2, 32], strides = [1, 1]} : vector<2x256xf32> to vector<2x32xf32>
    %470 = vector.extract_strided_slice %467 {offsets = [0, 64], sizes = [2, 32], strides = [1, 1]} : vector<2x256xf32> to vector<2x32xf32>
    %471 = vector.extract_strided_slice %466 {offsets = [0, 96], sizes = [2, 32], strides = [1, 1]} : vector<2x256xf32> to vector<2x32xf32>
    %472 = vector.extract_strided_slice %466 {offsets = [0, 128], sizes = [2, 32], strides = [1, 1]} : vector<2x256xf32> to vector<2x32xf32>
    %473 = vector.extract_strided_slice %466 {offsets = [0, 160], sizes = [2, 32], strides = [1, 1]} : vector<2x256xf32> to vector<2x32xf32>
    %474 = vector.extract_strided_slice %467 {offsets = [0, 192], sizes = [2, 32], strides = [1, 1]} : vector<2x256xf32> to vector<2x32xf32>
    %475 = vector.extract_strided_slice %466 {offsets = [0, 224], sizes = [2, 32], strides = [1, 1]} : vector<2x256xf32> to vector<2x32xf32>
    %476 = arith.mulf %469, %447 : vector<2x32xf32>
    %477 = arith.mulf %468, %470 : vector<2x32xf32>
    %478 = arith.addf %476, %477 : vector<2x32xf32>
    %479 = arith.mulf %473, %450 : vector<2x32xf32>
    %480 = arith.mulf %472, %474 : vector<2x32xf32>
    %481 = arith.addf %479, %480 : vector<2x32xf32>
    %482 = math.tanh %478 : vector<2x32xf32>
    %483 = arith.mulf %471, %482 : vector<2x32xf32>
    %484 = math.tanh %481 : vector<2x32xf32>
    %485 = arith.mulf %475, %484 : vector<2x32xf32>
    %486 = tpu.concatenate %483, %485 in 1 : vector<2x32xf32>, vector<2x32xf32> -> vector<2x64xf32>
    %c12_133 = arith.constant 12 : index
    %c0_134 = arith.constant 0 : index
    %487 = vector.load %arg11[%c12_133, %c0_134] : memref<16x256xf32, #tpu.memory_space<vmem>>, vector<2x128xf32>
    %c2_135 = arith.constant 2 : index
    %c128_136 = arith.constant 128 : index
    %488 = vector.load %arg11[%c2_135, %c128_136] : memref<16x256xf32, #tpu.memory_space<vmem>>, vector<2x128xf32>
    %489 = tpu.concatenate %487, %488 in 1 : vector<2x128xf32>, vector<2x128xf32> -> vector<2x256xf32>
    %490 = arith.truncf %486 : vector<2x64xf32> to vector<2x64xbf16>
    %cst_137 = arith.constant dense<0.000000e+00> : vector<2x256xf32>
    %491 = tpu.matmul %490, %297, %cst_137 {dimension_numbers = #tpu.dot_dimension_numbers<[1], [0], [0], [1], [0, 0, 1, 1], [], []>} : vector<2x64xbf16>, vector<64x256xbf16>, vector<2x256xf32> -> vector<2x256xf32>
    %492 = arith.addf %489, %491 : vector<2x256xf32>
    %493 = arith.negf %492 : vector<2x256xf32>
    %494 = math.exp %493 : vector<2x256xf32>
    %cst_138 = arith.constant 1.000000e+00 : f32
    %495 = vector.broadcast %cst_138 : f32 to vector<2x256xf32>
    %496 = arith.addf %495, %494 : vector<2x256xf32>
    %497 = arith.divf %495, %496 : vector<2x256xf32>
    %498 = math.tanh %492 : vector<2x256xf32>
    %499 = vector.extract_strided_slice %497 {offsets = [0, 0], sizes = [2, 32], strides = [1, 1]} : vector<2x256xf32> to vector<2x32xf32>
    %500 = vector.extract_strided_slice %497 {offsets = [0, 32], sizes = [2, 32], strides = [1, 1]} : vector<2x256xf32> to vector<2x32xf32>
    %501 = vector.extract_strided_slice %498 {offsets = [0, 64], sizes = [2, 32], strides = [1, 1]} : vector<2x256xf32> to vector<2x32xf32>
    %502 = vector.extract_strided_slice %497 {offsets = [0, 96], sizes = [2, 32], strides = [1, 1]} : vector<2x256xf32> to vector<2x32xf32>
    %503 = vector.extract_strided_slice %497 {offsets = [0, 128], sizes = [2, 32], strides = [1, 1]} : vector<2x256xf32> to vector<2x32xf32>
    %504 = vector.extract_strided_slice %497 {offsets = [0, 160], sizes = [2, 32], strides = [1, 1]} : vector<2x256xf32> to vector<2x32xf32>
    %505 = vector.extract_strided_slice %498 {offsets = [0, 192], sizes = [2, 32], strides = [1, 1]} : vector<2x256xf32> to vector<2x32xf32>
    %506 = vector.extract_strided_slice %497 {offsets = [0, 224], sizes = [2, 32], strides = [1, 1]} : vector<2x256xf32> to vector<2x32xf32>
    %507 = arith.mulf %500, %478 : vector<2x32xf32>
    %508 = arith.mulf %499, %501 : vector<2x32xf32>
    %509 = arith.addf %507, %508 : vector<2x32xf32>
    %510 = arith.mulf %504, %481 : vector<2x32xf32>
    %511 = arith.mulf %503, %505 : vector<2x32xf32>
    %512 = arith.addf %510, %511 : vector<2x32xf32>
    %513 = math.tanh %509 : vector<2x32xf32>
    %514 = arith.mulf %502, %513 : vector<2x32xf32>
    %515 = math.tanh %512 : vector<2x32xf32>
    %516 = arith.mulf %506, %515 : vector<2x32xf32>
    %517 = tpu.concatenate %514, %516 in 1 : vector<2x32xf32>, vector<2x32xf32> -> vector<2x64xf32>
    %c14_139 = arith.constant 14 : index
    %c0_140 = arith.constant 0 : index
    %518 = vector.load %arg11[%c14_139, %c0_140] : memref<16x256xf32, #tpu.memory_space<vmem>>, vector<2x128xf32>
    %c0_141 = arith.constant 0 : index
    %c128_142 = arith.constant 128 : index
    %519 = vector.load %arg11[%c0_141, %c128_142] : memref<16x256xf32, #tpu.memory_space<vmem>>, vector<2x128xf32>
    %520 = tpu.concatenate %518, %519 in 1 : vector<2x128xf32>, vector<2x128xf32> -> vector<2x256xf32>
    %521 = arith.truncf %517 : vector<2x64xf32> to vector<2x64xbf16>
    %cst_143 = arith.constant dense<0.000000e+00> : vector<2x256xf32>
    %522 = tpu.matmul %521, %297, %cst_143 {dimension_numbers = #tpu.dot_dimension_numbers<[1], [0], [0], [1], [0, 0, 1, 1], [], []>} : vector<2x64xbf16>, vector<64x256xbf16>, vector<2x256xf32> -> vector<2x256xf32>
    %523 = arith.addf %520, %522 : vector<2x256xf32>
    %524 = arith.negf %523 : vector<2x256xf32>
    %525 = math.exp %524 : vector<2x256xf32>
    %cst_144 = arith.constant 1.000000e+00 : f32
    %526 = vector.broadcast %cst_144 : f32 to vector<2x256xf32>
    %527 = arith.addf %526, %525 : vector<2x256xf32>
    %528 = arith.divf %526, %527 : vector<2x256xf32>
    %529 = math.tanh %523 : vector<2x256xf32>
    %530 = vector.extract_strided_slice %528 {offsets = [0, 0], sizes = [2, 32], strides = [1, 1]} : vector<2x256xf32> to vector<2x32xf32>
    %531 = vector.extract_strided_slice %528 {offsets = [0, 32], sizes = [2, 32], strides = [1, 1]} : vector<2x256xf32> to vector<2x32xf32>
    %532 = vector.extract_strided_slice %529 {offsets = [0, 64], sizes = [2, 32], strides = [1, 1]} : vector<2x256xf32> to vector<2x32xf32>
    %533 = vector.extract_strided_slice %528 {offsets = [0, 96], sizes = [2, 32], strides = [1, 1]} : vector<2x256xf32> to vector<2x32xf32>
    %534 = vector.extract_strided_slice %528 {offsets = [0, 128], sizes = [2, 32], strides = [1, 1]} : vector<2x256xf32> to vector<2x32xf32>
    %535 = vector.extract_strided_slice %528 {offsets = [0, 160], sizes = [2, 32], strides = [1, 1]} : vector<2x256xf32> to vector<2x32xf32>
    %536 = vector.extract_strided_slice %529 {offsets = [0, 192], sizes = [2, 32], strides = [1, 1]} : vector<2x256xf32> to vector<2x32xf32>
    %537 = vector.extract_strided_slice %528 {offsets = [0, 224], sizes = [2, 32], strides = [1, 1]} : vector<2x256xf32> to vector<2x32xf32>
    %538 = arith.mulf %531, %509 : vector<2x32xf32>
    %539 = arith.mulf %530, %532 : vector<2x32xf32>
    %540 = arith.addf %538, %539 : vector<2x32xf32>
    %541 = arith.mulf %535, %512 : vector<2x32xf32>
    %542 = arith.mulf %534, %536 : vector<2x32xf32>
    %543 = arith.addf %541, %542 : vector<2x32xf32>
    %544 = math.tanh %540 : vector<2x32xf32>
    %545 = arith.mulf %533, %544 : vector<2x32xf32>
    %546 = math.tanh %543 : vector<2x32xf32>
    %547 = arith.mulf %537, %546 : vector<2x32xf32>
    %548 = tpu.concatenate %545, %547 in 1 : vector<2x32xf32>, vector<2x32xf32> -> vector<2x64xf32>
    %549 = arith.truncf %548 : vector<2x64xf32> to vector<2x64xbf16>
    %c0_145 = arith.constant 0 : index
    %c0_146 = arith.constant 0 : index
    %550 = vector.load %arg7[%c0_145, %c0_146] : memref<64x4xbf16, #tpu.memory_space<vmem>>, vector<64x4xbf16>
    %cst_147 = arith.constant dense<0.000000e+00> : vector<2x4xf32>
    %551 = tpu.matmul %549, %550, %cst_147 {dimension_numbers = #tpu.dot_dimension_numbers<[1], [0], [0], [1], [0, 0, 1, 1], [], []>} : vector<2x64xbf16>, vector<64x4xbf16>, vector<2x4xf32> -> vector<2x4xf32>
    %c0_148 = arith.constant 0 : index
    %c0_149 = arith.constant 0 : index
    %552 = vector.load %arg8[%c0_148, %c0_149] : memref<1x4xf32, #tpu.memory_space<vmem>>, vector<1x4xf32>
    %553 = vector.broadcast %552 : vector<1x4xf32> to vector<2x4xf32>
    %554 = arith.addf %551, %553 : vector<2x4xf32>
    %c0_150 = arith.constant 0 : index
    %c0_151 = arith.constant 0 : index
    %555 = vector.load %arg9[%c0_150, %c0_151] : memref<2x4xf32, #tpu.memory_space<vmem>>, vector<2x4xf32>
    tpu.vector_store %arg9[%c0_150, %c0_151], %554 {strides = array<i32>} : memref<2x4xf32, #tpu.memory_space<vmem>>, vector<2x4xf32>,
    return
  }
}

</mosaic_0001>

<bundles_post_ra>
// kernel: tpu_custom_call.1
= control target key start
LH: loop header
LB: loop body
LE: loop exit
PB: predicated region body
PF: predicated region fallthrough
CT: control target
= control target key end

     0   :  { %14 = vsyncpa [#allocation5], 0  ;;  %s3781_s0 = inlined_call_operand.hbm [shape: bf16[16,32], index: 0, kind: input, shape index: {}]   ;;  %s3782_s1 = inlined_call_operand.vmem [shape: bf16[32,256], index: 1, kind: input, shape index: {}]   ;;  %s3783_s2 = inlined_call_operand.hbm [shape: bf16[64,256], index: 2, kind: input, shape index: {}]   ;;  %s3784_s3 = inlined_call_operand.vmem [shape: f32[1,256], index: 3, kind: input, shape index: {}]   ;;  %s3785_s4 = inlined_call_operand.hbm [shape: bf16[64,256], index: 4, kind: input, shape index: {}]   ;;  %s3786_s5 = inlined_call_operand.hbm [shape: bf16[64,256], index: 5, kind: input, shape index: {}]   ;;  %s3787_s6 = inlined_call_operand.vmem [shape: f32[1,256], index: 6, kind: input, shape index: {}]   ;;  %s3788_s7 = inlined_call_operand.vmem [shape: bf16[64,4], index: 7, kind: input, shape index: {}]   ;;  %s3789_s8 = inlined_call_operand.vmem [shape: f32[1,4], index: 8, kind: input, shape index: {}]   ;;  %s3790_s9 = inlined_call_operand.hbm [shape: f32[2,4], index: 9, kind: output, shape index: {}]  }
   0x1   :  { %15 = vsyncpa [#allocation8], 0 }
   0x2   :  { %16 = vsyncpa [#allocation11], 0 }
   0x3   :  { %17 = vsyncpa [#allocation6], 0  ;;  %s3117_s30 = smov [#allocation7]  }
   0x4   :  { %s37_s10 = sshll.u32 %s3117_s30, 4  ;;  %s38_s10 = int_to_ptr.vmem [resolvable:$true] %s37_s10 }
   0x5   :  { %s3017_s11 = scalar_lea.vmem %s38_s10, 1024  ;;  %p3022_p1 = scmp.lt.s32.totalorder %s38_s10, %s38_s10 }
   0x6   :  { %p3018_p0 = scmp.ne.s32.totalorder %s38_s10, %s3017_s11  ;;  %p3023_p2 = scmp.lt.s32.totalorder %s3017_s11, %s3017_s11 }
   0x8   :  { %p3024_p3 = por %p3023_p2, %p3022_p1 }
   0xa   :  { %p3025_p4 = pnand %p3024_p3, %p3018_p0 }
   0xc   :  { %3028 = shalt.err (!%p3025_p4)
}
   0xd   :  { %s3118_s12 = smov 128   ;;  %s3119_s13 = smov 8  }
   0xe   :  { %43 = dma.hbm_to_vmem [thread:$0]  %s3783_s2, 1024, %s38_s10, [#allocation8], %s3118_s12, %s3118_s12, %s3119_s13  }
   0xf   :  { %s3120_s16 = smov [#allocation4]  }
  0x10   :  { %s23_s17 = sshll.u32 %s3120_s16, 4  ;;  %s24_s17 = int_to_ptr.vmem [resolvable:$true] %s23_s17 }
  0x11   :  { %s3037_s18 = scalar_lea.vmem %s24_s17, 128  ;;  %p3042_p6 = scmp.lt.s32.totalorder %s24_s17, %s24_s17 }
  0x12   :  { %p3038_p5 = scmp.ne.s32.totalorder %s24_s17, %s3037_s18  ;;  %p3043_p7 = scmp.lt.s32.totalorder %s3037_s18, %s3037_s18 }
  0x14   :  { %p3044_p8 = por %p3043_p7, %p3042_p6 }
  0x16   :  { %p3045_p9 = pnand %p3044_p8, %p3038_p5 }
  0x18   :  { %3048 = shalt.err (!%p3045_p9)
}
  0x19   :  { %s3121_s19 = smov 64   ;;  %s3122_s20 = smov 4  }
  0x1a   :  { %29 = dma.hbm_to_vmem [thread:$0]  %s3781_s0, 128, %s24_s17, [#allocation5], %s3121_s19, %s3121_s19, %s3122_s20  }
  0x1b   :  { %s3123_s23 = smov [#allocation9]   ;;  %s3124_s24 = smov [#allocation10]  }
  0x1c   :  { %s51_s2 = sshll.u32 %s3123_s23, 4  ;;  %s63_s25 = sshll.u32 %s3124_s24, 4  ;;  %s52_s2 = int_to_ptr.vmem [resolvable:$true] %s51_s2  ;;  %s64_s25 = int_to_ptr.vmem [resolvable:$true] %s63_s25 }
  0x1d   :  { %s3057_s26 = scalar_lea.vmem %s52_s2, 1024  ;;  %p3062_p11 = scmp.lt.s32.totalorder %s52_s2, %s52_s2 }
  0x1e   :  { %p3058_p10 = scmp.ne.s32.totalorder %s52_s2, %s3057_s26  ;;  %p3063_p12 = scmp.lt.s32.totalorder %s3057_s26, %s3057_s26 }
  0x20   :  { %p3064_p13 = por %p3063_p12, %p3062_p11 }
  0x22   :  { %p3065_p0 = pnand %p3064_p13, %p3058_p10 }
  0x24   :  { %3068 = shalt.err (!%p3065_p0)
}
  0x25   :  { %57 = dma.hbm_to_vmem [thread:$0]  %s3785_s4, 1024, %s52_s2, [#allocation8], %s3118_s12, %s3118_s12, %s3119_s13  }
  0x26   :  { %s3077_s0 = scalar_lea.vmem %s64_s25, 1024  ;;  %p3082_p2 = scmp.lt.s32.totalorder %s64_s25, %s64_s25 }
  0x27   :  { %p3078_p1 = scmp.ne.s32.totalorder %s64_s25, %s3077_s0  ;;  %p3083_p3 = scmp.lt.s32.totalorder %s3077_s0, %s3077_s0 }
  0x29   :  { %p3084_p4 = por %p3083_p3, %p3082_p2 }
  0x2b   :  { %p3085_p5 = pnand %p3084_p4, %p3078_p1 }
  0x2d   :  { %3088 = shalt.err (!%p3085_p5)
}
  0x2e   :  { %69 = dma.hbm_to_vmem [thread:$0]  %s3786_s5, 1024, %s64_s25, [#allocation11], %s3118_s12, %s3118_s12, %s3119_s13  }
  0x2f   :  { %3109 = dma.done.wait [#allocation5], 128  }
  0x30   :  { %3110 = vsyncadd [#allocation5], 4294967168 }
  0x31   :  { %3111 = dma.done.wait [#allocation8], 2048  }
  0x32   :  { %3112 = vsyncadd [#allocation8], 4294965248 }
  0x33   :  { %3113 = dma.done.wait [#allocation11], 1024  }
  0x34   :  { %3114 = vsyncadd [#allocation11], 4294966272  ;;  %v3125_v0 = vmov 0   ;;  %v2705_v1 = vld [vmem:[%s3782_s1 + $0x14] ss:$8 sps:$4 sm:$0xff]   ;;  %v2717_v9 = vld [vmem:[#allocation4] sm:$0xff]   ;;  %v97_v14 = vlaneseq }
  0x35   :  { %168 = vmatprep.mubr.bf16.mxu0 %v3125_v0  ;;  %272 = vmatprep.mubr.bf16.mxu1 %v3125_v0  ;;  %v3208_v2 = vld [vmem:[#allocation7 + $0x34] ss:$8 sps:$4 sm:$0xff]   ;;  %v2709_v3 = vld [vmem:[%s3782_s1 + $0x10] ss:$8 sps:$4 sm:$0xff]   ;;  %v3213_v4 = vld [vmem:[#allocation7 + $0x30] ss:$8 sps:$4 sm:$0xff]  }
  0x36   :  { %148 = vmatprep.subr.bf16.mxu0 %v2705_v1  ;;  %248 = vmatprep.subr.bf16.mxu1 %v3208_v2  ;;  %v2711_v5 = vld [vmem:[%s3782_s1 + $0x4] ss:$8 sps:$4 sm:$0xff]   ;;  %v3220_v6 = vld [vmem:[#allocation7 + $0x24] ss:$8 sps:$4 sm:$0xff]   ;;  %v2715_v7 = vld [vmem:[%s3782_s1] ss:$8 sps:$4 sm:$0xff]  }
  0x37   :  { %149 = vmatpush1.bf16.msra.mxu0 %v2709_v3  ;;  %249 = vmatpush1.bf16.msra.mxu1 %v3213_v4  ;;  %v3225_v8 = vld [vmem:[#allocation7 + $0x20] ss:$8 sps:$4 sm:$0xff]   ;;  %v3228_v10 = vld [vmem:[#allocation7 + $0x14] ss:$8 sps:$4 sm:$0xff]   ;;  %vm132_vm0 = vcmask 261120   ;;  %v3263_v15 = vshrl.u32 %v97_v14, 7 }
  0x38   :  { %150 = vmatprep.subr.bf16.mxu0 %v2711_v5  ;;  %250 = vmatprep.subr.bf16.mxu1 %v3220_v6  ;;  %v3231_v11 = vld [vmem:[#allocation7 + $0x10] ss:$8 sps:$4 sm:$0xff]   ;;  %v3234_v12 = vld [vmem:[#allocation7 + $0x4] ss:$8 sps:$4 sm:$0xff]   ;;  %v3237_v13 = vld [vmem:[#allocation7] ss:$8 sps:$4 sm:$0xff]  }
  0x39   :  { %v99_v16 = vsub.s32 0, %v3263_v15  ;;  %v95_v17 = vld [vmem:[%s3784_s3] sm:$0x3]  ;;  %v103_v18 = vsub.s32 1, %v3263_v15  ;;  %s3126_s3 = smov 32   ;;  %vm236_vm1 = vcmask 523264  }
  0x3a   :  { %vm348_vm2 = vcmask 519427   ;;  %vm338_vm3 = vcmask 253952   ;;  %vm488_vm4 = vcmask 518402   ;;  %vm478_vm5 = vcmask 254977   ;;  %s3129_s27 = smov [#allocation12]  }
  0x3b   :  { %151 = vmatpush1.bf16.msra.mxu0 %v2715_v7  ;;  %251 = vmatpush1.bf16.msra.mxu1 %v3225_v8  ;;  %v100_v19 = vrot.slane %v95_v17, %v99_v16  ;;  %v104_v20 = vrot.slane %v95_v17, %v103_v18  ;;  %vm631_vm6 = vcmask 517377   ;;  %vm620_vm7 = vcmask 256002   ;;  %s2544_s28 = sshll.u32 %s3129_s27, 4  ;;  %s2545_s28 = int_to_ptr.vmem [resolvable:$true] %s2544_s28 }
  0x3c   :  { %252 = vmatprep.subr.bf16.mxu1 %v3228_v10  ;;  %376 = vmatprep.subr.bf16.mxu0 %v3208_v2  ;;  %vm774_vm8 = vcmask 516352   ;;  %vm763_vm9 = vcmask 257027   ;;  %vm3128_vm10 = vmmov 0   ;;  %vm2536_vm11 = vcmask 25600   ;;  %p3094_p7 = scmp.lt.s32.totalorder %s2545_s28, %s2545_s28 }
  0x3e   :  { %2560 = vmatmul.mubr.msk.bf16.vlgmr.msra.gmra.mxu0 %vm132_vm0, %v2717_v9 }
  0x3f   :  { %253 = vmatpush1.bf16.msra.mxu1 %v3231_v11  ;;  %377 = vmatpush1.bf16.msra.mxu0 %v3213_v4 }
  0x40   :  { %254 = vmatprep.subr.bf16.mxu1 %v3234_v12  ;;  %378 = vmatprep.subr.bf16.mxu0 %v3220_v6 }
  0x41   :  { %400 = vmatprep.mubr.bf16.mxu0 %v3125_v0 }
  0x43   :  { %255 = vmatpush1.bf16.msra.mxu1 %v3237_v13  ;;  %379 = vmatpush1.bf16.msra.mxu0 %v3225_v8 }
  0x44   :  { %380 = vmatprep.subr.bf16.mxu0 %v3228_v10  ;;  %518 = vmatprep.subr.bf16.mxu1 %v3208_v2 }
  0x46   :  { %273 = vmatmul.mubr.bf16.vlgmr.msra.gmra.mxu1 %v3125_v0 }
  0x47   :  { %381 = vmatpush1.bf16.msra.mxu0 %v3231_v11  ;;  %519 = vmatpush1.bf16.msra.mxu1 %v3213_v4 }
  0x48   :  { %382 = vmatprep.subr.bf16.mxu0 %v3234_v12  ;;  %520 = vmatprep.subr.bf16.mxu1 %v3220_v6 }
  0x49   :  { %542 = vmatprep.mubr.bf16.mxu1 %v3125_v0 }
  0x4b   :  { %383 = vmatpush1.bf16.msra.mxu0 %v3237_v13  ;;  %521 = vmatpush1.bf16.msra.mxu1 %v3225_v8 }
  0x4c   :  { %522 = vmatprep.subr.bf16.mxu1 %v3228_v10  ;;  %661 = vmatprep.subr.bf16.mxu0 %v3208_v2 }
  0x4f   :  { %523 = vmatpush1.bf16.msra.mxu1 %v3231_v11 }
  0x50   :  { %524 = vmatprep.subr.bf16.mxu1 %v3234_v12 }
  0x53   :  { %525 = vmatpush1.bf16.msra.mxu1 %v3237_v13 }
  0x54   :  { %804 = vmatprep.subr.bf16.mxu1 %v3208_v2 }
  0xfe   :  { %v170_v21 = vpop.f32.mrf.mxu0 }
  0xff   :  { %v171_v22 = vadd.f32 %v170_v21, %v100_v19 }
 0x100   :  { %v172_v23 = vpop.f32.mrf.mxu0 }
 0x101   :  { %179 = vst [vmem:[#allocation3 + $0x10] sm:$0xff] %v171_v22  ;;  %v173_v24 = vadd.f32 %v172_v23, %v104_v20 }
 0x102   :  { %v174_v25 = vpop.f32.mrf.mxu0 }
 0x103   :  { %180 = vst [vmem:[#allocation3] sm:$0xff] %v173_v24  ;;  %v175_v26 = vadd.f32 %v174_v25, %v100_v19 }
 0x104   :  { %v176_v27 = vpop.f32.mrf.mxu0 }
 0x105   :  { %181 = vst [vmem:[#allocation3 + $0x18] sm:$0xff] %v175_v26  ;;  %v177_v28 = vadd.f32 %v176_v27, %v104_v20 }
 0x106   :  { %v274_v29 = vpop.f32.mrf.mxu1 }
 0x107   :  { %182 = vst [vmem:[#allocation3 + $0x8] sm:$0xff] %v177_v28 }
 0x108   :  { %v191_v30 = vld [vmem:[#allocation3 + $0x10] sm:$0x3]  ;;  %v276_v31 = vpop.f32.mrf.mxu1  ;;  %v359_v19 = vld [vmem:[#allocation3 + $0x10] sm:$0xc] }
 0x109   :  { %v281_v32 = vadd.f32 %v274_v29, %v191_v30 }
 0x10a   :  { %v278_v33 = vpop.f32.mrf.mxu1 }
 0x10b   :  { %2753 = vtanh.f32 %v281_v32  ;;  %v2569_v40 = vmul.f32 -1.442695, %v281_v32 }
 0x10c   :  { %v279_v34 = vpop.f32.mrf.mxu1 }
 0x10e   :  { %v192_v35 = vld [vmem:[#allocation3 + $0x8] sm:$0xc0]  ;;  %v360_v14 = vld [vmem:[#allocation3 + $0x8] sm:$0x30] }
 0x10f   :  { %v194_v36 = vrot.slane %v192_v35, 6  ;;  %v362_v22 = vrot.slane %v360_v14, 2 }
 0x111   :  { %v282_v37 = vadd.f32 %v276_v31, %v194_v36 }
 0x113   :  { %2755 = vtanh.f32 %v282_v37  ;;  %v2570_v41 = vmul.f32 -1.442695, %v282_v37 }
 0x114   :  { %2757 = vpow2.f32 %v2569_v40 }
 0x115   :  { %2759 = vpow2.f32 %v2570_v41 }
 0x118   :  { %v2754_v38 = vpop.eup %2753 }
 0x119   :  { %299 = vrot.lane.b32.xlu0 %v2754_v38, %s3121_s19 }
 0x120   :  { %v2756_v39 = vpop.eup %2755 }
 0x121   :  { %310 = vrot.lane.b32.xlu0 %v2756_v39, %s3121_s19  ;;  %v2758_v42 = vpop.eup %2757 }
 0x122   :  { %v289_v43 = vadd.f32 1.0, %v2758_v42  ;;  %v2760_v44 = vpop.eup %2759 }
 0x123   :  { %v290_v45 = vadd.f32 1.0, %v2760_v44 }
 0x124   :  { %2761 = vrcp.f32 %v289_v43 }
 0x125   :  { %2763 = vrcp.f32 %v290_v45 }
 0x131   :  { %v2762_v46 = vpop.eup %2761 }
 0x132   :  { %v2764_v49 = vpop.eup %2763  ;;  %v297_v52 = vmul.f32 0.0, %v2762_v46 }
 0x133   :  { %v308_v55 = vmul.f32 0.0, %v2764_v49 }
 0x18b   :  { %v300_v47 = vpop.permute.xlu0 %299 }
 0x18c   :  { %v302_v48 = vmul.f32 %v2762_v46, %v300_v47 }
 0x18e   :  { %304 = vrot.lane.b32.xlu1 %v302_v48, %s3126_s3 }
 0x193   :  { %v311_v50 = vpop.permute.xlu0 %310 }
 0x194   :  { %v313_v51 = vmul.f32 %v2764_v49, %v311_v50 }
 0x196   :  { %315 = vrot.lane.b32.xlu1 %v313_v51, %s3126_s3 }
 0x200   :  { %v305_v53 = vpop.permute.xlu1 %304 }
 0x201   :  { %v3278_v54 = vadd.f32 %v305_v53, %v297_v52 }
 0x203   :  { %2765 = vtanh.f32 %v3278_v54  ;;  %v432_v41 = vrot.slane %v3278_v54, 6 }
 0x208   :  { %v316_v56 = vpop.permute.xlu1 %315 }
 0x209   :  { %v3281_v57 = vadd.f32 %v316_v56, %v308_v55 }
 0x20b   :  { %2767 = vtanh.f32 %v3281_v57  ;;  %v446_v43 = vrot.slane %v3281_v57, 6 }
 0x210   :  { %v2766_v58 = vpop.eup %2765 }
 0x211   :  { %321 = vrot.lane.b32.xlu0 %v2766_v58, %s3121_s19 }
 0x218   :  { %v2768_v59 = vpop.eup %2767 }
 0x219   :  { %327 = vrot.lane.b32.xlu1 %v2768_v59, %s3121_s19 }
 0x283   :  { %v322_v60 = vpop.permute.xlu0 %321 }
 0x284   :  { %v3286_v61 = vmul.f32 %v2762_v46, %v322_v60 }
 0x286   :  { %351 = vrot.lane.b32.xlu0 %v3286_v61, %s3126_s3 }
 0x28b   :  { %v328_v62 = vpop.permute.xlu1 %327 }
 0x28c   :  { %v3290_v63 = vmul.f32 %v2764_v49, %v328_v62  ;;  %v500_v62 = vld [vmem:[#allocation3 + $0x8] sm:$0xc] }
 0x28e   :  { %355 = vrot.lane.b32.xlu1 %v3290_v63, %s3121_s19 }
 0x2f8   :  { %v352_v1 = vpop.permute.xlu0 %351 }
 0x300   :  { %v356_v3 = vpop.permute.xlu1 %355 }
 0x301   :  { %v358_v5 = vsel %vm132_vm0, %v352_v1, %v356_v3  ;;  %v499_v3 = vld [vmem:[#allocation3 + $0x10] sm:$0x30] }
 0x302   :  { %v364_v7 = vpack.c.bf16 %v358_v5, %v358_v5 }
 0x304   :  { %2573 = vmatmul.mubr.msk.bf16.vlgmr.msra.gmra.mxu0 %vm236_vm1, %v364_v7 }
 0x305   :  { %662 = vmatpush1.bf16.msra.mxu0 %v3213_v4  ;;  %685 = vmatprep.mubr.bf16.mxu0 %v3125_v0 }
 0x306   :  { %663 = vmatprep.subr.bf16.mxu0 %v3220_v6 }
 0x309   :  { %664 = vmatpush1.bf16.msra.mxu0 %v3225_v8 }
 0x30a   :  { %665 = vmatprep.subr.bf16.mxu0 %v3228_v10 }
 0x30d   :  { %666 = vmatpush1.bf16.msra.mxu0 %v3231_v11 }
 0x30e   :  { %667 = vmatprep.subr.bf16.mxu0 %v3234_v12 }
 0x311   :  { %668 = vmatpush1.bf16.msra.mxu0 %v3237_v13 }
 0x312   :  { %936 = vmatprep.subr.bf16.mxu0 %v3208_v2 }
 0x3c4   :  { %v402_v9 = vpop.f32.mrf.mxu0 }
 0x3c5   :  { %v411_v17 = vrot.slane %v402_v9, 6  ;;  %v502_v9 = vrot.slane %v500_v62, 6 }
 0x3c6   :  { %v404_v20 = vpop.f32.mrf.mxu0 }
 0x3c7   :  { %v415_v21 = vadd.f32 %v411_v17, %v359_v19  ;;  %v412_v23 = vrot.slane %v404_v20, 6 }
 0x3c8   :  { %v406_v24 = vpop.f32.mrf.mxu0 }
 0x3c9   :  { %2769 = vtanh.f32 %v415_v21  ;;  %v416_v25 = vadd.f32 %v412_v23, %v362_v22  ;;  %v2574_v29 = vmul.f32 -1.442695, %v415_v21 }
 0x3ca   :  { %v407_v26 = vpop.f32.mrf.mxu0 }
 0x3cb   :  { %2771 = vtanh.f32 %v416_v25  ;;  %v2575_v30 = vmul.f32 -1.442695, %v416_v25 }
 0x3cc   :  { %2773 = vpow2.f32 %v2574_v29 }
 0x3cd   :  { %2775 = vpow2.f32 %v2575_v30 }
 0x3d6   :  { %v2770_v27 = vpop.eup %2769 }
 0x3d7   :  { %436 = vrot.lane.b32.xlu0 %v2770_v27, %s3121_s19 }
 0x3d8   :  { %v2772_v28 = vpop.eup %2771 }
 0x3d9   :  { %450 = vrot.lane.b32.xlu1 %v2772_v28, %s3121_s19  ;;  %v2774_v31 = vpop.eup %2773 }
 0x3da   :  { %v2776_v32 = vpop.eup %2775  ;;  %v423_v33 = vadd.f32 1.0, %v2774_v31 }
 0x3db   :  { %v424_v34 = vadd.f32 1.0, %v2776_v32 }
 0x3dc   :  { %2777 = vrcp.f32 %v423_v33 }
 0x3dd   :  { %2779 = vrcp.f32 %v424_v34 }
 0x3e9   :  { %v2778_v35 = vpop.eup %2777 }
 0x3ea   :  { %v2780_v38 = vpop.eup %2779  ;;  %v434_v42 = vmul.f32 %v2778_v35, %v432_v41 }
 0x3eb   :  { %v448_v46 = vmul.f32 %v2780_v38, %v446_v43 }
 0x449   :  { %v437_v36 = vpop.permute.xlu0 %436 }
 0x44a   :  { %v439_v37 = vmul.f32 %v2778_v35, %v437_v36 }
 0x44b   :  { %v451_v39 = vpop.permute.xlu1 %450 }
 0x44c   :  { %441 = vrot.lane.b32.xlu0 %v439_v37, %s3126_s3  ;;  %v453_v40 = vmul.f32 %v2780_v38, %v451_v39 }
 0x44e   :  { %455 = vrot.lane.b32.xlu1 %v453_v40, %s3126_s3 }
 0x4be   :  { %v442_v44 = vpop.permute.xlu0 %441 }
 0x4bf   :  { %v3311_v45 = vadd.f32 %v442_v44, %v434_v42 }
 0x4c0   :  { %v456_v47 = vpop.permute.xlu1 %455 }
 0x4c1   :  { %2781 = vtanh.f32 %v3311_v45  ;;  %v3314_v48 = vadd.f32 %v456_v47, %v448_v46 }
 0x4c3   :  { %2783 = vtanh.f32 %v3314_v48  ;;  %v588_v37 = vrot.slane %v3314_v48, 6 }
 0x4ce   :  { %v2782_v49 = vpop.eup %2781 }
 0x4cf   :  { %461 = vrot.lane.b32.xlu0 %v2782_v49, %s3121_s19 }
 0x4d0   :  { %v2784_v50 = vpop.eup %2783 }
 0x4d1   :  { %467 = vrot.lane.b32.xlu1 %v2784_v50, %s3121_s19 }
 0x541   :  { %v462_v51 = vpop.permute.xlu0 %461 }
 0x542   :  { %v3319_v52 = vmul.f32 %v2778_v35, %v462_v51  ;;  %v574_v35 = vrot.slane %v3311_v45, 6 }
 0x543   :  { %v468_v53 = vpop.permute.xlu1 %467 }
 0x544   :  { %491 = vrot.lane.b32.xlu0 %v3319_v52, %s3126_s3  ;;  %v3323_v54 = vmul.f32 %v2780_v38, %v468_v53 }
 0x546   :  { %495 = vrot.lane.b32.xlu1 %v3323_v54, %s3121_s19 }
 0x5b6   :  { %v492_v55 = vpop.permute.xlu0 %491 }
 0x5b8   :  { %v496_v56 = vpop.permute.xlu1 %495 }
 0x5b9   :  { %v498_v57 = vsel %vm132_vm0, %v492_v55, %v496_v56 }
 0x5ba   :  { %v504_v58 = vpack.c.bf16 %v498_v57, %v498_v57  ;;  %v643_v57 = vld [vmem:[#allocation3 + $0x8] sm:$0x3] }
 0x5bc   :  { %v506_v59 = vrot.slane %v504_v58, 1 }
 0x5be   :  { %2578 = vmatmul.mubr.msk.bf16.vlgmr.msra.gmra.mxu1 %vm236_vm1, %v506_v59  ;;  %v642_v59 = vld [vmem:[#allocation3 + $0x10] sm:$0xc0] }
 0x5bf   :  { %805 = vmatpush1.bf16.msra.mxu1 %v3213_v4  ;;  %828 = vmatprep.mubr.bf16.mxu1 %v3125_v0 }
 0x5c0   :  { %806 = vmatprep.subr.bf16.mxu1 %v3220_v6 }
 0x5c3   :  { %807 = vmatpush1.bf16.msra.mxu1 %v3225_v8 }
 0x5c4   :  { %808 = vmatprep.subr.bf16.mxu1 %v3228_v10 }
 0x5c7   :  { %809 = vmatpush1.bf16.msra.mxu1 %v3231_v11 }
 0x5c8   :  { %810 = vmatprep.subr.bf16.mxu1 %v3234_v12 }
 0x5cb   :  { %811 = vmatpush1.bf16.msra.mxu1 %v3237_v13 }
 0x5cc   :  { %1076 = vmatprep.subr.bf16.mxu1 %v3208_v2 }
 0x67e   :  { %v544_v60 = vpop.f32.mrf.mxu1 }
 0x67f   :  { %v553_v1 = vrot.slane %v544_v60, 4 }
 0x680   :  { %v546_v5 = vpop.f32.mrf.mxu1 }
 0x681   :  { %v557_v7 = vadd.f32 %v553_v1, %v499_v3  ;;  %v554_v14 = vrot.slane %v546_v5, 4  ;;  %v645_v1 = vrot.slane %v643_v57, 2 }
 0x682   :  { %v548_v17 = vpop.f32.mrf.mxu1 }
 0x683   :  { %2785 = vtanh.f32 %v557_v7  ;;  %v558_v19 = vadd.f32 %v554_v14, %v502_v9  ;;  %v2579_v23 = vmul.f32 -1.442695, %v557_v7 }
 0x684   :  { %v549_v20 = vpop.f32.mrf.mxu1 }
 0x685   :  { %2787 = vtanh.f32 %v558_v19  ;;  %v2580_v24 = vmul.f32 -1.442695, %v558_v19 }
 0x686   :  { %2789 = vpow2.f32 %v2579_v23 }
 0x687   :  { %2791 = vpow2.f32 %v2580_v24 }
 0x690   :  { %v2786_v21 = vpop.eup %2785 }
 0x691   :  { %578 = vrot.lane.b32.xlu0 %v2786_v21, %s3121_s19 }
 0x692   :  { %v2788_v22 = vpop.eup %2787 }
 0x693   :  { %592 = vrot.lane.b32.xlu1 %v2788_v22, %s3121_s19  ;;  %v2790_v25 = vpop.eup %2789 }
 0x694   :  { %v2792_v26 = vpop.eup %2791  ;;  %v565_v27 = vadd.f32 1.0, %v2790_v25 }
 0x695   :  { %v566_v28 = vadd.f32 1.0, %v2792_v26 }
 0x696   :  { %2793 = vrcp.f32 %v565_v27 }
 0x697   :  { %2795 = vrcp.f32 %v566_v28 }
 0x6a3   :  { %v2794_v29 = vpop.eup %2793 }
 0x6a4   :  { %v2796_v32 = vpop.eup %2795  ;;  %v576_v36 = vmul.f32 %v2794_v29, %v574_v35 }
 0x6a5   :  { %v590_v40 = vmul.f32 %v2796_v32, %v588_v37 }
 0x703   :  { %v579_v30 = vpop.permute.xlu0 %578 }
 0x704   :  { %v581_v31 = vmul.f32 %v2794_v29, %v579_v30 }
 0x705   :  { %v593_v33 = vpop.permute.xlu1 %592 }
 0x706   :  { %583 = vrot.lane.b32.xlu0 %v581_v31, %s3126_s3  ;;  %v595_v34 = vmul.f32 %v2796_v32, %v593_v33 }
 0x708   :  { %597 = vrot.lane.b32.xlu1 %v595_v34, %s3126_s3 }
 0x778   :  { %v584_v38 = vpop.permute.xlu0 %583 }
 0x779   :  { %v3344_v39 = vadd.f32 %v584_v38, %v576_v36 }
 0x77a   :  { %v598_v41 = vpop.permute.xlu1 %597 }
 0x77b   :  { %2797 = vtanh.f32 %v3344_v39  ;;  %v3347_v42 = vadd.f32 %v598_v41, %v590_v40  ;;  %v717_v30 = vrot.slane %v3344_v39, 6 }
 0x77d   :  { %2799 = vtanh.f32 %v3347_v42 }
 0x788   :  { %v2798_v43 = vpop.eup %2797 }
 0x789   :  { %603 = vrot.lane.b32.xlu0 %v2798_v43, %s3121_s19 }
 0x78a   :  { %v2800_v44 = vpop.eup %2799 }
 0x78b   :  { %609 = vrot.lane.b32.xlu1 %v2800_v44, %s3121_s19 }
 0x7fb   :  { %v604_v45 = vpop.permute.xlu0 %603 }
 0x7fc   :  { %v3352_v46 = vmul.f32 %v2794_v29, %v604_v45 }
 0x7fd   :  { %v610_v47 = vpop.permute.xlu1 %609 }
 0x7fe   :  { %634 = vrot.lane.b32.xlu0 %v3352_v46, %s3126_s3  ;;  %v3356_v48 = vmul.f32 %v2796_v32, %v610_v47  ;;  %v731_v32 = vrot.slane %v3347_v42, 6 }
 0x800   :  { %638 = vrot.lane.b32.xlu1 %v3356_v48, %s3121_s19 }
 0x870   :  { %v635_v49 = vpop.permute.xlu0 %634 }
 0x872   :  { %v639_v50 = vpop.permute.xlu1 %638 }
 0x873   :  { %v641_v51 = vsel %vm132_vm0, %v635_v49, %v639_v50 }
 0x874   :  { %v647_v53 = vpack.c.bf16 %v641_v51, %v641_v51  ;;  %v786_v51 = vld [vmem:[#allocation3] sm:$0xc0] }
 0x875   :  { %v788_v57 = vrot.slane %v786_v51, 6 }
 0x876   :  { %v649_v55 = vrot.slane %v647_v53, 2  ;;  %v785_v53 = vld [vmem:[#allocation3 + $0x18] sm:$0x3] }
 0x878   :  { %2584 = vmatmul.mubr.msk.bf16.vlgmr.msra.gmra.mxu0 %vm236_vm1, %v649_v55 }
 0x879   :  { %937 = vmatpush1.bf16.msra.mxu0 %v3213_v4  ;;  %960 = vmatprep.mubr.bf16.mxu0 %v3125_v0 }
 0x87a   :  { %938 = vmatprep.subr.bf16.mxu0 %v3220_v6 }
 0x87d   :  { %939 = vmatpush1.bf16.msra.mxu0 %v3225_v8 }
 0x87e   :  { %940 = vmatprep.subr.bf16.mxu0 %v3228_v10 }
 0x881   :  { %941 = vmatpush1.bf16.msra.mxu0 %v3231_v11 }
 0x882   :  { %942 = vmatprep.subr.bf16.mxu0 %v3234_v12 }
 0x885   :  { %943 = vmatpush1.bf16.msra.mxu0 %v3237_v13 }
 0x886   :  { %1217 = vmatprep.subr.bf16.mxu0 %v3208_v2 }
 0x938   :  { %v687_v56 = vpop.f32.mrf.mxu0 }
 0x939   :  { %v696_v58 = vrot.slane %v687_v56, 2 }
 0x93a   :  { %v689_v60 = vpop.f32.mrf.mxu0 }
 0x93b   :  { %v700_v62 = vadd.f32 %v696_v58, %v642_v59  ;;  %v697_v3 = vrot.slane %v689_v60, 2 }
 0x93c   :  { %v691_v5 = vpop.f32.mrf.mxu0 }
 0x93d   :  { %2801 = vtanh.f32 %v700_v62  ;;  %v701_v7 = vadd.f32 %v697_v3, %v645_v1  ;;  %v2585_v2 = vmul.f32 -1.442695, %v700_v62 }
 0x93e   :  { %v692_v9 = vpop.f32.mrf.mxu0 }
 0x93f   :  { %2803 = vtanh.f32 %v701_v7  ;;  %v2586_v19 = vmul.f32 -1.442695, %v701_v7 }
 0x940   :  { %2805 = vpow2.f32 %v2585_v2 }
 0x941   :  { %2807 = vpow2.f32 %v2586_v19 }
 0x94a   :  { %v2802_v14 = vpop.eup %2801 }
 0x94b   :  { %721 = vrot.lane.b32.xlu0 %v2802_v14, %s3121_s19 }
 0x94c   :  { %v2804_v17 = vpop.eup %2803 }
 0x94d   :  { %735 = vrot.lane.b32.xlu1 %v2804_v17, %s3121_s19  ;;  %v2806_v20 = vpop.eup %2805 }
 0x94e   :  { %v2808_v21 = vpop.eup %2807  ;;  %v708_v22 = vadd.f32 1.0, %v2806_v20 }
 0x94f   :  { %v709_v23 = vadd.f32 1.0, %v2808_v21 }
 0x950   :  { %2809 = vrcp.f32 %v708_v22 }
 0x951   :  { %2811 = vrcp.f32 %v709_v23 }
 0x95d   :  { %v2810_v24 = vpop.eup %2809 }
 0x95e   :  { %v2812_v27 = vpop.eup %2811  ;;  %v719_v31 = vmul.f32 %v2810_v24, %v717_v30 }
 0x95f   :  { %v733_v35 = vmul.f32 %v2812_v27, %v731_v32 }
 0x9bd   :  { %v722_v25 = vpop.permute.xlu0 %721 }
 0x9be   :  { %v724_v26 = vmul.f32 %v2810_v24, %v722_v25 }
 0x9bf   :  { %v736_v28 = vpop.permute.xlu1 %735 }
 0x9c0   :  { %726 = vrot.lane.b32.xlu0 %v724_v26, %s3126_s3  ;;  %v738_v29 = vmul.f32 %v2812_v27, %v736_v28 }
 0x9c2   :  { %740 = vrot.lane.b32.xlu1 %v738_v29, %s3126_s3 }
 0xa32   :  { %v727_v33 = vpop.permute.xlu0 %726 }
 0xa33   :  { %v3377_v34 = vadd.f32 %v727_v33, %v719_v31 }
 0xa34   :  { %v741_v36 = vpop.permute.xlu1 %740 }
 0xa35   :  { %2813 = vtanh.f32 %v3377_v34  ;;  %v3380_v37 = vadd.f32 %v741_v36, %v733_v35  ;;  %v854_v25 = vrot.slane %v3377_v34, 6 }
 0xa37   :  { %2815 = vtanh.f32 %v3380_v37 }
 0xa42   :  { %v2814_v38 = vpop.eup %2813 }
 0xa43   :  { %746 = vrot.lane.b32.xlu0 %v2814_v38, %s3121_s19 }
 0xa44   :  { %v2816_v40 = vpop.eup %2815 }
 0xa45   :  { %752 = vrot.lane.b32.xlu1 %v2816_v40, %s3121_s19 }
 0xab5   :  { %v747_v39 = vpop.permute.xlu0 %746 }
 0xab6   :  { %v3385_v41 = vmul.f32 %v2810_v24, %v747_v39 }
 0xab7   :  { %v753_v42 = vpop.permute.xlu1 %752 }
 0xab8   :  { %777 = vrot.lane.b32.xlu0 %v3385_v41, %s3126_s3  ;;  %v3389_v43 = vmul.f32 %v2812_v27, %v753_v42  ;;  %v868_v27 = vrot.slane %v3380_v37, 6 }
 0xaba   :  { %781 = vrot.lane.b32.xlu1 %v3389_v43, %s3121_s19 }
 0xb2a   :  { %v778_v44 = vpop.permute.xlu0 %777 }
 0xb2c   :  { %v782_v45 = vpop.permute.xlu1 %781 }
 0xb2d   :  { %v784_v47 = vsel %vm132_vm0, %v778_v44, %v782_v45 }
 0xb2e   :  { %v790_v49 = vpack.c.bf16 %v784_v47, %v784_v47  ;;  %v920_v47 = vld [vmem:[#allocation3] sm:$0x30] }
 0xb30   :  { %v792_v50 = vrot.slane %v790_v49, 3 }
 0xb32   :  { %2590 = vmatmul.mubr.msk.bf16.vlgmr.msra.gmra.mxu1 %vm236_vm1, %v792_v50  ;;  %v919_v50 = vld [vmem:[#allocation3 + $0x18] sm:$0xc] }
 0xb33   :  { %1077 = vmatpush1.bf16.msra.mxu1 %v3213_v4  ;;  %1100 = vmatprep.mubr.bf16.mxu1 %v3125_v0 }
 0xb34   :  { %1078 = vmatprep.subr.bf16.mxu1 %v3220_v6 }
 0xb37   :  { %1079 = vmatpush1.bf16.msra.mxu1 %v3225_v8 }
 0xb38   :  { %1080 = vmatprep.subr.bf16.mxu1 %v3228_v10 }
 0xb3b   :  { %1081 = vmatpush1.bf16.msra.mxu1 %v3231_v11 }
 0xb3c   :  { %1082 = vmatprep.subr.bf16.mxu1 %v3234_v12 }
 0xb3f   :  { %1083 = vmatpush1.bf16.msra.mxu1 %v3237_v13 }
 0xbf2   :  { %v830_v55 = vpop.f32.mrf.mxu1 }
 0xbf3   :  { %v837_v56 = vadd.f32 %v830_v55, %v785_v53  ;;  %v922_v53 = vrot.slane %v920_v47, 2 }
 0xbf4   :  { %v832_v58 = vpop.f32.mrf.mxu1 }
 0xbf5   :  { %2817 = vtanh.f32 %v837_v56  ;;  %v838_v59 = vadd.f32 %v832_v58, %v788_v57  ;;  %v2591_v5 = vmul.f32 -1.442695, %v837_v56 }
 0xbf6   :  { %v834_v60 = vpop.f32.mrf.mxu1 }
 0xbf7   :  { %2819 = vtanh.f32 %v838_v59  ;;  %v2592_v7 = vmul.f32 -1.442695, %v838_v59 }
 0xbf8   :  { %v835_v62 = vpop.f32.mrf.mxu1  ;;  %2821 = vpow2.f32 %v2591_v5 }
 0xbf9   :  { %2823 = vpow2.f32 %v2592_v7 }
 0xc02   :  { %v2818_v1 = vpop.eup %2817 }
 0xc03   :  { %858 = vrot.lane.b32.xlu0 %v2818_v1, %s3121_s19 }
 0xc04   :  { %v2820_v3 = vpop.eup %2819 }
 0xc05   :  { %872 = vrot.lane.b32.xlu1 %v2820_v3, %s3121_s19  ;;  %v2822_v9 = vpop.eup %2821 }
 0xc06   :  { %v2824_v14 = vpop.eup %2823  ;;  %v845_v17 = vadd.f32 1.0, %v2822_v9 }
 0xc07   :  { %v846_v2 = vadd.f32 1.0, %v2824_v14 }
 0xc08   :  { %2825 = vrcp.f32 %v845_v17 }
 0xc09   :  { %2827 = vrcp.f32 %v846_v2 }
 0xc15   :  { %v2826_v19 = vpop.eup %2825 }
 0xc16   :  { %v2828_v22 = vpop.eup %2827  ;;  %v856_v26 = vmul.f32 %v2826_v19, %v854_v25 }
 0xc17   :  { %v870_v30 = vmul.f32 %v2828_v22, %v868_v27 }
 0xc75   :  { %v859_v20 = vpop.permute.xlu0 %858 }
 0xc76   :  { %v861_v21 = vmul.f32 %v2826_v19, %v859_v20 }
 0xc77   :  { %v873_v23 = vpop.permute.xlu1 %872 }
 0xc78   :  { %863 = vrot.lane.b32.xlu0 %v861_v21, %s3126_s3  ;;  %v875_v24 = vmul.f32 %v2828_v22, %v873_v23 }
 0xc7a   :  { %877 = vrot.lane.b32.xlu1 %v875_v24, %s3126_s3 }
 0xcea   :  { %v864_v28 = vpop.permute.xlu0 %863 }
 0xceb   :  { %v3409_v29 = vadd.f32 %v864_v28, %v856_v26 }
 0xcec   :  { %v878_v31 = vpop.permute.xlu1 %877 }
 0xced   :  { %2829 = vtanh.f32 %v3409_v29  ;;  %v3412_v32 = vadd.f32 %v878_v31, %v870_v30  ;;  %v992_v14 = vrot.slane %v3409_v29, 6 }
 0xcef   :  { %2831 = vtanh.f32 %v3412_v32  ;;  %v1006_v2 = vrot.slane %v3412_v32, 6 }
 0xcfa   :  { %v2830_v33 = vpop.eup %2829 }
 0xcfb   :  { %883 = vrot.lane.b32.xlu0 %v2830_v33, %s3121_s19 }
 0xcfc   :  { %v2832_v35 = vpop.eup %2831 }
 0xcfd   :  { %889 = vrot.lane.b32.xlu1 %v2832_v35, %s3121_s19 }
 0xd6d   :  { %v884_v34 = vpop.permute.xlu0 %883 }
 0xd6e   :  { %v3417_v36 = vmul.f32 %v2826_v19, %v884_v34 }
 0xd6f   :  { %v890_v37 = vpop.permute.xlu1 %889 }
 0xd70   :  { %911 = vrot.lane.b32.xlu0 %v3417_v36, %s3126_s3  ;;  %v3421_v38 = vmul.f32 %v2828_v22, %v890_v37  ;;  %v1058_v37 = vld [vmem:[#allocation3] sm:$0xc] }
 0xd72   :  { %915 = vrot.lane.b32.xlu1 %v3421_v38, %s3121_s19 }
 0xde2   :  { %v912_v40 = vpop.permute.xlu0 %911 }
 0xde4   :  { %v916_v39 = vpop.permute.xlu1 %915 }
 0xde5   :  { %v918_v42 = vsel %vm132_vm0, %v912_v40, %v916_v39  ;;  %v1057_v39 = vld [vmem:[#allocation3 + $0x18] sm:$0x30] }
 0xde6   :  { %v924_v44 = vpack.c.bf16 %v918_v42, %v918_v42 }
 0xde8   :  { %2595 = vmatmul.mubr.msk.bf16.vlgmr.msra.gmra.mxu0 %vm236_vm1, %v924_v44 }
 0xde9   :  { %1218 = vmatpush1.bf16.msra.mxu0 %v3213_v4  ;;  %1241 = vmatprep.mubr.bf16.mxu0 %v3125_v0 }
 0xdea   :  { %1219 = vmatprep.subr.bf16.mxu0 %v3220_v6 }
 0xded   :  { %1220 = vmatpush1.bf16.msra.mxu0 %v3225_v8 }
 0xdee   :  { %1221 = vmatprep.subr.bf16.mxu0 %v3228_v10 }
 0xdf1   :  { %1222 = vmatpush1.bf16.msra.mxu0 %v3231_v11 }
 0xdf2   :  { %1223 = vmatprep.subr.bf16.mxu0 %v3234_v12 }
 0xdf5   :  { %1224 = vmatpush1.bf16.msra.mxu0 %v3237_v13 }
 0xea8   :  { %v962_v45 = vpop.f32.mrf.mxu0 }
 0xea9   :  { %v971_v49 = vrot.slane %v962_v45, 6  ;;  %v1060_v45 = vrot.slane %v1058_v37, 6 }
 0xeaa   :  { %v964_v51 = vpop.f32.mrf.mxu0 }
 0xeab   :  { %v975_v4 = vadd.f32 %v971_v49, %v919_v50  ;;  %v972_v55 = vrot.slane %v964_v51, 6 }
 0xeac   :  { %v966_v56 = vpop.f32.mrf.mxu0 }
 0xead   :  { %2833 = vtanh.f32 %v975_v4  ;;  %v976_v6 = vadd.f32 %v972_v55, %v922_v53  ;;  %v2596_v12 = vmul.f32 -1.442695, %v975_v4 }
 0xeae   :  { %v967_v8 = vpop.f32.mrf.mxu0 }
 0xeaf   :  { %2835 = vtanh.f32 %v976_v6  ;;  %v2597_v13 = vmul.f32 -1.442695, %v976_v6 }
 0xeb0   :  { %2837 = vpow2.f32 %v2596_v12 }
 0xeb1   :  { %2839 = vpow2.f32 %v2597_v13 }
 0xeba   :  { %v2834_v10 = vpop.eup %2833 }
 0xebb   :  { %996 = vrot.lane.b32.xlu0 %v2834_v10, %s3121_s19 }
 0xebc   :  { %v2836_v11 = vpop.eup %2835 }
 0xebd   :  { %1010 = vrot.lane.b32.xlu1 %v2836_v11, %s3121_s19  ;;  %v2838_v57 = vpop.eup %2837 }
 0xebe   :  { %v2840_v58 = vpop.eup %2839  ;;  %v983_v59 = vadd.f32 1.0, %v2838_v57 }
 0xebf   :  { %v984_v60 = vadd.f32 1.0, %v2840_v58 }
 0xec0   :  { %2841 = vrcp.f32 %v983_v59 }
 0xec1   :  { %2843 = vrcp.f32 %v984_v60 }
 0xecd   :  { %v2842_v62 = vpop.eup %2841 }
 0xece   :  { %v2844_v5 = vpop.eup %2843  ;;  %v994_v17 = vmul.f32 %v2842_v62, %v992_v14 }
 0xecf   :  { %v1008_v21 = vmul.f32 %v2844_v5, %v1006_v2 }
 0xf2d   :  { %v997_v1 = vpop.permute.xlu0 %996 }
 0xf2e   :  { %v999_v3 = vmul.f32 %v2842_v62, %v997_v1 }
 0xf2f   :  { %v1011_v7 = vpop.permute.xlu1 %1010 }
 0xf30   :  { %1001 = vrot.lane.b32.xlu0 %v999_v3, %s3126_s3  ;;  %v1013_v9 = vmul.f32 %v2844_v5, %v1011_v7 }
 0xf32   :  { %1015 = vrot.lane.b32.xlu1 %v1013_v9, %s3126_s3 }
 0xfa2   :  { %v1002_v19 = vpop.permute.xlu0 %1001 }
 0xfa3   :  { %v1004_v20 = vadd.f32 %v1002_v19, %v994_v17 }
 0xfa4   :  { %v1016_v22 = vpop.permute.xlu1 %1015 }
 0xfa5   :  { %2845 = vtanh.f32 %v1004_v20  ;;  %v1018_v23 = vadd.f32 %v1016_v22, %v1008_v21 }
 0xfa7   :  { %2847 = vtanh.f32 %v1018_v23  ;;  %v1146_v3 = vrot.slane %v1018_v23, 6 }
 0xfb2   :  { %v2846_v24 = vpop.eup %2845 }
 0xfb3   :  { %1021 = vrot.lane.b32.xlu0 %v2846_v24, %s3121_s19 }
 0xfb4   :  { %v2848_v25 = vpop.eup %2847 }
 0xfb5   :  { %1027 = vrot.lane.b32.xlu1 %v2848_v25, %s3121_s19 }
0x1025   :  { %v1022_v26 = vpop.permute.xlu0 %1021 }
0x1026   :  { %v3443_v27 = vmul.f32 %v2842_v62, %v1022_v26  ;;  %v1132_v62 = vrot.slane %v1004_v20, 6 }
0x1027   :  { %v1028_v28 = vpop.permute.xlu1 %1027 }
0x1028   :  { %1049 = vrot.lane.b32.xlu0 %v3443_v27, %s3126_s3  ;;  %v3447_v29 = vmul.f32 %v2844_v5, %v1028_v28 }
0x102a   :  { %1053 = vrot.lane.b32.xlu1 %v3447_v29, %s3121_s19 }
0x109a   :  { %v1050_v30 = vpop.permute.xlu0 %1049 }
0x109c   :  { %v1054_v31 = vpop.permute.xlu1 %1053 }
0x109d   :  { %v1056_v32 = vsel %vm132_vm0, %v1050_v30, %v1054_v31 }
0x109e   :  { %v1062_v33 = vpack.c.bf16 %v1056_v32, %v1056_v32  ;;  %v1199_v32 = vld [vmem:[#allocation3] sm:$0x3] }
0x10a0   :  { %v1064_v35 = vrot.slane %v1062_v33, 1 }
0x10a2   :  { %2600 = vmatmul.mubr.msk.bf16.vlgmr.msra.gmra.mxu1 %vm236_vm1, %v1064_v35  ;;  %v1198_v35 = vld [vmem:[#allocation3 + $0x18] sm:$0xc0] }
0x10a3   :  { %1432 = vmatprep.mubr.bf16.mxu1 %v3125_v0 }
0x1162   :  { %v1102_v34 = vpop.f32.mrf.mxu1 }
0x1163   :  { %v1111_v40 = vrot.slane %v1102_v34, 4 }
0x1164   :  { %v1104_v42 = vpop.f32.mrf.mxu1 }
0x1165   :  { %v1115_v44 = vadd.f32 %v1111_v40, %v1057_v39  ;;  %v1112_v47 = vrot.slane %v1104_v42, 4  ;;  %v1201_v40 = vrot.slane %v1199_v32, 2  ;;  %v2727_v32 = vld [vmem:[#allocation9 + $0x20] ss:$8 sps:$4 sm:$0xff]  }
0x1166   :  { %v1106_v49 = vpop.f32.mrf.mxu1 }
0x1167   :  { %2849 = vtanh.f32 %v1115_v44  ;;  %v1116_v50 = vadd.f32 %v1112_v47, %v1060_v45  ;;  %v2601_v55 = vmul.f32 -1.442695, %v1115_v44 }
0x1168   :  { %v1107_v51 = vpop.f32.mrf.mxu1 }
0x1169   :  { %2851 = vtanh.f32 %v1116_v50  ;;  %v2602_v56 = vmul.f32 -1.442695, %v1116_v50 }
0x116a   :  { %2853 = vpow2.f32 %v2601_v55 }
0x116b   :  { %2855 = vpow2.f32 %v2602_v56 }
0x1174   :  { %v2850_v4 = vpop.eup %2849 }
0x1175   :  { %1136 = vrot.lane.b32.xlu0 %v2850_v4, %s3121_s19 }
0x1176   :  { %v2852_v53 = vpop.eup %2851 }
0x1177   :  { %1150 = vrot.lane.b32.xlu1 %v2852_v53, %s3121_s19  ;;  %v2854_v6 = vpop.eup %2853 }
0x1178   :  { %v2856_v8 = vpop.eup %2855  ;;  %v1123_v10 = vadd.f32 1.0, %v2854_v6 }
0x1179   :  { %v1124_v11 = vadd.f32 1.0, %v2856_v8 }
0x117a   :  { %2857 = vrcp.f32 %v1123_v10 }
0x117b   :  { %2859 = vrcp.f32 %v1124_v11 }
0x1187   :  { %v2858_v12 = vpop.eup %2857 }
0x1188   :  { %v2860_v58 = vpop.eup %2859  ;;  %v1134_v1 = vmul.f32 %v2858_v12, %v1132_v62 }
0x1189   :  { %v1148_v9 = vmul.f32 %v2860_v58, %v1146_v3 }
0x11e7   :  { %v1137_v13 = vpop.permute.xlu0 %1136 }
0x11e8   :  { %v1139_v57 = vmul.f32 %v2858_v12, %v1137_v13 }
0x11e9   :  { %v1151_v59 = vpop.permute.xlu1 %1150 }
0x11ea   :  { %1141 = vrot.lane.b32.xlu0 %v1139_v57, %s3126_s3  ;;  %v1153_v60 = vmul.f32 %v2860_v58, %v1151_v59 }
0x11ec   :  { %1155 = vrot.lane.b32.xlu1 %v1153_v60, %s3126_s3 }
0x125c   :  { %v1142_v5 = vpop.permute.xlu0 %1141 }
0x125d   :  { %v1144_v7 = vadd.f32 %v1142_v5, %v1134_v1 }
0x125e   :  { %v1156_v14 = vpop.permute.xlu1 %1155 }
0x125f   :  { %2861 = vtanh.f32 %v1144_v7  ;;  %v1158_v17 = vadd.f32 %v1156_v14, %v1148_v9  ;;  %v1273_v57 = vrot.slane %v1144_v7, 6  ;;  %v2660_v9 = vpack.c.bf16 %v3290_v63, %v3290_v63 }
0x1260   :  { %v2662_v7 = vpack.c.bf16 %v3323_v54, %v3323_v54  ;;  %v2661_v63 = vpack.c.bf16 %v3319_v52, %v3319_v52  ;;  %v2666_v54 = vpack.c.bf16 %v3389_v43, %v3389_v43  ;;  %v2665_v52 = vpack.c.bf16 %v3385_v41, %v3385_v41 }
0x1261   :  { %2863 = vtanh.f32 %v1158_v17  ;;  %v1287_v59 = vrot.slane %v1158_v17, 6  ;;  %v2659_v17 = vpack.c.bf16 %v3286_v61, %v3286_v61  ;;  %v2663_v61 = vpack.c.bf16 %v3352_v46, %v3352_v46 }
0x1262   :  { %v2670_v43 = vpack.c.bf16 %v3447_v29, %v3447_v29  ;;  %v2667_v46 = vpack.c.bf16 %v3417_v36, %v3417_v36  ;;  %v2669_v41 = vpack.c.bf16 %v3443_v27, %v3443_v27  ;;  %v2738_v27 = vld [vmem:[#allocation9 + $0x4] ss:$8 sps:$4 sm:$0xff]  }
0x126c   :  { %v2862_v2 = vpop.eup %2861 }
0x126d   :  { %1161 = vrot.lane.b32.xlu0 %v2862_v2, %s3121_s19 }
0x126e   :  { %v2864_v19 = vpop.eup %2863 }
0x126f   :  { %1167 = vrot.lane.b32.xlu1 %v2864_v19, %s3121_s19  ;;  %v344_v19 = vrot.slane %v2660_v9, 5 }
0x12df   :  { %v1162_v21 = vpop.permute.xlu0 %1161 }
0x12e0   :  { %v3460_v22 = vmul.f32 %v2858_v12, %v1162_v21  ;;  %v484_v21 = vrot.slane %v2662_v7, 7 }
0x12e1   :  { %v1168_v24 = vpop.permute.xlu1 %1167 }
0x12e2   :  { %1190 = vrot.lane.b32.xlu0 %v3460_v22, %s3126_s3  ;;  %v3464_v20 = vmul.f32 %v2860_v58, %v1168_v24  ;;  %v2664_v24 = vpack.c.bf16 %v3356_v48, %v3356_v48  ;;  %v2668_v48 = vpack.c.bf16 %v3421_v38, %v3421_v38  ;;  %v1043_v38 = vrot.slane %v2670_v43, 7 }
0x12e3   :  { %v2671_v36 = vpack.c.bf16 %v3460_v22, %v3460_v22  ;;  %v2736_v22 = vld [vmem:[#allocation9] ss:$8 sps:$4 sm:$0xff]  }
0x12e4   :  { %1194 = vrot.lane.b32.xlu1 %v3464_v20, %s3121_s19 }
0x1354   :  { %v1191_v23 = vpop.permute.xlu0 %1190 }
0x1356   :  { %v1195_v25 = vpop.permute.xlu1 %1194 }
0x1357   :  { %v1197_v26 = vsel %vm132_vm0, %v1191_v23, %v1195_v25  ;;  %v2583_v23 = vrot.slane %v2664_v24, 9  ;;  %v2589_v25 = vrot.slane %v2666_v54, 11  ;;  %v1340_v24 = vld [vmem:[%s3787_s6] sm:$0x3] }
0x1358   :  { %v1203_v28 = vpack.c.bf16 %v1197_v26, %v1197_v26  ;;  %v905_v26 = vrot.slane %v2668_v48, 5 }
0x135a   :  { %v1205_v30 = vrot.slane %v1203_v28, 2  ;;  %v2724_v28 = vld [vmem:[#allocation9 + $0x30] ss:$8 sps:$4 sm:$0xff]  }
0x135c   :  { %2606 = vmatmul.mubr.msk.bf16.vlgmr.msra.gmra.mxu0 %vm236_vm1, %v1205_v30  ;;  %v2726_v30 = vld [vmem:[#allocation9 + $0x34] ss:$8 sps:$4 sm:$0xff]  }
0x135d   :  { %1532 = vmatprep.mubr.bf16.mxu0 %v3125_v0  ;;  %1408 = vmatprep.subr.bf16.mxu1 %v2726_v30 }
0x135e   :  { %1409 = vmatpush1.bf16.msra.mxu1 %v2724_v28 }
0x141c   :  { %v1243_v31 = vpop.f32.mrf.mxu0 }
0x141d   :  { %v1252_v33 = vrot.slane %v1243_v31, 2  ;;  %v2672_v31 = vpack.c.bf16 %v3464_v20, %v3464_v20  ;;  %v2732_v20 = vld [vmem:[#allocation9 + $0x14] ss:$8 sps:$4 sm:$0xff]  }
0x141e   :  { %v1245_v34 = vpop.f32.mrf.mxu0 }
0x141f   :  { %v1256_v37 = vadd.f32 %v1252_v33, %v1198_v35  ;;  %v1253_v39 = vrot.slane %v1245_v34, 2  ;;  %v2605_v29 = vrot.slane %v2672_v31, 9  ;;  %v2729_v33 = vld [vmem:[#allocation9 + $0x24] ss:$8 sps:$4 sm:$0xff]   ;;  %v2730_v35 = vld [vmem:[#allocation9 + $0x10] ss:$8 sps:$4 sm:$0xff]  }
0x1420   :  { %v1247_v42 = vpop.f32.mrf.mxu0  ;;  %1410 = vmatprep.subr.bf16.mxu1 %v2729_v33  ;;  %v3527_v34 = vld [vmem:[#allocation10 + $0x34] ss:$8 sps:$4 sm:$0xff]  }
0x1421   :  { %2865 = vtanh.f32 %v1256_v37  ;;  %v1257_v44 = vadd.f32 %v1253_v39, %v1201_v40  ;;  %v2607_v50 = vmul.f32 -1.442695, %v1256_v37  ;;  %1411 = vmatpush1.bf16.msra.mxu1 %v2727_v32  ;;  %v3529_v37 = vld [vmem:[#allocation10 + $0x30] ss:$8 sps:$4 sm:$0xff]   ;;  %v3531_v40 = vld [vmem:[#allocation10 + $0x24] ss:$8 sps:$4 sm:$0xff]   ;;  %1508 = vmatprep.subr.bf16.mxu0 %v3527_v34 }
0x1422   :  { %v1248_v45 = vpop.f32.mrf.mxu0  ;;  %1412 = vmatprep.subr.bf16.mxu1 %v2732_v20  ;;  %1509 = vmatpush1.bf16.msra.mxu0 %v3529_v37  ;;  %v3535_v42 = vld [vmem:[#allocation10 + $0x20] ss:$8 sps:$4 sm:$0xff]  }
0x1423   :  { %2867 = vtanh.f32 %v1257_v44  ;;  %v2608_v51 = vmul.f32 -1.442695, %v1257_v44  ;;  %1510 = vmatprep.subr.bf16.mxu0 %v3531_v40 }
0x1424   :  { %2869 = vpow2.f32 %v2607_v50 }
0x1425   :  { %2871 = vpow2.f32 %v2608_v51  ;;  %1413 = vmatpush1.bf16.msra.mxu1 %v2730_v35 }
0x1426   :  { %1414 = vmatprep.subr.bf16.mxu1 %v2738_v27  ;;  %1511 = vmatpush1.bf16.msra.mxu0 %v3535_v42 }
0x1429   :  { %1415 = vmatpush1.bf16.msra.mxu1 %v2736_v22 }
0x142a   :  { %1617 = vmatprep.subr.bf16.mxu1 %v3527_v34 }
0x142e   :  { %v2866_v47 = vpop.eup %2865 }
0x142f   :  { %1277 = vrot.lane.b32.xlu1 %v2866_v47, %s3121_s19 }
0x1430   :  { %v2868_v49 = vpop.eup %2867 }
0x1431   :  { %1291 = vrot.lane.b32.xlu0 %v2868_v49, %s3121_s19  ;;  %v2870_v4 = vpop.eup %2869 }
0x1432   :  { %v2872_v53 = vpop.eup %2871  ;;  %v1264_v55 = vadd.f32 1.0, %v2870_v4  ;;  %v3544_v4 = vld [vmem:[#allocation10 + $0x14] ss:$8 sps:$4 sm:$0xff]  }
0x1433   :  { %v1265_v56 = vadd.f32 1.0, %v2872_v53  ;;  %v3546_v53 = vld [vmem:[#allocation10 + $0x10] ss:$8 sps:$4 sm:$0xff]   ;;  %1512 = vmatprep.subr.bf16.mxu0 %v3544_v4 }
0x1434   :  { %2873 = vrcp.f32 %v1264_v55  ;;  %v3548_v55 = vld [vmem:[#allocation10 + $0x4] ss:$8 sps:$4 sm:$0xff]   ;;  %1513 = vmatpush1.bf16.msra.mxu0 %v3546_v53 }
0x1435   :  { %2875 = vrcp.f32 %v1265_v56  ;;  %1514 = vmatprep.subr.bf16.mxu0 %v3548_v55 }
0x1441   :  { %v3473_v6 = vpop.eup %2873 }
0x1442   :  { %v3476_v11 = vpop.eup %2875  ;;  %v1275_v58 = vmul.f32 %v3473_v6, %v1273_v57 }
0x1443   :  { %v1289_v1 = vmul.f32 %v3476_v11, %v1287_v59 }
0x14a1   :  { %v1278_v8 = vpop.permute.xlu1 %1277 }
0x14a2   :  { %v1280_v10 = vmul.f32 %v3473_v6, %v1278_v8 }
0x14a3   :  { %v1292_v12 = vpop.permute.xlu0 %1291 }
0x14a4   :  { %1282 = vrot.lane.b32.xlu1 %v1280_v10, %s3126_s3  ;;  %v1294_v13 = vmul.f32 %v3476_v11, %v1292_v12  ;;  %v3554_v10 = vld [vmem:[#allocation10] ss:$8 sps:$4 sm:$0xff]  }
0x14a5   :  { %1515 = vmatpush1.bf16.msra.mxu0 %v3554_v10 }
0x14a6   :  { %1296 = vrot.lane.b32.xlu0 %v1294_v13, %s3126_s3  ;;  %1740 = vmatprep.subr.bf16.mxu0 %v3527_v34 }
0x14a8   :  { %1533 = vmatmul.mubr.bf16.vlgmr.msra.gmra.mxu0 %v3125_v0 }
0x14a9   :  { %1741 = vmatpush1.bf16.msra.mxu0 %v3529_v37  ;;  %1764 = vmatprep.mubr.bf16.mxu0 %v3125_v0 }
0x14aa   :  { %1742 = vmatprep.subr.bf16.mxu0 %v3531_v40 }
0x14ad   :  { %1743 = vmatpush1.bf16.msra.mxu0 %v3535_v42 }
0x14ae   :  { %1744 = vmatprep.subr.bf16.mxu0 %v3544_v4 }
0x14b1   :  { %1745 = vmatpush1.bf16.msra.mxu0 %v3546_v53 }
0x14b2   :  { %1746 = vmatprep.subr.bf16.mxu0 %v3548_v55 }
0x14b5   :  { %1747 = vmatpush1.bf16.msra.mxu0 %v3554_v10 }
0x14b6   :  { %1986 = vmatprep.subr.bf16.mxu0 %v3527_v34 }
0x1516   :  { %v1283_v60 = vpop.permute.xlu1 %1282 }
0x1517   :  { %v1285_v62 = vadd.f32 %v1283_v60, %v1275_v58 }
0x1518   :  { %v1297_v3 = vpop.permute.xlu0 %1296 }
0x1519   :  { %2877 = vtanh.f32 %v1285_v62  ;;  %v1299_v5 = vadd.f32 %v1297_v3, %v1289_v1 }
0x151b   :  { %2879 = vtanh.f32 %v1299_v5 }
0x1526   :  { %v2878_v14 = vpop.eup %2877 }
0x1527   :  { %1302 = vrot.lane.b32.xlu1 %v2878_v14, %s3121_s19 }
0x1528   :  { %v2880_v2 = vpop.eup %2879 }
0x1529   :  { %1308 = vrot.lane.b32.xlu0 %v2880_v2, %s3121_s19 }
0x152b   :  { %345 = vrot.lane.b32.xlu1 %v344_v19, %s3121_s19 }
0x152d   :  { %335 = vrot.lane.b32.xlu0 %v2659_v17, %s3126_s3 }
0x152f   :  { %485 = vrot.lane.b32.xlu1 %v484_v21, %s3121_s19 }
0x1531   :  { %475 = vrot.lane.b32.xlu0 %v2661_v63, %s3126_s3  ;;  %v1345_v63 = vrot.slane %v1340_v24, %v99_v16 }
0x1533   :  { %628 = vrot.lane.b32.xlu1 %v2583_v23, %s3121_s19  ;;  %v1349_v23 = vrot.slane %v1340_v24, %v103_v18 }
0x1535   :  { %617 = vrot.lane.b32.xlu0 %v2663_v61, %s3126_s3 }
0x1537   :  { %771 = vrot.lane.b32.xlu1 %v2589_v25, %s3121_s19 }
0x1539   :  { %760 = vrot.lane.b32.xlu0 %v2665_v52, %s3126_s3 }
0x153b   :  { %906 = vrot.lane.b32.xlu1 %v905_v26, %s3121_s19 }
0x153d   :  { %897 = vrot.lane.b32.xlu0 %v2667_v46, %s3126_s3 }
0x153f   :  { %1044 = vrot.lane.b32.xlu1 %v1043_v38, %s3121_s19 }
0x1541   :  { %1035 = vrot.lane.b32.xlu0 %v2669_v41, %s3126_s3 }
0x1543   :  { %1185 = vrot.lane.b32.xlu1 %v2605_v29, %s3121_s19 }
0x1545   :  { %1175 = vrot.lane.b32.xlu0 %v2671_v36, %s3126_s3 }
0x1568   :  { %v1534_v19 = vpop.f32.mrf.mxu0 }
0x156a   :  { %v1536_v7 = vpop.f32.mrf.mxu0 }
0x156c   :  { %v1538_v17 = vpop.f32.mrf.mxu0 }
0x156e   :  { %v1539_v21 = vpop.f32.mrf.mxu0 }
0x1599   :  { %v1303_v39 = vpop.permute.xlu1 %1302 }
0x159a   :  { %v1305_v44 = vmul.f32 %v3473_v6, %v1303_v39 }
0x159b   :  { %v1309_v47 = vpop.permute.xlu0 %1308 }
0x159c   :  { %v2673_v45 = vpack.c.bf16 %v1305_v44, %v1305_v44  ;;  %v1311_v49 = vmul.f32 %v3476_v11, %v1309_v47 }
0x159d   :  { %v346_v50 = vpop.permute.xlu1 %345 }
0x159e   :  { %349 = vst.msk [vmem:[#allocation2 + $0x4] sm:$0x8] %vm348_vm2, %v346_v50  ;;  %1316 = vrot.lane.b32.xlu0 %v2673_v45, %s3126_s3  ;;  %v2674_v51 = vpack.c.bf16 %v1311_v49, %v1311_v49 }
0x159f   :  { %v336_v56 = vpop.permute.xlu0 %335 }
0x15a0   :  { %339 = vst.msk [vmem:[#allocation2] sm:$0x1] %vm338_vm3, %v336_v56  ;;  %v2611_v8 = vrot.slane %v2674_v51, 11 }
0x15a1   :  { %v486_v6 = vpop.permute.xlu1 %485 }
0x15a2   :  { %489 = vst.msk [vmem:[#allocation2 + $0x4] sm:$0x4] %vm488_vm4, %v486_v6  ;;  %1326 = vrot.lane.b32.xlu1 %v2611_v8, %s3121_s19 }
0x15a3   :  { %v476_v11 = vpop.permute.xlu0 %475 }
0x15a4   :  { %479 = vst.msk [vmem:[#allocation2] sm:$0x2] %vm478_vm5, %v476_v11 }
0x15a5   :  { %v629_v12 = vpop.permute.xlu1 %628 }
0x15a6   :  { %632 = vst.msk [vmem:[#allocation2 + $0x4] sm:$0x2] %vm631_vm6, %v629_v12 }
0x15a7   :  { %v618_v13 = vpop.permute.xlu0 %617 }
0x15a8   :  { %621 = vst.msk [vmem:[#allocation2] sm:$0x4] %vm620_vm7, %v618_v13 }
0x15a9   :  { %v772_v57 = vpop.permute.xlu1 %771 }
0x15aa   :  { %775 = vst.msk [vmem:[#allocation2 + $0x4] sm:$0x1] %vm774_vm8, %v772_v57 }
0x15ab   :  { %v761_v58 = vpop.permute.xlu0 %760 }
0x15ac   :  { %764 = vst.msk [vmem:[#allocation2] sm:$0x8] %vm763_vm9, %v761_v58 }
0x15ad   :  { %v907_v59 = vpop.permute.xlu1 %906 }
0x15ae   :  { %909 = vst.msk [vmem:[#allocation2] sm:$0x8] %vm348_vm2, %v907_v59 }
0x15af   :  { %v898_v60 = vpop.permute.xlu0 %897 }
0x15b0   :  { %900 = vst.msk [vmem:[#allocation2 + $0x4] sm:$0x1] %vm338_vm3, %v898_v60 }
0x15b1   :  { %v1045_v62 = vpop.permute.xlu1 %1044 }
0x15b2   :  { %1047 = vst.msk [vmem:[#allocation2] sm:$0x4] %vm488_vm4, %v1045_v62 }
0x15b3   :  { %v1036_v1 = vpop.permute.xlu0 %1035 }
0x15b4   :  { %1038 = vst.msk [vmem:[#allocation2 + $0x4] sm:$0x2] %vm478_vm5, %v1036_v1 }
0x15b5   :  { %v1186_v3 = vpop.permute.xlu1 %1185 }
0x15b6   :  { %1188 = vst.msk [vmem:[#allocation2] sm:$0x2] %vm631_vm6, %v1186_v3 }
0x15b7   :  { %v1176_v5 = vpop.permute.xlu0 %1175 }
0x15b8   :  { %1178 = vst.msk [vmem:[#allocation2 + $0x4] sm:$0x4] %vm620_vm7, %v1176_v5 }
0x1610   :  { %v1317_v9 = vpop.permute.xlu0 %1316 }
0x1611   :  { %1319 = vst.msk [vmem:[#allocation2 + $0x4] sm:$0x8] %vm763_vm9, %v1317_v9 }
0x1614   :  { %v1327_v14 = vpop.permute.xlu1 %1326 }
0x1615   :  { %1329 = vst.msk [vmem:[#allocation2] sm:$0x1] %vm774_vm8, %v1327_v14 }
0x161c   :  { %v2742_v2 = vld [vmem:[#allocation2] sm:$0xff]  }
0x161d   :  { %2621 = vmatmul.mubr.msk.bf16.vlgmr.msra.gmra.mxu1 %vm236_vm1, %v2742_v2 }
0x161e   :  { %1618 = vmatpush1.bf16.msra.mxu1 %v3529_v37  ;;  %1641 = vmatprep.mubr.bf16.mxu1 %v3125_v0 }
0x161f   :  { %1619 = vmatprep.subr.bf16.mxu1 %v3531_v40 }
0x1622   :  { %1620 = vmatpush1.bf16.msra.mxu1 %v3535_v42 }
0x1623   :  { %1621 = vmatprep.subr.bf16.mxu1 %v3544_v4 }
0x1626   :  { %1622 = vmatpush1.bf16.msra.mxu1 %v3546_v53 }
0x1627   :  { %1623 = vmatprep.subr.bf16.mxu1 %v3548_v55 }
0x162a   :  { %1624 = vmatpush1.bf16.msra.mxu1 %v3554_v10 }
0x162b   :  { %1863 = vmatprep.subr.bf16.mxu1 %v3527_v34 }
0x16dd   :  { %v1434_v54 = vpop.f32.mrf.mxu1 }
0x16de   :  { %v1435_v61 = vadd.f32 %v1434_v54, %v1345_v63 }
0x16df   :  { %v1436_v25 = vpop.f32.mrf.mxu1 }
0x16e0   :  { %1443 = vst [vmem:[#allocation3 + $0x10] sm:$0xff] %v1435_v61  ;;  %v1437_v48 = vadd.f32 %v1436_v25, %v1349_v23 }
0x16e1   :  { %v1438_v52 = vpop.f32.mrf.mxu1 }
0x16e2   :  { %1444 = vst [vmem:[#allocation3] sm:$0xff] %v1437_v48  ;;  %v1439_v26 = vadd.f32 %v1438_v52, %v1345_v63 }
0x16e3   :  { %v1440_v43 = vpop.f32.mrf.mxu1 }
0x16e4   :  { %1445 = vst [vmem:[#allocation3 + $0x18] sm:$0xff] %v1439_v26  ;;  %v1441_v28 = vadd.f32 %v1440_v43, %v1349_v23 }
0x16e6   :  { %1446 = vst [vmem:[#allocation3 + $0x8] sm:$0xff] %v1441_v28 }
0x16e7   :  { %v1455_v30 = vld [vmem:[#allocation3 + $0x10] sm:$0x3]  ;;  %v1600_v14 = vld [vmem:[#allocation3 + $0x10] sm:$0xc] }
0x16e8   :  { %v1541_v46 = vadd.f32 %v1534_v19, %v1455_v30 }
0x16ea   :  { %2881 = vtanh.f32 %v1541_v46  ;;  %v2630_v41 = vmul.f32 -1.442695, %v1541_v46 }
0x16ed   :  { %v1456_v38 = vld [vmem:[#allocation3 + $0x8] sm:$0xc0]  ;;  %v1601_v5 = vld [vmem:[#allocation3 + $0x8] sm:$0x30] }
0x16ee   :  { %v1458_v16 = vrot.slane %v1456_v38, 6 }
0x16f0   :  { %v1542_v31 = vadd.f32 %v1536_v7, %v1458_v16  ;;  %v1603_v7 = vrot.slane %v1601_v5, 2 }
0x16f2   :  { %2883 = vtanh.f32 %v1542_v31  ;;  %v2631_v29 = vmul.f32 -1.442695, %v1542_v31 }
0x16f3   :  { %2885 = vpow2.f32 %v2630_v41 }
0x16f4   :  { %2887 = vpow2.f32 %v2631_v29 }
0x16f7   :  { %v2882_v15 = vpop.eup %2881 }
0x16f8   :  { %1559 = vrot.lane.b32.xlu0 %v2882_v15, %s3121_s19 }
0x16ff   :  { %v2884_v18 = vpop.eup %2883 }
0x1700   :  { %1570 = vrot.lane.b32.xlu1 %v2884_v18, %s3121_s19  ;;  %v2886_v36 = vpop.eup %2885 }
0x1701   :  { %v1549_v32 = vadd.f32 1.0, %v2886_v36  ;;  %v2888_v33 = vpop.eup %2887 }
0x1702   :  { %v1550_v20 = vadd.f32 1.0, %v2888_v33 }
0x1703   :  { %2889 = vrcp.f32 %v1549_v32 }
0x1704   :  { %2891 = vrcp.f32 %v1550_v20 }
0x1710   :  { %v2890_v35 = vpop.eup %2889 }
0x1711   :  { %v2892_v39 = vpop.eup %2891  ;;  %v1557_v47 = vmul.f32 0.0, %v2890_v35 }
0x1712   :  { %v1568_v51 = vmul.f32 0.0, %v2892_v39 }
0x176a   :  { %v1560_v27 = vpop.permute.xlu0 %1559 }
0x176b   :  { %v1562_v22 = vmul.f32 %v2890_v35, %v1560_v27 }
0x176d   :  { %1564 = vrot.lane.b32.xlu0 %v1562_v22, %s3126_s3 }
0x1772   :  { %v1571_v44 = vpop.permute.xlu1 %1570 }
0x1773   :  { %v1573_v45 = vmul.f32 %v2892_v39, %v1571_v44 }
0x1775   :  { %1575 = vrot.lane.b32.xlu1 %v1573_v45, %s3126_s3 }
0x17df   :  { %v1565_v49 = vpop.permute.xlu0 %1564 }
0x17e0   :  { %v3604_v50 = vadd.f32 %v1565_v49, %v1557_v47 }
0x17e2   :  { %2893 = vtanh.f32 %v3604_v50  ;;  %v1673_v15 = vrot.slane %v3604_v50, 6 }
0x17e7   :  { %v1576_v56 = vpop.permute.xlu1 %1575 }
0x17e8   :  { %v3607_v6 = vadd.f32 %v1576_v56, %v1568_v51 }
0x17ea   :  { %2895 = vtanh.f32 %v3607_v6  ;;  %v1687_v41 = vrot.slane %v3607_v6, 6 }
0x17ef   :  { %v2894_v8 = vpop.eup %2893 }
0x17f0   :  { %1581 = vrot.lane.b32.xlu0 %v2894_v8, %s3121_s19  ;;  %v1722_v8 = vld [vmem:[#allocation3 + $0x8] sm:$0xc] }
0x17f7   :  { %v2896_v11 = vpop.eup %2895 }
0x17f8   :  { %1587 = vrot.lane.b32.xlu1 %v2896_v11, %s3121_s19 }
0x1862   :  { %v1582_v12 = vpop.permute.xlu0 %1581 }
0x1863   :  { %v1584_v13 = vmul.f32 %v2890_v35, %v1582_v12  ;;  %v1721_v12 = vld [vmem:[#allocation3 + $0x10] sm:$0x30] }
0x1865   :  { %1592 = vrot.lane.b32.xlu0 %v1584_v13, %s3126_s3 }
0x186a   :  { %v1588_v57 = vpop.permute.xlu1 %1587 }
0x186b   :  { %v1590_v58 = vmul.f32 %v2892_v39, %v1588_v57 }
0x186d   :  { %1596 = vrot.lane.b32.xlu1 %v1590_v58, %s3121_s19  ;;  %v1724_v58 = vrot.slane %v1722_v8, 6 }
0x18d7   :  { %v1593_v59 = vpop.permute.xlu0 %1592 }
0x18df   :  { %v1597_v60 = vpop.permute.xlu1 %1596 }
0x18e0   :  { %v1599_v62 = vsel %vm132_vm0, %v1593_v59, %v1597_v60 }
0x18e1   :  { %v1605_v1 = vpack.c.bf16 %v1599_v62, %v1599_v62 }
0x18e3   :  { %2632 = vmatmul.mubr.msk.bf16.vlgmr.msra.gmra.mxu1 %vm236_vm1, %v1605_v1 }
0x18e4   :  { %1864 = vmatpush1.bf16.msra.mxu1 %v3529_v37  ;;  %1887 = vmatprep.mubr.bf16.mxu1 %v3125_v0 }
0x18e5   :  { %1865 = vmatprep.subr.bf16.mxu1 %v3531_v40 }
0x18e8   :  { %1866 = vmatpush1.bf16.msra.mxu1 %v3535_v42 }
0x18e9   :  { %1867 = vmatprep.subr.bf16.mxu1 %v3544_v4 }
0x18ec   :  { %1868 = vmatpush1.bf16.msra.mxu1 %v3546_v53 }
0x18ed   :  { %1869 = vmatprep.subr.bf16.mxu1 %v3548_v55 }
0x18f0   :  { %1870 = vmatpush1.bf16.msra.mxu1 %v3554_v10 }
0x18f1   :  { %2101 = vmatprep.subr.bf16.mxu1 %v3527_v34 }
0x19a3   :  { %v1643_v3 = vpop.f32.mrf.mxu1 }
0x19a4   :  { %v1652_v9 = vrot.slane %v1643_v3, 6 }
0x19a5   :  { %v1645_v2 = vpop.f32.mrf.mxu1 }
0x19a6   :  { %v1656_v19 = vadd.f32 %v1652_v9, %v1600_v14  ;;  %v1653_v17 = vrot.slane %v1645_v2, 6 }
0x19a7   :  { %v1647_v21 = vpop.f32.mrf.mxu1 }
0x19a8   :  { %2897 = vtanh.f32 %v1656_v19  ;;  %v1657_v24 = vadd.f32 %v1653_v17, %v1603_v7  ;;  %v2633_v61 = vmul.f32 -1.442695, %v1656_v19 }
0x19a9   :  { %v1648_v63 = vpop.f32.mrf.mxu1 }
0x19aa   :  { %2899 = vtanh.f32 %v1657_v24  ;;  %v2634_v25 = vmul.f32 -1.442695, %v1657_v24 }
0x19ab   :  { %2901 = vpow2.f32 %v2633_v61 }
0x19ac   :  { %2903 = vpow2.f32 %v2634_v25 }
0x19b5   :  { %v2898_v23 = vpop.eup %2897 }
0x19b6   :  { %1677 = vrot.lane.b32.xlu0 %v2898_v23, %s3121_s19 }
0x19b7   :  { %v2900_v54 = vpop.eup %2899 }
0x19b8   :  { %1691 = vrot.lane.b32.xlu1 %v2900_v54, %s3121_s19  ;;  %v2902_v48 = vpop.eup %2901 }
0x19b9   :  { %v2904_v52 = vpop.eup %2903  ;;  %v1664_v26 = vadd.f32 1.0, %v2902_v48 }
0x19ba   :  { %v1665_v43 = vadd.f32 1.0, %v2904_v52 }
0x19bb   :  { %2905 = vrcp.f32 %v1664_v26 }
0x19bc   :  { %2907 = vrcp.f32 %v1665_v43 }
0x19c8   :  { %v2906_v28 = vpop.eup %2905 }
0x19c9   :  { %v2908_v38 = vpop.eup %2907  ;;  %v1675_v18 = vmul.f32 %v2906_v28, %v1673_v15 }
0x19ca   :  { %v1689_v32 = vmul.f32 %v2908_v38, %v1687_v41 }
0x1a28   :  { %v1678_v30 = vpop.permute.xlu0 %1677 }
0x1a29   :  { %v1680_v46 = vmul.f32 %v2906_v28, %v1678_v30 }
0x1a2a   :  { %v1692_v16 = vpop.permute.xlu1 %1691 }
0x1a2b   :  { %1682 = vrot.lane.b32.xlu0 %v1680_v46, %s3126_s3  ;;  %v1694_v31 = vmul.f32 %v2908_v38, %v1692_v16 }
0x1a2d   :  { %1696 = vrot.lane.b32.xlu1 %v1694_v31, %s3126_s3 }
0x1a9d   :  { %v1683_v29 = vpop.permute.xlu0 %1682 }
0x1a9e   :  { %v3631_v36 = vadd.f32 %v1683_v29, %v1675_v18 }
0x1a9f   :  { %v1697_v33 = vpop.permute.xlu1 %1696 }
0x1aa0   :  { %2909 = vtanh.f32 %v3631_v36  ;;  %v3634_v20 = vadd.f32 %v1697_v33, %v1689_v32  ;;  %v1796_v25 = vrot.slane %v3631_v36, 6 }
0x1aa2   :  { %2911 = vtanh.f32 %v3634_v20  ;;  %v1810_v52 = vrot.slane %v3634_v20, 6 }
0x1aad   :  { %v2910_v35 = vpop.eup %2909 }
0x1aae   :  { %1702 = vrot.lane.b32.xlu0 %v2910_v35, %s3121_s19 }
0x1aaf   :  { %v2912_v27 = vpop.eup %2911 }
0x1ab0   :  { %1708 = vrot.lane.b32.xlu1 %v2912_v27, %s3121_s19  ;;  %v1845_v27 = vld [vmem:[#allocation3 + $0x8] sm:$0x3] }
0x1b20   :  { %v1703_v22 = vpop.permute.xlu0 %1702 }
0x1b21   :  { %v1705_v39 = vmul.f32 %v2906_v28, %v1703_v22 }
0x1b22   :  { %v1709_v44 = vpop.permute.xlu1 %1708 }
0x1b23   :  { %1713 = vrot.lane.b32.xlu0 %v1705_v39, %s3126_s3  ;;  %v1711_v45 = vmul.f32 %v2908_v38, %v1709_v44  ;;  %v1844_v39 = vld [vmem:[#allocation3 + $0x10] sm:$0xc0] }
0x1b25   :  { %1717 = vrot.lane.b32.xlu1 %v1711_v45, %s3121_s19 }
0x1b95   :  { %v1714_v47 = vpop.permute.xlu0 %1713 }
0x1b97   :  { %v1718_v49 = vpop.permute.xlu1 %1717 }
0x1b98   :  { %v1720_v50 = vsel %vm132_vm0, %v1714_v47, %v1718_v49  ;;  %v1847_v47 = vrot.slane %v1845_v27, 2 }
0x1b99   :  { %v1726_v51 = vpack.c.bf16 %v1720_v50, %v1720_v50 }
0x1b9b   :  { %v1728_v56 = vrot.slane %v1726_v51, 1 }
0x1b9d   :  { %2635 = vmatmul.mubr.msk.bf16.vlgmr.msra.gmra.mxu0 %vm236_vm1, %v1728_v56 }
0x1b9e   :  { %1987 = vmatpush1.bf16.msra.mxu0 %v3529_v37  ;;  %2010 = vmatprep.mubr.bf16.mxu0 %v3125_v0 }
0x1b9f   :  { %1988 = vmatprep.subr.bf16.mxu0 %v3531_v40 }
0x1ba2   :  { %1989 = vmatpush1.bf16.msra.mxu0 %v3535_v42 }
0x1ba3   :  { %1990 = vmatprep.subr.bf16.mxu0 %v3544_v4 }
0x1ba6   :  { %1991 = vmatpush1.bf16.msra.mxu0 %v3546_v53 }
0x1ba7   :  { %1992 = vmatprep.subr.bf16.mxu0 %v3548_v55 }
0x1baa   :  { %1993 = vmatpush1.bf16.msra.mxu0 %v3554_v10 }
0x1bab   :  { %2224 = vmatprep.subr.bf16.mxu0 %v3527_v34 }
0x1c5d   :  { %v1766_v6 = vpop.f32.mrf.mxu0 }
0x1c5e   :  { %v1775_v11 = vrot.slane %v1766_v6, 4 }
0x1c5f   :  { %v1768_v13 = vpop.f32.mrf.mxu0 }
0x1c60   :  { %v1779_v57 = vadd.f32 %v1775_v11, %v1721_v12  ;;  %v1776_v59 = vrot.slane %v1768_v13, 4 }
0x1c61   :  { %v1770_v60 = vpop.f32.mrf.mxu0 }
0x1c62   :  { %2913 = vtanh.f32 %v1779_v57  ;;  %v1780_v62 = vadd.f32 %v1776_v59, %v1724_v58  ;;  %v2636_v9 = vmul.f32 -1.442695, %v1779_v57 }
0x1c63   :  { %v1771_v1 = vpop.f32.mrf.mxu0 }
0x1c64   :  { %2915 = vtanh.f32 %v1780_v62  ;;  %v2637_v14 = vmul.f32 -1.442695, %v1780_v62 }
0x1c65   :  { %2917 = vpow2.f32 %v2636_v9 }
0x1c66   :  { %2919 = vpow2.f32 %v2637_v14 }
0x1c6f   :  { %v2914_v3 = vpop.eup %2913 }
0x1c70   :  { %1800 = vrot.lane.b32.xlu0 %v2914_v3, %s3121_s19 }
0x1c71   :  { %v2916_v5 = vpop.eup %2915 }
0x1c72   :  { %1814 = vrot.lane.b32.xlu1 %v2916_v5, %s3121_s19  ;;  %v2918_v2 = vpop.eup %2917 }
0x1c73   :  { %v2920_v19 = vpop.eup %2919  ;;  %v1787_v7 = vadd.f32 1.0, %v2918_v2 }
0x1c74   :  { %v1788_v17 = vadd.f32 1.0, %v2920_v19 }
0x1c75   :  { %2921 = vrcp.f32 %v1787_v7 }
0x1c76   :  { %2923 = vrcp.f32 %v1788_v17 }
0x1c82   :  { %v2922_v21 = vpop.eup %2921 }
0x1c83   :  { %v2924_v23 = vpop.eup %2923  ;;  %v1798_v48 = vmul.f32 %v2922_v21, %v1796_v25 }
0x1c84   :  { %v1812_v28 = vmul.f32 %v2924_v23, %v1810_v52 }
0x1ce2   :  { %v1801_v24 = vpop.permute.xlu0 %1800 }
0x1ce3   :  { %v1803_v63 = vmul.f32 %v2922_v21, %v1801_v24 }
0x1ce4   :  { %v1815_v54 = vpop.permute.xlu1 %1814 }
0x1ce5   :  { %1805 = vrot.lane.b32.xlu0 %v1803_v63, %s3126_s3  ;;  %v1817_v61 = vmul.f32 %v2924_v23, %v1815_v54 }
0x1ce7   :  { %1819 = vrot.lane.b32.xlu1 %v1817_v61, %s3126_s3 }
0x1d57   :  { %v1806_v26 = vpop.permute.xlu0 %1805 }
0x1d58   :  { %v3658_v43 = vadd.f32 %v1806_v26, %v1798_v48 }
0x1d59   :  { %v1820_v30 = vpop.permute.xlu1 %1819 }
0x1d5a   :  { %2925 = vtanh.f32 %v3658_v43  ;;  %v3661_v46 = vadd.f32 %v1820_v30, %v1812_v28  ;;  %v1919_v9 = vrot.slane %v3658_v43, 6 }
0x1d5c   :  { %2927 = vtanh.f32 %v3661_v46  ;;  %v1933_v2 = vrot.slane %v3661_v46, 6  ;;  %v1968_v46 = vld [vmem:[#allocation3] sm:$0xc0] }
0x1d67   :  { %v2926_v38 = vpop.eup %2925 }
0x1d68   :  { %1825 = vrot.lane.b32.xlu0 %v2926_v38, %s3121_s19  ;;  %v1967_v38 = vld [vmem:[#allocation3 + $0x18] sm:$0x3] }
0x1d69   :  { %v2928_v16 = vpop.eup %2927 }
0x1d6a   :  { %1831 = vrot.lane.b32.xlu1 %v2928_v16, %s3121_s19 }
0x1dda   :  { %v1826_v31 = vpop.permute.xlu0 %1825 }
0x1ddb   :  { %v1828_v15 = vmul.f32 %v2922_v21, %v1826_v31 }
0x1ddc   :  { %v1832_v18 = vpop.permute.xlu1 %1831 }
0x1ddd   :  { %1836 = vrot.lane.b32.xlu0 %v1828_v15, %s3126_s3  ;;  %v1834_v41 = vmul.f32 %v2924_v23, %v1832_v18  ;;  %v1970_v15 = vrot.slane %v1968_v46, 6 }
0x1ddf   :  { %1840 = vrot.lane.b32.xlu1 %v1834_v41, %s3121_s19 }
0x1e4f   :  { %v1837_v29 = vpop.permute.xlu0 %1836 }
0x1e51   :  { %v1841_v36 = vpop.permute.xlu1 %1840 }
0x1e52   :  { %v1843_v32 = vsel %vm132_vm0, %v1837_v29, %v1841_v36 }
0x1e53   :  { %v1849_v33 = vpack.c.bf16 %v1843_v32, %v1843_v32 }
0x1e55   :  { %v1851_v20 = vrot.slane %v1849_v33, 2 }
0x1e57   :  { %2638 = vmatmul.mubr.msk.bf16.vlgmr.msra.gmra.mxu1 %vm236_vm1, %v1851_v20 }
0x1e58   :  { %2102 = vmatpush1.bf16.msra.mxu1 %v3529_v37  ;;  %2125 = vmatprep.mubr.bf16.mxu1 %v3125_v0 }
0x1e59   :  { %2103 = vmatprep.subr.bf16.mxu1 %v3531_v40 }
0x1e5c   :  { %2104 = vmatpush1.bf16.msra.mxu1 %v3535_v42 }
0x1e5d   :  { %2105 = vmatprep.subr.bf16.mxu1 %v3544_v4 }
0x1e60   :  { %2106 = vmatpush1.bf16.msra.mxu1 %v3546_v53 }
0x1e61   :  { %2107 = vmatprep.subr.bf16.mxu1 %v3548_v55 }
0x1e64   :  { %2108 = vmatpush1.bf16.msra.mxu1 %v3554_v10 }
0x1e65   :  { %2347 = vmatprep.subr.bf16.mxu1 %v3527_v34 }
0x1f17   :  { %v1889_v35 = vpop.f32.mrf.mxu1 }
0x1f18   :  { %v1898_v22 = vrot.slane %v1889_v35, 2 }
0x1f19   :  { %v1891_v44 = vpop.f32.mrf.mxu1 }
0x1f1a   :  { %v1902_v45 = vadd.f32 %v1898_v22, %v1844_v39  ;;  %v1899_v49 = vrot.slane %v1891_v44, 2 }
0x1f1b   :  { %v1893_v50 = vpop.f32.mrf.mxu1 }
0x1f1c   :  { %2929 = vtanh.f32 %v1902_v45  ;;  %v1903_v51 = vadd.f32 %v1899_v49, %v1847_v47  ;;  %v2639_v34 = vmul.f32 -1.442695, %v1902_v45 }
0x1f1d   :  { %v1894_v56 = vpop.f32.mrf.mxu1 }
0x1f1e   :  { %2931 = vtanh.f32 %v1903_v51  ;;  %v2640_v11 = vmul.f32 -1.442695, %v1903_v51 }
0x1f1f   :  { %2933 = vpow2.f32 %v2639_v34 }
0x1f20   :  { %2935 = vpow2.f32 %v2640_v11 }
0x1f29   :  { %v2930_v6 = vpop.eup %2929 }
0x1f2a   :  { %1923 = vrot.lane.b32.xlu0 %v2930_v6, %s3121_s19 }
0x1f2b   :  { %v2932_v8 = vpop.eup %2931 }
0x1f2c   :  { %1937 = vrot.lane.b32.xlu1 %v2932_v8, %s3121_s19  ;;  %v2934_v12 = vpop.eup %2933 }
0x1f2d   :  { %v2936_v13 = vpop.eup %2935  ;;  %v1910_v57 = vadd.f32 1.0, %v2934_v12 }
0x1f2e   :  { %v1911_v58 = vadd.f32 1.0, %v2936_v13 }
0x1f2f   :  { %2937 = vrcp.f32 %v1910_v57 }
0x1f30   :  { %2939 = vrcp.f32 %v1911_v58 }
0x1f3c   :  { %v2938_v59 = vpop.eup %2937 }
0x1f3d   :  { %v2940_v1 = vpop.eup %2939  ;;  %v1921_v14 = vmul.f32 %v2938_v59, %v1919_v9 }
0x1f3e   :  { %v1935_v17 = vmul.f32 %v2940_v1, %v1933_v2 }
0x1f9c   :  { %v1924_v60 = vpop.permute.xlu0 %1923 }
0x1f9d   :  { %v1926_v62 = vmul.f32 %v2938_v59, %v1924_v60 }
0x1f9e   :  { %v1938_v3 = vpop.permute.xlu1 %1937 }
0x1f9f   :  { %1928 = vrot.lane.b32.xlu0 %v1926_v62, %s3126_s3  ;;  %v1940_v5 = vmul.f32 %v2940_v1, %v1938_v3 }
0x1fa1   :  { %1942 = vrot.lane.b32.xlu1 %v1940_v5, %s3126_s3 }
0x2011   :  { %v1929_v19 = vpop.permute.xlu0 %1928 }
0x2012   :  { %v3685_v7 = vadd.f32 %v1929_v19, %v1921_v14 }
0x2013   :  { %v1943_v21 = vpop.permute.xlu1 %1942 }
0x2014   :  { %2941 = vtanh.f32 %v3685_v7  ;;  %v3688_v24 = vadd.f32 %v1943_v21, %v1935_v17  ;;  %v2036_v6 = vrot.slane %v3685_v7, 6  ;;  %v2085_v17 = vld [vmem:[#allocation3] sm:$0x30] }
0x2016   :  { %2943 = vtanh.f32 %v3688_v24  ;;  %v2050_v34 = vrot.slane %v3688_v24, 6  ;;  %v2084_v24 = vld [vmem:[#allocation3 + $0x18] sm:$0xc] }
0x2021   :  { %v2942_v63 = vpop.eup %2941 }
0x2022   :  { %1948 = vrot.lane.b32.xlu0 %v2942_v63, %s3121_s19 }
0x2023   :  { %v2944_v23 = vpop.eup %2943 }
0x2024   :  { %1954 = vrot.lane.b32.xlu1 %v2944_v23, %s3121_s19  ;;  %v2087_v23 = vrot.slane %v2085_v17, 2 }
0x2094   :  { %v1949_v54 = vpop.permute.xlu0 %1948 }
0x2095   :  { %v1951_v61 = vmul.f32 %v2938_v59, %v1949_v54 }
0x2096   :  { %v1955_v25 = vpop.permute.xlu1 %1954 }
0x2097   :  { %1959 = vrot.lane.b32.xlu0 %v1951_v61, %s3126_s3  ;;  %v1957_v48 = vmul.f32 %v2940_v1, %v1955_v25 }
0x2099   :  { %1963 = vrot.lane.b32.xlu1 %v1957_v48, %s3121_s19 }
0x2109   :  { %v1960_v52 = vpop.permute.xlu0 %1959 }
0x210b   :  { %v1964_v26 = vpop.permute.xlu1 %1963 }
0x210c   :  { %v1966_v43 = vsel %vm132_vm0, %v1960_v52, %v1964_v26 }
0x210d   :  { %v1972_v28 = vpack.c.bf16 %v1966_v43, %v1966_v43 }
0x210f   :  { %v1974_v30 = vrot.slane %v1972_v28, 3 }
0x2111   :  { %2641 = vmatmul.mubr.msk.bf16.vlgmr.msra.gmra.mxu0 %vm236_vm1, %v1974_v30 }
0x2112   :  { %2225 = vmatpush1.bf16.msra.mxu0 %v3529_v37  ;;  %2248 = vmatprep.mubr.bf16.mxu0 %v3125_v0 }
0x2113   :  { %2226 = vmatprep.subr.bf16.mxu0 %v3531_v40 }
0x2116   :  { %2227 = vmatpush1.bf16.msra.mxu0 %v3535_v42 }
0x2117   :  { %2228 = vmatprep.subr.bf16.mxu0 %v3544_v4 }
0x211a   :  { %2229 = vmatpush1.bf16.msra.mxu0 %v3546_v53 }
0x211b   :  { %2230 = vmatprep.subr.bf16.mxu0 %v3548_v55 }
0x211e   :  { %2231 = vmatpush1.bf16.msra.mxu0 %v3554_v10 }
0x21d1   :  { %v2012_v16 = vpop.f32.mrf.mxu0 }
0x21d2   :  { %v2019_v31 = vadd.f32 %v2012_v16, %v1967_v38 }
0x21d3   :  { %v2014_v18 = vpop.f32.mrf.mxu0 }
0x21d4   :  { %2945 = vtanh.f32 %v2019_v31  ;;  %v2020_v41 = vadd.f32 %v2014_v18, %v1970_v15  ;;  %v2642_v20 = vmul.f32 -1.442695, %v2019_v31 }
0x21d5   :  { %v2016_v29 = vpop.f32.mrf.mxu0 }
0x21d6   :  { %2947 = vtanh.f32 %v2020_v41  ;;  %v2643_v35 = vmul.f32 -1.442695, %v2020_v41 }
0x21d7   :  { %v2017_v36 = vpop.f32.mrf.mxu0  ;;  %2949 = vpow2.f32 %v2642_v20 }
0x21d8   :  { %2951 = vpow2.f32 %v2643_v35 }
0x21e1   :  { %v2946_v32 = vpop.eup %2945 }
0x21e2   :  { %2040 = vrot.lane.b32.xlu0 %v2946_v32, %s3121_s19 }
0x21e3   :  { %v2948_v33 = vpop.eup %2947 }
0x21e4   :  { %2054 = vrot.lane.b32.xlu1 %v2948_v33, %s3121_s19  ;;  %v2950_v27 = vpop.eup %2949 }
0x21e5   :  { %v2952_v22 = vpop.eup %2951  ;;  %v2027_v39 = vadd.f32 1.0, %v2950_v27 }
0x21e6   :  { %v2028_v44 = vadd.f32 1.0, %v2952_v22 }
0x21e7   :  { %2953 = vrcp.f32 %v2027_v39 }
0x21e8   :  { %2955 = vrcp.f32 %v2028_v44 }
0x21f4   :  { %v2954_v45 = vpop.eup %2953 }
0x21f5   :  { %v2956_v50 = vpop.eup %2955  ;;  %v2038_v8 = vmul.f32 %v2954_v45, %v2036_v6 }
0x21f6   :  { %v2052_v13 = vmul.f32 %v2956_v50, %v2050_v34 }
0x2254   :  { %v2041_v47 = vpop.permute.xlu0 %2040 }
0x2255   :  { %v2043_v49 = vmul.f32 %v2954_v45, %v2041_v47 }
0x2256   :  { %v2055_v51 = vpop.permute.xlu1 %2054 }
0x2257   :  { %2045 = vrot.lane.b32.xlu0 %v2043_v49, %s3126_s3  ;;  %v2057_v56 = vmul.f32 %v2956_v50, %v2055_v51 }
0x2259   :  { %2059 = vrot.lane.b32.xlu1 %v2057_v56, %s3126_s3  ;;  %v2206_v56 = vld [vmem:[#allocation3] sm:$0xc] }
0x22c9   :  { %v2046_v11 = vpop.permute.xlu0 %2045 }
0x22ca   :  { %v3711_v12 = vadd.f32 %v2046_v11, %v2038_v8  ;;  %v2205_v8 = vld [vmem:[#allocation3 + $0x18] sm:$0x30] }
0x22cb   :  { %v2060_v57 = vpop.permute.xlu1 %2059 }
0x22cc   :  { %2957 = vtanh.f32 %v3711_v12  ;;  %v3714_v58 = vadd.f32 %v2060_v57, %v2052_v13  ;;  %v2157_v16 = vrot.slane %v3711_v12, 6  ;;  %v2208_v12 = vrot.slane %v2206_v56, 6 }
0x22ce   :  { %2959 = vtanh.f32 %v3714_v58  ;;  %v2171_v15 = vrot.slane %v3714_v58, 6 }
0x22d9   :  { %v2958_v59 = vpop.eup %2957 }
0x22da   :  { %2065 = vrot.lane.b32.xlu0 %v2958_v59, %s3121_s19 }
0x22db   :  { %v2960_v60 = vpop.eup %2959 }
0x22dc   :  { %2071 = vrot.lane.b32.xlu1 %v2960_v60, %s3121_s19 }
0x234c   :  { %v2066_v62 = vpop.permute.xlu0 %2065 }
0x234d   :  { %v2068_v1 = vmul.f32 %v2954_v45, %v2066_v62 }
0x234e   :  { %v2072_v3 = vpop.permute.xlu1 %2071 }
0x234f   :  { %2076 = vrot.lane.b32.xlu0 %v2068_v1, %s3126_s3  ;;  %v2074_v5 = vmul.f32 %v2956_v50, %v2072_v3 }
0x2351   :  { %2080 = vrot.lane.b32.xlu1 %v2074_v5, %s3121_s19 }
0x23c1   :  { %v2077_v9 = vpop.permute.xlu0 %2076 }
0x23c3   :  { %v2081_v14 = vpop.permute.xlu1 %2080 }
0x23c4   :  { %v2083_v2 = vsel %vm132_vm0, %v2077_v9, %v2081_v14 }
0x23c5   :  { %v2089_v19 = vpack.c.bf16 %v2083_v2, %v2083_v2 }
0x23c7   :  { %2644 = vmatmul.mubr.msk.bf16.vlgmr.msra.gmra.mxu1 %vm236_vm1, %v2089_v19 }
0x23c8   :  { %2348 = vmatpush1.bf16.msra.mxu1 %v3529_v37  ;;  %2371 = vmatprep.mubr.bf16.mxu1 %v3125_v0 }
0x23c9   :  { %2349 = vmatprep.subr.bf16.mxu1 %v3531_v40 }
0x23cc   :  { %2350 = vmatpush1.bf16.msra.mxu1 %v3535_v42 }
0x23cd   :  { %2351 = vmatprep.subr.bf16.mxu1 %v3544_v4 }
0x23d0   :  { %2352 = vmatpush1.bf16.msra.mxu1 %v3546_v53 }
0x23d1   :  { %2353 = vmatprep.subr.bf16.mxu1 %v3548_v55 }
0x23d4   :  { %2354 = vmatpush1.bf16.msra.mxu1 %v3554_v10 }
0x2487   :  { %v2127_v7 = vpop.f32.mrf.mxu1 }
0x2488   :  { %v2136_v21 = vrot.slane %v2127_v7, 6 }
0x2489   :  { %v2129_v63 = vpop.f32.mrf.mxu1 }
0x248a   :  { %v2140_v37 = vadd.f32 %v2136_v21, %v2084_v24  ;;  %v2137_v0 = vrot.slane %v2129_v63, 6 }
0x248b   :  { %v2131_v54 = vpop.f32.mrf.mxu1 }
0x248c   :  { %2961 = vtanh.f32 %v2140_v37  ;;  %v2141_v40 = vadd.f32 %v2137_v0, %v2087_v23  ;;  %v2645_v55 = vmul.f32 -1.442695, %v2140_v37 }
0x248d   :  { %v2132_v42 = vpop.f32.mrf.mxu1 }
0x248e   :  { %2963 = vtanh.f32 %v2141_v40  ;;  %v2646_v10 = vmul.f32 -1.442695, %v2141_v40 }
0x248f   :  { %2965 = vpow2.f32 %v2645_v55 }
0x2490   :  { %2967 = vpow2.f32 %v2646_v10 }
0x2499   :  { %v2962_v4 = vpop.eup %2961 }
0x249a   :  { %2161 = vrot.lane.b32.xlu0 %v2962_v4, %s3121_s19 }
0x249b   :  { %v2964_v53 = vpop.eup %2963 }
0x249c   :  { %2175 = vrot.lane.b32.xlu1 %v2964_v53, %s3121_s19  ;;  %v2966_v61 = vpop.eup %2965 }
0x249d   :  { %v2968_v25 = vpop.eup %2967  ;;  %v2148_v48 = vadd.f32 1.0, %v2966_v61 }
0x249e   :  { %v2149_v52 = vadd.f32 1.0, %v2968_v25 }
0x249f   :  { %2969 = vrcp.f32 %v2148_v48 }
0x24a0   :  { %2971 = vrcp.f32 %v2149_v52 }
0x24ac   :  { %v2970_v26 = vpop.eup %2969 }
0x24ad   :  { %v2972_v30 = vpop.eup %2971  ;;  %v2159_v31 = vmul.f32 %v2970_v26, %v2157_v16  ;;  %v2329_v16 = vld [vmem:[#allocation3] sm:$0x3] }
0x24ae   :  { %v2173_v29 = vmul.f32 %v2972_v30, %v2171_v15  ;;  %v2328_v15 = vld [vmem:[#allocation3 + $0x18] sm:$0xc0] }
0x250c   :  { %v2162_v43 = vpop.permute.xlu0 %2161 }
0x250d   :  { %v2164_v28 = vmul.f32 %v2970_v26, %v2162_v43 }
0x250e   :  { %v2176_v46 = vpop.permute.xlu1 %2175 }
0x250f   :  { %2166 = vrot.lane.b32.xlu0 %v2164_v28, %s3126_s3  ;;  %v2178_v38 = vmul.f32 %v2972_v30, %v2176_v46 }
0x2511   :  { %2180 = vrot.lane.b32.xlu1 %v2178_v38, %s3126_s3 }
0x2581   :  { %v2167_v18 = vpop.permute.xlu0 %2166 }
0x2582   :  { %v2169_v41 = vadd.f32 %v2167_v18, %v2159_v31 }
0x2583   :  { %v2181_v36 = vpop.permute.xlu1 %2180 }
0x2584   :  { %2973 = vtanh.f32 %v2169_v41  ;;  %v2183_v32 = vadd.f32 %v2181_v36, %v2173_v29  ;;  %v2280_v37 = vrot.slane %v2169_v41, 6  ;;  %v2331_v29 = vrot.slane %v2329_v16, 2 }
0x2586   :  { %2975 = vtanh.f32 %v2183_v32  ;;  %v2294_v0 = vrot.slane %v2183_v32, 6 }
0x2591   :  { %v2974_v33 = vpop.eup %2973 }
0x2592   :  { %2186 = vrot.lane.b32.xlu0 %v2974_v33, %s3121_s19 }
0x2593   :  { %v2976_v20 = vpop.eup %2975 }
0x2594   :  { %2192 = vrot.lane.b32.xlu1 %v2976_v20, %s3121_s19 }
0x2604   :  { %v2187_v35 = vpop.permute.xlu0 %2186 }
0x2605   :  { %v2189_v27 = vmul.f32 %v2970_v26, %v2187_v35 }
0x2606   :  { %v2193_v22 = vpop.permute.xlu1 %2192 }
0x2607   :  { %2197 = vrot.lane.b32.xlu0 %v2189_v27, %s3126_s3  ;;  %v2195_v39 = vmul.f32 %v2972_v30, %v2193_v22 }
0x2609   :  { %2201 = vrot.lane.b32.xlu1 %v2195_v39, %s3121_s19 }
0x2679   :  { %v2198_v44 = vpop.permute.xlu0 %2197 }
0x267b   :  { %v2202_v45 = vpop.permute.xlu1 %2201 }
0x267c   :  { %v2204_v47 = vsel %vm132_vm0, %v2198_v44, %v2202_v45 }
0x267d   :  { %v2210_v49 = vpack.c.bf16 %v2204_v47, %v2204_v47 }
0x267f   :  { %v2212_v50 = vrot.slane %v2210_v49, 1 }
0x2681   :  { %2647 = vmatmul.mubr.msk.bf16.vlgmr.msra.gmra.mxu0 %vm236_vm1, %v2212_v50 }
0x2741   :  { %v2250_v51 = vpop.f32.mrf.mxu0 }
0x2742   :  { %v2259_v6 = vrot.slane %v2250_v51, 4 }
0x2743   :  { %v2252_v34 = vpop.f32.mrf.mxu0 }
0x2744   :  { %v2263_v11 = vadd.f32 %v2259_v6, %v2205_v8  ;;  %v2260_v13 = vrot.slane %v2252_v34, 4 }
0x2745   :  { %v2254_v57 = vpop.f32.mrf.mxu0 }
0x2746   :  { %2977 = vtanh.f32 %v2263_v11  ;;  %v2264_v58 = vadd.f32 %v2260_v13, %v2208_v12  ;;  %v2648_v1 = vmul.f32 -1.442695, %v2263_v11 }
0x2747   :  { %v2255_v59 = vpop.f32.mrf.mxu0 }
0x2748   :  { %2979 = vtanh.f32 %v2264_v58  ;;  %v2649_v3 = vmul.f32 -1.442695, %v2264_v58 }
0x2749   :  { %2981 = vpow2.f32 %v2648_v1  ;;  %v2749_v1 = vld [vmem:[%s3788_s7 + $0x18] sm:$0xff]  }
0x274a   :  { %2983 = vpow2.f32 %v2649_v3  ;;  %v3127_v3 = vmov 0.0  }
0x274b   :  { %2680 = vmatprep.subr.bf16.mxu0 %v3127_v3  ;;  %2688 = vmatprep.mubr.msk.bf16.mxu0 %vm3128_vm10, %v3127_v3 }
0x274c   :  { %2681 = vmatpush3.bf16.msra.mxu0 %v2749_v1 }
0x274d   :  { %2682 = vmatprep.subr.bf16.mxu0 %v3127_v3 }
0x2753   :  { %v2978_v60 = vpop.eup %2977 }
0x2754   :  { %2284 = vrot.lane.b32.xlu0 %v2978_v60, %s3121_s19 }
0x2755   :  { %v2980_v62 = vpop.eup %2979 }
0x2756   :  { %2298 = vrot.lane.b32.xlu1 %v2980_v62, %s3121_s19  ;;  %v2982_v5 = vpop.eup %2981 }
0x2757   :  { %v2984_v9 = vpop.eup %2983  ;;  %v2271_v14 = vadd.f32 1.0, %v2982_v5  ;;  %v2750_v5 = vld [vmem:[%s3788_s7 + $0x10] sm:$0xff]  }
0x2758   :  { %v2272_v2 = vadd.f32 1.0, %v2984_v9  ;;  %2683 = vmatpush3.bf16.msra.mxu0 %v2750_v5 }
0x2759   :  { %2985 = vrcp.f32 %v2271_v14  ;;  %2684 = vmatprep.subr.bf16.mxu0 %v3127_v3 }
0x275a   :  { %2987 = vrcp.f32 %v2272_v2  ;;  %v2751_v2 = vld [vmem:[%s3788_s7 + $0x8] sm:$0xff]  }
0x275c   :  { %2685 = vmatpush3.bf16.msra.mxu0 %v2751_v2 }
0x275d   :  { %2686 = vmatprep.subr.bf16.mxu0 %v3127_v3 }
0x2766   :  { %v2986_v19 = vpop.eup %2985 }
0x2767   :  { %v2988_v21 = vpop.eup %2987  ;;  %v2282_v23 = vmul.f32 %v2986_v19, %v2280_v37 }
0x2768   :  { %v2296_v42 = vmul.f32 %v2988_v21, %v2294_v0 }
0x27c6   :  { %v2285_v7 = vpop.permute.xlu0 %2284 }
0x27c7   :  { %v2287_v17 = vmul.f32 %v2986_v19, %v2285_v7 }
0x27c8   :  { %v2299_v24 = vpop.permute.xlu1 %2298 }
0x27c9   :  { %2289 = vrot.lane.b32.xlu0 %v2287_v17, %s3126_s3  ;;  %v2301_v63 = vmul.f32 %v2988_v21, %v2299_v24 }
0x27cb   :  { %2303 = vrot.lane.b32.xlu1 %v2301_v63, %s3126_s3 }
0x283b   :  { %v2290_v54 = vpop.permute.xlu0 %2289 }
0x283c   :  { %v2292_v40 = vadd.f32 %v2290_v54, %v2282_v23 }
0x283d   :  { %v2304_v4 = vpop.permute.xlu1 %2303 }
0x283e   :  { %2989 = vtanh.f32 %v2292_v40  ;;  %v2306_v53 = vadd.f32 %v2304_v4, %v2296_v42  ;;  %v2403_v11 = vrot.slane %v2292_v40, 6  ;;  %v2653_v40 = vld [vmem:[%s3789_s8] ss:$0 sm:$0xff] }
0x2840   :  { %2991 = vtanh.f32 %v2306_v53  ;;  %v2417_v13 = vrot.slane %v2306_v53, 6 }
0x284b   :  { %v2990_v55 = vpop.eup %2989 }
0x284c   :  { %2309 = vrot.lane.b32.xlu0 %v2990_v55, %s3121_s19 }
0x284d   :  { %v2992_v10 = vpop.eup %2991 }
0x284e   :  { %2315 = vrot.lane.b32.xlu1 %v2992_v10, %s3121_s19 }
0x28be   :  { %v2310_v61 = vpop.permute.xlu0 %2309 }
0x28bf   :  { %v2312_v25 = vmul.f32 %v2986_v19, %v2310_v61  ;;  %v2752_v19 = vld [vmem:[%s3788_s7] sm:$0xff]  }
0x28c0   :  { %v2316_v48 = vpop.permute.xlu1 %2315  ;;  %2687 = vmatpush3.bf16.msra.mxu0 %v2752_v19 }
0x28c1   :  { %2320 = vrot.lane.b32.xlu0 %v2312_v25, %s3126_s3  ;;  %v2318_v52 = vmul.f32 %v2988_v21, %v2316_v48 }
0x28c3   :  { %2324 = vrot.lane.b32.xlu1 %v2318_v52, %s3121_s19 }
0x2933   :  { %v2321_v26 = vpop.permute.xlu0 %2320 }
0x2935   :  { %v2325_v43 = vpop.permute.xlu1 %2324 }
0x2936   :  { %v2327_v28 = vsel %vm132_vm0, %v2321_v26, %v2325_v43 }
0x2937   :  { %v2333_v30 = vpack.c.bf16 %v2327_v28, %v2327_v28 }
0x2939   :  { %v2335_v46 = vrot.slane %v2333_v30, 2 }
0x293b   :  { %2650 = vmatmul.mubr.msk.bf16.vlgmr.msra.gmra.mxu1 %vm236_vm1, %v2335_v46 }
0x29fb   :  { %v2373_v38 = vpop.f32.mrf.mxu1 }
0x29fc   :  { %v2382_v31 = vrot.slane %v2373_v38, 2 }
0x29fd   :  { %v2375_v18 = vpop.f32.mrf.mxu1 }
0x29fe   :  { %v2386_v41 = vadd.f32 %v2382_v31, %v2328_v15  ;;  %v2383_v36 = vrot.slane %v2375_v18, 2 }
0x29ff   :  { %v2377_v32 = vpop.f32.mrf.mxu1 }
0x2a00   :  { %2993 = vtanh.f32 %v2386_v41  ;;  %v2387_v33 = vadd.f32 %v2383_v36, %v2331_v29  ;;  %v2651_v22 = vmul.f32 -1.442695, %v2386_v41 }
0x2a01   :  { %v2378_v20 = vpop.f32.mrf.mxu1 }
0x2a02   :  { %2995 = vtanh.f32 %v2387_v33  ;;  %v2652_v39 = vmul.f32 -1.442695, %v2387_v33 }
0x2a03   :  { %2997 = vpow2.f32 %v2651_v22 }
0x2a04   :  { %2999 = vpow2.f32 %v2652_v39 }
0x2a0d   :  { %v2994_v35 = vpop.eup %2993 }
0x2a0e   :  { %2407 = vrot.lane.b32.xlu0 %v2994_v35, %s3121_s19 }
0x2a0f   :  { %v2996_v27 = vpop.eup %2995 }
0x2a10   :  { %2421 = vrot.lane.b32.xlu1 %v2996_v27, %s3121_s19  ;;  %v2998_v44 = vpop.eup %2997 }
0x2a11   :  { %v3000_v45 = vpop.eup %2999  ;;  %v2394_v47 = vadd.f32 1.0, %v2998_v44 }
0x2a12   :  { %v2395_v49 = vadd.f32 1.0, %v3000_v45 }
0x2a13   :  { %3001 = vrcp.f32 %v2394_v47 }
0x2a14   :  { %3003 = vrcp.f32 %v2395_v49 }
0x2a20   :  { %v3002_v50 = vpop.eup %3001 }
0x2a21   :  { %v3004_v6 = vpop.eup %3003  ;;  %v2405_v12 = vmul.f32 %v3002_v50, %v2403_v11 }
0x2a22   :  { %v2419_v59 = vmul.f32 %v3004_v6, %v2417_v13 }
0x2a80   :  { %v2408_v51 = vpop.permute.xlu0 %2407 }
0x2a81   :  { %v2410_v56 = vmul.f32 %v3002_v50, %v2408_v51 }
0x2a82   :  { %v2422_v8 = vpop.permute.xlu1 %2421 }
0x2a83   :  { %2412 = vrot.lane.b32.xlu0 %v2410_v56, %s3126_s3  ;;  %v2424_v34 = vmul.f32 %v3004_v6, %v2422_v8 }
0x2a85   :  { %2426 = vrot.lane.b32.xlu1 %v2424_v34, %s3126_s3 }
0x2af5   :  { %v2413_v57 = vpop.permute.xlu0 %2412 }
0x2af6   :  { %v2415_v58 = vadd.f32 %v2413_v57, %v2405_v12 }
0x2af7   :  { %v2427_v60 = vpop.permute.xlu1 %2426 }
0x2af8   :  { %3005 = vtanh.f32 %v2415_v58  ;;  %v2429_v62 = vadd.f32 %v2427_v60, %v2419_v59 }
0x2afa   :  { %3007 = vtanh.f32 %v2429_v62 }
0x2b05   :  { %v3006_v9 = vpop.eup %3005 }
0x2b06   :  { %2432 = vrot.lane.b32.xlu0 %v3006_v9, %s3121_s19 }
0x2b07   :  { %v3008_v14 = vpop.eup %3007 }
0x2b08   :  { %2438 = vrot.lane.b32.xlu1 %v3008_v14, %s3121_s19 }
0x2b78   :  { %v2433_v7 = vpop.permute.xlu0 %2432 }
0x2b79   :  { %v2435_v17 = vmul.f32 %v3002_v50, %v2433_v7 }
0x2b7a   :  { %v2439_v21 = vpop.permute.xlu1 %2438 }
0x2b7b   :  { %2443 = vrot.lane.b32.xlu0 %v2435_v17, %s3126_s3  ;;  %v2441_v24 = vmul.f32 %v3004_v6, %v2439_v21 }
0x2b7d   :  { %2447 = vrot.lane.b32.xlu1 %v2441_v24, %s3121_s19  ;;  %s3089_s19 = scalar_lea.vmem %s2545_s28, 32 }
0x2b7e   :  { %p3090_p6 = scmp.ne.s32.totalorder %s2545_s28, %s3089_s19  ;;  %p3095_p8 = scmp.lt.s32.totalorder %s3089_s19, %s3089_s19 }
0x2b80   :  { %p3096_p9 = por %p3095_p8, %p3094_p7 }
0x2b82   :  { %p3097_p10 = pnand %p3096_p9, %p3090_p6 }
0x2bed   :  { %v2444_v63 = vpop.permute.xlu0 %2443 }
0x2bef   :  { %v2448_v37 = vpop.permute.xlu1 %2447 }
0x2bf0   :  { %v2450_v23 = vsel %vm132_vm0, %v2444_v63, %v2448_v37 }
0x2bf1   :  { %v2451_v0 = vpack.c.bf16 %v2450_v23, %v2450_v23 }
0x2bf3   :  { %v2468_v54 = vrot.slane %v2451_v0, 3 }
0x2bf5   :  { %2689 = vmatmul.mubr.msk.bf16.vlgmr.msra.gmra.mxu0 %vm236_vm1, %v2468_v54 }
0x2cb5   :  { %v2530_v42 = vpop.f32.mrf.mxu0 }
0x2cb6   :  { %v2531_v4 = vadd.f32 %v2653_v40, %v2530_v42 }
0x2cb7   :  { %v2690_v53 = vpop.f32.mrf.mxu0 }
0x2cb8   :  { %2537 = vst.msk [vmem:[#allocation12] sm:$0x3] %vm2536_vm11, %v2531_v4 }
0x2cb9   :  { %v2533_v55 = vpop.f32.mrf.mxu0 }
0x2cba   :  { %3100 = shalt.err (!%p3097_p10)
}
0x2cbb   :  { %2547 = dma.vmem_to_hbm [thread:$0]  %s2545_s28, 32, %s3790_s9, [#allocation6]   ;;  %v2691_v10 = vpop.f32.mrf.mxu0 }
0x2cbc   :  { %3115 = dma.done.wait [#allocation6], 32  }
0x2cbd   :  { %3116 = vsyncadd [#allocation6], 4294967264 }
0x2cbe   :  { %2551 = vsyncpa [#allocation5], 1 }
0x2cbf   :  { %2552 = vsyncpa [#allocation8], 1 }
0x2cc0   :  { %2553 = vsyncpa [#allocation11], 1 }
0x2cc1   :  { %2554 = vsyncpa [#allocation6], 1 }

</bundles_post_ra>
